<compile_context>
chip_gen: v5e
topology: v5e:2x2
jax: 0.10.0
libtpu: 0.0.40
codegen_flags: <defaults>
</compile_context>

<pallas_src>
import jax
import jax.numpy as jnp
import numpy as np
from jax.experimental import pallas as pl
from jax.experimental.pallas import tpu as pltpu


def _upsample1d_kernel(x_ref, w_ref, r_ref, b_ref, o_ref):
    # x_ref : (bt, C, L)   NCL input block (bt batches)
    # w_ref : (4C, C)      stacked W_k^T (rows = C_out), tap order (1, 3, 2, 0)
    # r_ref : (4, L, 2L)   f32 0/1 time-scatter matrices, same tap order
    # b_ref : (C, 1)       f32 bias (broadcasts over the 2L output lanes)
    # o_ref : (bt, C, 2L)  NCL output block
    bt, C, _ = x_ref.shape
    w = w_ref[...]
    bias = b_ref[...]
    for b in range(bt):                       # unrolled at trace time (bt small)
        xb = x_ref[b]                         # (C, L)
        # All four taps in one MXU matmul: (4C, C) @ (C, L) -> (4C, L), f32 acc.
        y = jnp.dot(w, xb, preferred_element_type=jnp.float32)
        # Accumulating scatter matmuls place each tap's L columns on the right
        # even/odd output lanes (and drop the out-of-range l-1 / l+1 columns).
        acc = jnp.dot(y[0 * C:1 * C], r_ref[0], preferred_element_type=jnp.float32)
        acc = acc + jnp.dot(y[1 * C:2 * C], r_ref[1], preferred_element_type=jnp.float32)
        acc = acc + jnp.dot(y[2 * C:3 * C], r_ref[2], preferred_element_type=jnp.float32)
        acc = acc + jnp.dot(y[3 * C:4 * C], r_ref[3], preferred_element_type=jnp.float32)
        acc = acc + bias                      # (C, 1) broadcast over lanes
        o_ref[b] = acc.astype(o_ref.dtype)


def _scatter_matrices(L):
    """R_k[l, t] (L, 2L) 0/1 matrices, tap order (1, 3, 2, 0).

    k=1: t even, uses x[t//2]          k=3: t even, uses x[t//2 - 1]
    k=2: t odd,  uses x[(t-1)//2]      k=0: t odd,  uses x[(t-1)//2 + 1]
    Out-of-range source indices simply have no matching row -> zero padding.
    """
    t = np.arange(2 * L)[None, :]
    l = np.arange(L)[:, None]

    def mk(parity, offset):
        return ((t % 2 == parity) & (l == t // 2 + offset)).astype(np.float32)

    return np.stack([mk(0, 0), mk(0, -1), mk(1, 0), mk(1, 1)], axis=0)


def _pick_batch_block(N, C, L, itemsize, max_block_bytes):
    """Largest divisor-of-N batch block that fits the byte budget and keeps
    at least 2 grid steps (so v7x can shard the parallel axis over its 2 TCs)."""
    per_batch = 3 * C * L * itemsize          # x (C*L) + out (C*2L), one copy
    best = 1
    for bt in range(1, N + 1):
        if N % bt:
            continue
        if N >= 2 and N // bt < 2:
            continue
        if bt * per_batch > max_block_bytes:
            continue
        best = max(best, bt)
    return best
    # TODO(synk): support ragged (non-divisor) batch blocks for awkward N.


def upsample1d(x_ncl, weight, bias, *, max_block_bytes=4 << 20):
    """ConvTranspose1d(dim, dim, 4, 2, 1) forward.

    x_ncl:  (N, C, L)        PyTorch NCL layout (read directly, no transpose)
    weight: (C_in, C_out, 4) PyTorch ConvTranspose1d weight layout
    bias:   (C_out,)
    returns (N, C, 2L) in NCL layout (written directly, no transpose).
    Pass bf16 x / weight for the half-HBM-traffic bf16 path (f32 accumulation).
    """
    N, C, L = x_ncl.shape
    if weight.shape != (C, C, 4):
        raise ValueError(f"weight shape {weight.shape} != {(C, C, 4)}")
    dt = x_ncl.dtype
    itemsize = jnp.dtype(dt).itemsize

    # TODO(synk): in a real model pre-fuse the weights once at init time
    # instead of per call (this concat is a one-time, weight-sized XLA op).
    taps = (1, 3, 2, 0)
    w_all = jnp.concatenate([weight[:, :, k].T for k in taps], axis=0).astype(dt)  # (4C, C)
    r_all = jnp.asarray(_scatter_matrices(L), dtype=jnp.float32)                    # (4, L, 2L)
    b_2d = bias.astype(jnp.float32).reshape(C, 1)

    bt = _pick_batch_block(N, C, L, itemsize, max_block_bytes)
    grid = (N // bt,)

    # VMEM budget (double-buffered operands + f32 temporaries + margin).
    # TODO(synk): for very large C on v7x (64 MiB VMEM), single-buffer the
    # grid-constant weights (pipeline_mode=pl.Buffered(1) or manual DMA).
    blk_in = bt * C * L * itemsize
    blk_out = bt * C * 2 * L * itemsize
    w_bytes = 4 * C * C * itemsize
    r_bytes = 4 * L * 2 * L * 4
    b_bytes = C * 4
    need = 2 * (blk_in + blk_out + w_bytes + r_bytes + b_bytes) + 4 * blk_out
    try:
        vmem_cap = pltpu.get_tpu_info().vmem_capacity_bytes
    except Exception:
        vmem_cap = 128 << 20
    vmem_limit = int(min(max(2 * need, 32 << 20), int(0.8 * vmem_cap)))

    flops = 2 * N * (4 * C * C * L + 4 * C * L * 2 * L)
    bytes_accessed = (N * C * L + N * C * 2 * L + 4 * C * C) * itemsize + r_bytes + b_bytes
    try:
        cost = pl.CostEstimate(flops=flops, transcendentals=0,
                               bytes_accessed=int(bytes_accessed))
    except Exception:
        cost = None

    out = pl.pallas_call(
        _upsample1d_kernel,
        out_shape=jax.ShapeDtypeStruct((N, C, 2 * L), dt),
        grid=grid,
        in_specs=[
            pl.BlockSpec((bt, C, L), lambda i: (i, 0, 0)),       # x (NCL)
            pl.BlockSpec((4 * C, C), lambda i: (0, 0)),          # stacked W^T
            pl.BlockSpec((4, L, 2 * L), lambda i: (0, 0, 0)),    # scatter mats
            pl.BlockSpec((C, 1), lambda i: (0, 0)),              # bias
        ],
        out_specs=pl.BlockSpec((bt, C, 2 * L), lambda i: (i, 0, 0)),
        compiler_params=pltpu.CompilerParams(
            dimension_semantics=("parallel",),
            vmem_limit_bytes=vmem_limit,
        ),
        cost_estimate=cost,
    )(x_ncl, w_all, r_all, b_2d)
    return out


def _ref_conv_transpose1d(x, w, b, stride=2, pad=1):
    """Vectorized numpy reference for nn.ConvTranspose1d semantics (float64)."""
    x = np.asarray(x, dtype=np.float64)
    w = np.asarray(w, dtype=np.float64)
    b = np.asarray(b, dtype=np.float64)
    N, Cin, L = x.shape
    _, Cout, K = w.shape
    Lout = (L - 1) * stride - 2 * pad + K
    full = np.zeros((N, Cout, (L - 1) * stride + K), dtype=np.float64)
    contrib = np.einsum('ncl,cok->nolk', x, w)            # (N, Cout, L, K)
    for k in range(K):
        full[:, :, k: k + (L - 1) * stride + 1: stride] += contrib[:, :, :, k]
    return full[:, :, pad: pad + Lout] + b[None, :, None]


if __name__ == "__main__":
    key = jax.random.PRNGKey(0)

    def run_case(N, dim, L, dtype=jnp.float32, tol=2e-3):
        kx, kw, kb = jax.random.split(jax.random.fold_in(key, N * 1000 + L), 3)
        x = jax.random.normal(kx, (N, dim, L), dtype=jnp.float32)
        lim = 1.0 / np.sqrt(float(dim * 4))
        # PyTorch ConvTranspose1d weight shape: (in_channels, out_channels, K)
        weight = jax.random.uniform(kw, (dim, dim, 4), jnp.float32, -lim, lim)
        bias = jax.random.uniform(kb, (dim,), jnp.float32, -lim, lim)

        out = jax.block_until_ready(
            upsample1d(x.astype(dtype), weight.astype(dtype), bias))
        assert out.shape == (N, dim, 2 * L), out.shape
        ref = _ref_conv_transpose1d(x, weight, bias)
        # f32 path with f32 accumulation is ~1e-5 accurate; tolerance keeps a
        # small margin for reduced-precision MXU passes on some generations.
        np.testing.assert_allclose(np.asarray(out, dtype=np.float64), ref,
                                   rtol=tol, atol=tol)

    # bt=4, grid=2 parallel steps, lane-aligned channels.
    run_case(N=8, dim=128, L=16)
    # Smallest batch: bt=1, grid=2.
    run_case(N=2, dim=128, L=8)
    # Non-128 channel count (blocks still cover full trailing dims).
    run_case(N=3, dim=64, L=8)
    # bf16 I/O path (half HBM traffic, f32 accumulation), looser tolerance.
    run_case(N=4, dim=128, L=16, dtype=jnp.bfloat16, tol=3e-2)

    print("KERNEL_OK")
</pallas_src>

<mosaic_0001>
module attributes {stable_mosaic.version = 11 : i64} {
  func.func @_upsample1d_kernel(%arg0: i32, %arg1: memref<4x128x16xf32, #tpu.memory_space<vmem>>, %arg2: memref<512x128xf32, #tpu.memory_space<vmem>>, %arg3: memref<4x16x32xf32, #tpu.memory_space<vmem>>, %arg4: memref<128x1xf32, #tpu.memory_space<vmem>>, %arg5: memref<4x128x32xf32, #tpu.memory_space<vmem>>) attributes {dimension_semantics = [#tpu.dimension_semantics<parallel>], iteration_bounds = array<i64: 2>, scalar_prefetch = 0 : i64, scratch_operands = 0 : i64, tpu.core_type = #tpu.core_type<tc>, window_params = [{transform_indices = @transform_0, window_bounds = array<i64: 4, 128, 16>}, {pipeline_mode = #tpu.pipeline_mode<synchronous>, transform_indices = @transform_1, window_bounds = array<i64: 512, 128>}, {pipeline_mode = #tpu.pipeline_mode<synchronous>, transform_indices = @transform_2, window_bounds = array<i64: 4, 16, 32>}, {pipeline_mode = #tpu.pipeline_mode<synchronous>, transform_indices = @transform_3, window_bounds = array<i64: 128, 1>}, {transform_indices = @transform_4, window_bounds = array<i64: 4, 128, 32>}]} {
    %c0 = arith.constant 0 : index
    %c0_0 = arith.constant 0 : index
    %0 = vector.load %arg2[%c0, %c0_0] : memref<512x128xf32, #tpu.memory_space<vmem>>, vector<512x128xf32>
    %c0_1 = arith.constant 0 : index
    %c0_2 = arith.constant 0 : index
    %1 = vector.load %arg4[%c0_1, %c0_2] : memref<128x1xf32, #tpu.memory_space<vmem>>, vector<128x1xf32>
    %c0_3 = arith.constant 0 : index
    %c0_4 = arith.constant 0 : index
    %c0_5 = arith.constant 0 : index
    %2 = vector.load %arg1[%c0_3, %c0_4, %c0_5] : memref<4x128x16xf32, #tpu.memory_space<vmem>>, vector<1x128x16xf32>
    %3 = vector.shape_cast %2 : vector<1x128x16xf32> to vector<128x16xf32>
    %cst = arith.constant dense<0.000000e+00> : vector<512x16xf32>
    %4 = tpu.matmul %0, %3, %cst {dimension_numbers = #tpu.dot_dimension_numbers<[1], [0], [0], [1], [0, 0, 1, 1], [], []>} : vector<512x128xf32>, vector<128x16xf32>, vector<512x16xf32> -> vector<512x16xf32>
    %5 = vector.extract_strided_slice %4 {offsets = [0, 0], sizes = [128, 16], strides = [1, 1]} : vector<512x16xf32> to vector<128x16xf32>
    %c0_6 = arith.constant 0 : index
    %c0_7 = arith.constant 0 : index
    %c0_8 = arith.constant 0 : index
    %6 = vector.load %arg3[%c0_6, %c0_7, %c0_8] : memref<4x16x32xf32, #tpu.memory_space<vmem>>, vector<1x16x32xf32>
    %7 = vector.shape_cast %6 : vector<1x16x32xf32> to vector<16x32xf32>
    %cst_9 = arith.constant dense<0.000000e+00> : vector<128x32xf32>
    %8 = tpu.matmul %5, %7, %cst_9 {dimension_numbers = #tpu.dot_dimension_numbers<[1], [0], [0], [1], [0, 0, 1, 1], [], []>} : vector<128x16xf32>, vector<16x32xf32>, vector<128x32xf32> -> vector<128x32xf32>
    %9 = vector.extract_strided_slice %4 {offsets = [128, 0], sizes = [128, 16], strides = [1, 1]} : vector<512x16xf32> to vector<128x16xf32>
    %c1 = arith.constant 1 : index
    %c0_10 = arith.constant 0 : index
    %c0_11 = arith.constant 0 : index
    %10 = vector.load %arg3[%c1, %c0_10, %c0_11] : memref<4x16x32xf32, #tpu.memory_space<vmem>>, vector<1x16x32xf32>
    %11 = vector.shape_cast %10 : vector<1x16x32xf32> to vector<16x32xf32>
    %cst_12 = arith.constant dense<0.000000e+00> : vector<128x32xf32>
    %12 = tpu.matmul %9, %11, %cst_12 {dimension_numbers = #tpu.dot_dimension_numbers<[1], [0], [0], [1], [0, 0, 1, 1], [], []>} : vector<128x16xf32>, vector<16x32xf32>, vector<128x32xf32> -> vector<128x32xf32>
    %13 = arith.addf %8, %12 : vector<128x32xf32>
    %14 = vector.extract_strided_slice %4 {offsets = [256, 0], sizes = [128, 16], strides = [1, 1]} : vector<512x16xf32> to vector<128x16xf32>
    %c2 = arith.constant 2 : index
    %c0_13 = arith.constant 0 : index
    %c0_14 = arith.constant 0 : index
    %15 = vector.load %arg3[%c2, %c0_13, %c0_14] : memref<4x16x32xf32, #tpu.memory_space<vmem>>, vector<1x16x32xf32>
    %16 = vector.shape_cast %15 : vector<1x16x32xf32> to vector<16x32xf32>
    %cst_15 = arith.constant dense<0.000000e+00> : vector<128x32xf32>
    %17 = tpu.matmul %14, %16, %cst_15 {dimension_numbers = #tpu.dot_dimension_numbers<[1], [0], [0], [1], [0, 0, 1, 1], [], []>} : vector<128x16xf32>, vector<16x32xf32>, vector<128x32xf32> -> vector<128x32xf32>
    %18 = arith.addf %13, %17 : vector<128x32xf32>
    %19 = vector.extract_strided_slice %4 {offsets = [384, 0], sizes = [128, 16], strides = [1, 1]} : vector<512x16xf32> to vector<128x16xf32>
    %c3 = arith.constant 3 : index
    %c0_16 = arith.constant 0 : index
    %c0_17 = arith.constant 0 : index
    %20 = vector.load %arg3[%c3, %c0_16, %c0_17] : memref<4x16x32xf32, #tpu.memory_space<vmem>>, vector<1x16x32xf32>
    %21 = vector.shape_cast %20 : vector<1x16x32xf32> to vector<16x32xf32>
    %cst_18 = arith.constant dense<0.000000e+00> : vector<128x32xf32>
    %22 = tpu.matmul %19, %21, %cst_18 {dimension_numbers = #tpu.dot_dimension_numbers<[1], [0], [0], [1], [0, 0, 1, 1], [], []>} : vector<128x16xf32>, vector<16x32xf32>, vector<128x32xf32> -> vector<128x32xf32>
    %23 = arith.addf %18, %22 : vector<128x32xf32>
    %24 = vector.broadcast %1 : vector<128x1xf32> to vector<128x32xf32>
    %25 = arith.addf %23, %24 : vector<128x32xf32>
    %c0_19 = arith.constant 0 : index
    %c0_20 = arith.constant 0 : index
    %c0_21 = arith.constant 0 : index
    %26 = vector.load %arg5[%c0_19, %c0_20, %c0_21] : memref<4x128x32xf32, #tpu.memory_space<vmem>>, vector<1x128x32xf32>
    %27 = vector.shape_cast %26 : vector<1x128x32xf32> to vector<128x32xf32>
    %28 = vector.shape_cast %25 : vector<128x32xf32> to vector<1x128x32xf32>
    tpu.vector_store %arg5[%c0_19, %c0_20, %c0_21], %28 {strides = array<i32>} : memref<4x128x32xf32, #tpu.memory_space<vmem>>, vector<1x128x32xf32>,
    %c1_22 = arith.constant 1 : index
    %c0_23 = arith.constant 0 : index
    %c0_24 = arith.constant 0 : index
    %29 = vector.load %arg1[%c1_22, %c0_23, %c0_24] : memref<4x128x16xf32, #tpu.memory_space<vmem>>, vector<1x128x16xf32>
    %30 = vector.shape_cast %29 : vector<1x128x16xf32> to vector<128x16xf32>
    %cst_25 = arith.constant dense<0.000000e+00> : vector<512x16xf32>
    %31 = tpu.matmul %0, %30, %cst_25 {dimension_numbers = #tpu.dot_dimension_numbers<[1], [0], [0], [1], [0, 0, 1, 1], [], []>} : vector<512x128xf32>, vector<128x16xf32>, vector<512x16xf32> -> vector<512x16xf32>
    %32 = vector.extract_strided_slice %31 {offsets = [0, 0], sizes = [128, 16], strides = [1, 1]} : vector<512x16xf32> to vector<128x16xf32>
    %c0_26 = arith.constant 0 : index
    %c0_27 = arith.constant 0 : index
    %c0_28 = arith.constant 0 : index
    %33 = vector.load %arg3[%c0_26, %c0_27, %c0_28] : memref<4x16x32xf32, #tpu.memory_space<vmem>>, vector<1x16x32xf32>
    %34 = vector.shape_cast %33 : vector<1x16x32xf32> to vector<16x32xf32>
    %cst_29 = arith.constant dense<0.000000e+00> : vector<128x32xf32>
    %35 = tpu.matmul %32, %34, %cst_29 {dimension_numbers = #tpu.dot_dimension_numbers<[1], [0], [0], [1], [0, 0, 1, 1], [], []>} : vector<128x16xf32>, vector<16x32xf32>, vector<128x32xf32> -> vector<128x32xf32>
    %36 = vector.extract_strided_slice %31 {offsets = [128, 0], sizes = [128, 16], strides = [1, 1]} : vector<512x16xf32> to vector<128x16xf32>
    %c1_30 = arith.constant 1 : index
    %c0_31 = arith.constant 0 : index
    %c0_32 = arith.constant 0 : index
    %37 = vector.load %arg3[%c1_30, %c0_31, %c0_32] : memref<4x16x32xf32, #tpu.memory_space<vmem>>, vector<1x16x32xf32>
    %38 = vector.shape_cast %37 : vector<1x16x32xf32> to vector<16x32xf32>
    %cst_33 = arith.constant dense<0.000000e+00> : vector<128x32xf32>
    %39 = tpu.matmul %36, %38, %cst_33 {dimension_numbers = #tpu.dot_dimension_numbers<[1], [0], [0], [1], [0, 0, 1, 1], [], []>} : vector<128x16xf32>, vector<16x32xf32>, vector<128x32xf32> -> vector<128x32xf32>
    %40 = arith.addf %35, %39 : vector<128x32xf32>
    %41 = vector.extract_strided_slice %31 {offsets = [256, 0], sizes = [128, 16], strides = [1, 1]} : vector<512x16xf32> to vector<128x16xf32>
    %c2_34 = arith.constant 2 : index
    %c0_35 = arith.constant 0 : index
    %c0_36 = arith.constant 0 : index
    %42 = vector.load %arg3[%c2_34, %c0_35, %c0_36] : memref<4x16x32xf32, #tpu.memory_space<vmem>>, vector<1x16x32xf32>
    %43 = vector.shape_cast %42 : vector<1x16x32xf32> to vector<16x32xf32>
    %cst_37 = arith.constant dense<0.000000e+00> : vector<128x32xf32>
    %44 = tpu.matmul %41, %43, %cst_37 {dimension_numbers = #tpu.dot_dimension_numbers<[1], [0], [0], [1], [0, 0, 1, 1], [], []>} : vector<128x16xf32>, vector<16x32xf32>, vector<128x32xf32> -> vector<128x32xf32>
    %45 = arith.addf %40, %44 : vector<128x32xf32>
    %46 = vector.extract_strided_slice %31 {offsets = [384, 0], sizes = [128, 16], strides = [1, 1]} : vector<512x16xf32> to vector<128x16xf32>
    %c3_38 = arith.constant 3 : index
    %c0_39 = arith.constant 0 : index
    %c0_40 = arith.constant 0 : index
    %47 = vector.load %arg3[%c3_38, %c0_39, %c0_40] : memref<4x16x32xf32, #tpu.memory_space<vmem>>, vector<1x16x32xf32>
    %48 = vector.shape_cast %47 : vector<1x16x32xf32> to vector<16x32xf32>
    %cst_41 = arith.constant dense<0.000000e+00> : vector<128x32xf32>
    %49 = tpu.matmul %46, %48, %cst_41 {dimension_numbers = #tpu.dot_dimension_numbers<[1], [0], [0], [1], [0, 0, 1, 1], [], []>} : vector<128x16xf32>, vector<16x32xf32>, vector<128x32xf32> -> vector<128x32xf32>
    %50 = arith.addf %45, %49 : vector<128x32xf32>
    %51 = vector.broadcast %1 : vector<128x1xf32> to vector<128x32xf32>
    %52 = arith.addf %50, %51 : vector<128x32xf32>
    %c1_42 = arith.constant 1 : index
    %c0_43 = arith.constant 0 : index
    %c0_44 = arith.constant 0 : index
    %53 = vector.load %arg5[%c1_42, %c0_43, %c0_44] : memref<4x128x32xf32, #tpu.memory_space<vmem>>, vector<1x128x32xf32>
    %54 = vector.shape_cast %53 : vector<1x128x32xf32> to vector<128x32xf32>
    %55 = vector.shape_cast %52 : vector<128x32xf32> to vector<1x128x32xf32>
    tpu.vector_store %arg5[%c1_42, %c0_43, %c0_44], %55 {strides = array<i32>} : memref<4x128x32xf32, #tpu.memory_space<vmem>>, vector<1x128x32xf32>,
    %c2_45 = arith.constant 2 : index
    %c0_46 = arith.constant 0 : index
    %c0_47 = arith.constant 0 : index
    %56 = vector.load %arg1[%c2_45, %c0_46, %c0_47] : memref<4x128x16xf32, #tpu.memory_space<vmem>>, vector<1x128x16xf32>
    %57 = vector.shape_cast %56 : vector<1x128x16xf32> to vector<128x16xf32>
    %cst_48 = arith.constant dense<0.000000e+00> : vector<512x16xf32>
    %58 = tpu.matmul %0, %57, %cst_48 {dimension_numbers = #tpu.dot_dimension_numbers<[1], [0], [0], [1], [0, 0, 1, 1], [], []>} : vector<512x128xf32>, vector<128x16xf32>, vector<512x16xf32> -> vector<512x16xf32>
    %59 = vector.extract_strided_slice %58 {offsets = [0, 0], sizes = [128, 16], strides = [1, 1]} : vector<512x16xf32> to vector<128x16xf32>
    %c0_49 = arith.constant 0 : index
    %c0_50 = arith.constant 0 : index
    %c0_51 = arith.constant 0 : index
    %60 = vector.load %arg3[%c0_49, %c0_50, %c0_51] : memref<4x16x32xf32, #tpu.memory_space<vmem>>, vector<1x16x32xf32>
    %61 = vector.shape_cast %60 : vector<1x16x32xf32> to vector<16x32xf32>
    %cst_52 = arith.constant dense<0.000000e+00> : vector<128x32xf32>
    %62 = tpu.matmul %59, %61, %cst_52 {dimension_numbers = #tpu.dot_dimension_numbers<[1], [0], [0], [1], [0, 0, 1, 1], [], []>} : vector<128x16xf32>, vector<16x32xf32>, vector<128x32xf32> -> vector<128x32xf32>
    %63 = vector.extract_strided_slice %58 {offsets = [128, 0], sizes = [128, 16], strides = [1, 1]} : vector<512x16xf32> to vector<128x16xf32>
    %c1_53 = arith.constant 1 : index
    %c0_54 = arith.constant 0 : index
    %c0_55 = arith.constant 0 : index
    %64 = vector.load %arg3[%c1_53, %c0_54, %c0_55] : memref<4x16x32xf32, #tpu.memory_space<vmem>>, vector<1x16x32xf32>
    %65 = vector.shape_cast %64 : vector<1x16x32xf32> to vector<16x32xf32>
    %cst_56 = arith.constant dense<0.000000e+00> : vector<128x32xf32>
    %66 = tpu.matmul %63, %65, %cst_56 {dimension_numbers = #tpu.dot_dimension_numbers<[1], [0], [0], [1], [0, 0, 1, 1], [], []>} : vector<128x16xf32>, vector<16x32xf32>, vector<128x32xf32> -> vector<128x32xf32>
    %67 = arith.addf %62, %66 : vector<128x32xf32>
    %68 = vector.extract_strided_slice %58 {offsets = [256, 0], sizes = [128, 16], strides = [1, 1]} : vector<512x16xf32> to vector<128x16xf32>
    %c2_57 = arith.constant 2 : index
    %c0_58 = arith.constant 0 : index
    %c0_59 = arith.constant 0 : index
    %69 = vector.load %arg3[%c2_57, %c0_58, %c0_59] : memref<4x16x32xf32, #tpu.memory_space<vmem>>, vector<1x16x32xf32>
    %70 = vector.shape_cast %69 : vector<1x16x32xf32> to vector<16x32xf32>
    %cst_60 = arith.constant dense<0.000000e+00> : vector<128x32xf32>
    %71 = tpu.matmul %68, %70, %cst_60 {dimension_numbers = #tpu.dot_dimension_numbers<[1], [0], [0], [1], [0, 0, 1, 1], [], []>} : vector<128x16xf32>, vector<16x32xf32>, vector<128x32xf32> -> vector<128x32xf32>
    %72 = arith.addf %67, %71 : vector<128x32xf32>
    %73 = vector.extract_strided_slice %58 {offsets = [384, 0], sizes = [128, 16], strides = [1, 1]} : vector<512x16xf32> to vector<128x16xf32>
    %c3_61 = arith.constant 3 : index
    %c0_62 = arith.constant 0 : index
    %c0_63 = arith.constant 0 : index
    %74 = vector.load %arg3[%c3_61, %c0_62, %c0_63] : memref<4x16x32xf32, #tpu.memory_space<vmem>>, vector<1x16x32xf32>
    %75 = vector.shape_cast %74 : vector<1x16x32xf32> to vector<16x32xf32>
    %cst_64 = arith.constant dense<0.000000e+00> : vector<128x32xf32>
    %76 = tpu.matmul %73, %75, %cst_64 {dimension_numbers = #tpu.dot_dimension_numbers<[1], [0], [0], [1], [0, 0, 1, 1], [], []>} : vector<128x16xf32>, vector<16x32xf32>, vector<128x32xf32> -> vector<128x32xf32>
    %77 = arith.addf %72, %76 : vector<128x32xf32>
    %78 = vector.broadcast %1 : vector<128x1xf32> to vector<128x32xf32>
    %79 = arith.addf %77, %78 : vector<128x32xf32>
    %c2_65 = arith.constant 2 : index
    %c0_66 = arith.constant 0 : index
    %c0_67 = arith.constant 0 : index
    %80 = vector.load %arg5[%c2_65, %c0_66, %c0_67] : memref<4x128x32xf32, #tpu.memory_space<vmem>>, vector<1x128x32xf32>
    %81 = vector.shape_cast %80 : vector<1x128x32xf32> to vector<128x32xf32>
    %82 = vector.shape_cast %79 : vector<128x32xf32> to vector<1x128x32xf32>
    tpu.vector_store %arg5[%c2_65, %c0_66, %c0_67], %82 {strides = array<i32>} : memref<4x128x32xf32, #tpu.memory_space<vmem>>, vector<1x128x32xf32>,
    %c3_68 = arith.constant 3 : index
    %c0_69 = arith.constant 0 : index
    %c0_70 = arith.constant 0 : index
    %83 = vector.load %arg1[%c3_68, %c0_69, %c0_70] : memref<4x128x16xf32, #tpu.memory_space<vmem>>, vector<1x128x16xf32>
    %84 = vector.shape_cast %83 : vector<1x128x16xf32> to vector<128x16xf32>
    %cst_71 = arith.constant dense<0.000000e+00> : vector<512x16xf32>
    %85 = tpu.matmul %0, %84, %cst_71 {dimension_numbers = #tpu.dot_dimension_numbers<[1], [0], [0], [1], [0, 0, 1, 1], [], []>} : vector<512x128xf32>, vector<128x16xf32>, vector<512x16xf32> -> vector<512x16xf32>
    %86 = vector.extract_strided_slice %85 {offsets = [0, 0], sizes = [128, 16], strides = [1, 1]} : vector<512x16xf32> to vector<128x16xf32>
    %c0_72 = arith.constant 0 : index
    %c0_73 = arith.constant 0 : index
    %c0_74 = arith.constant 0 : index
    %87 = vector.load %arg3[%c0_72, %c0_73, %c0_74] : memref<4x16x32xf32, #tpu.memory_space<vmem>>, vector<1x16x32xf32>
    %88 = vector.shape_cast %87 : vector<1x16x32xf32> to vector<16x32xf32>
    %cst_75 = arith.constant dense<0.000000e+00> : vector<128x32xf32>
    %89 = tpu.matmul %86, %88, %cst_75 {dimension_numbers = #tpu.dot_dimension_numbers<[1], [0], [0], [1], [0, 0, 1, 1], [], []>} : vector<128x16xf32>, vector<16x32xf32>, vector<128x32xf32> -> vector<128x32xf32>
    %90 = vector.extract_strided_slice %85 {offsets = [128, 0], sizes = [128, 16], strides = [1, 1]} : vector<512x16xf32> to vector<128x16xf32>
    %c1_76 = arith.constant 1 : index
    %c0_77 = arith.constant 0 : index
    %c0_78 = arith.constant 0 : index
    %91 = vector.load %arg3[%c1_76, %c0_77, %c0_78] : memref<4x16x32xf32, #tpu.memory_space<vmem>>, vector<1x16x32xf32>
    %92 = vector.shape_cast %91 : vector<1x16x32xf32> to vector<16x32xf32>
    %cst_79 = arith.constant dense<0.000000e+00> : vector<128x32xf32>
    %93 = tpu.matmul %90, %92, %cst_79 {dimension_numbers = #tpu.dot_dimension_numbers<[1], [0], [0], [1], [0, 0, 1, 1], [], []>} : vector<128x16xf32>, vector<16x32xf32>, vector<128x32xf32> -> vector<128x32xf32>
    %94 = arith.addf %89, %93 : vector<128x32xf32>
    %95 = vector.extract_strided_slice %85 {offsets = [256, 0], sizes = [128, 16], strides = [1, 1]} : vector<512x16xf32> to vector<128x16xf32>
    %c2_80 = arith.constant 2 : index
    %c0_81 = arith.constant 0 : index
    %c0_82 = arith.constant 0 : index
    %96 = vector.load %arg3[%c2_80, %c0_81, %c0_82] : memref<4x16x32xf32, #tpu.memory_space<vmem>>, vector<1x16x32xf32>
    %97 = vector.shape_cast %96 : vector<1x16x32xf32> to vector<16x32xf32>
    %cst_83 = arith.constant dense<0.000000e+00> : vector<128x32xf32>
    %98 = tpu.matmul %95, %97, %cst_83 {dimension_numbers = #tpu.dot_dimension_numbers<[1], [0], [0], [1], [0, 0, 1, 1], [], []>} : vector<128x16xf32>, vector<16x32xf32>, vector<128x32xf32> -> vector<128x32xf32>
    %99 = arith.addf %94, %98 : vector<128x32xf32>
    %100 = vector.extract_strided_slice %85 {offsets = [384, 0], sizes = [128, 16], strides = [1, 1]} : vector<512x16xf32> to vector<128x16xf32>
    %c3_84 = arith.constant 3 : index
    %c0_85 = arith.constant 0 : index
    %c0_86 = arith.constant 0 : index
    %101 = vector.load %arg3[%c3_84, %c0_85, %c0_86] : memref<4x16x32xf32, #tpu.memory_space<vmem>>, vector<1x16x32xf32>
    %102 = vector.shape_cast %101 : vector<1x16x32xf32> to vector<16x32xf32>
    %cst_87 = arith.constant dense<0.000000e+00> : vector<128x32xf32>
    %103 = tpu.matmul %100, %102, %cst_87 {dimension_numbers = #tpu.dot_dimension_numbers<[1], [0], [0], [1], [0, 0, 1, 1], [], []>} : vector<128x16xf32>, vector<16x32xf32>, vector<128x32xf32> -> vector<128x32xf32>
    %104 = arith.addf %99, %103 : vector<128x32xf32>
    %105 = vector.broadcast %1 : vector<128x1xf32> to vector<128x32xf32>
    %106 = arith.addf %104, %105 : vector<128x32xf32>
    %c3_88 = arith.constant 3 : index
    %c0_89 = arith.constant 0 : index
    %c0_90 = arith.constant 0 : index
    %107 = vector.load %arg5[%c3_88, %c0_89, %c0_90] : memref<4x128x32xf32, #tpu.memory_space<vmem>>, vector<1x128x32xf32>
    %108 = vector.shape_cast %107 : vector<1x128x32xf32> to vector<128x32xf32>
    %109 = vector.shape_cast %106 : vector<128x32xf32> to vector<1x128x32xf32>
    tpu.vector_store %arg5[%c3_88, %c0_89, %c0_90], %109 {strides = array<i32>} : memref<4x128x32xf32, #tpu.memory_space<vmem>>, vector<1x128x32xf32>,
    return
  }
  func.func @transform_0(%arg0: i32) -> (i32, i32, i32) {
    %c0_i32 = arith.constant 0 : i32
    %c0_i32_0 = arith.constant 0 : i32
    %c0_i32_1 = arith.constant 0 : i32
    return %arg0, %c0_i32, %c0_i32_0 : i32, i32, i32
  }
  func.func @transform_1(%arg0: i32) -> (i32, i32) {
    %c0_i32 = arith.constant 0 : i32
    %c0_i32_0 = arith.constant 0 : i32
    %c0_i32_1 = arith.constant 0 : i32
    return %c0_i32, %c0_i32_0 : i32, i32
  }
  func.func @transform_2(%arg0: i32) -> (i32, i32, i32) {
    %c0_i32 = arith.constant 0 : i32
    %c0_i32_0 = arith.constant 0 : i32
    %c0_i32_1 = arith.constant 0 : i32
    %c0_i32_2 = arith.constant 0 : i32
    return %c0_i32, %c0_i32_0, %c0_i32_1 : i32, i32, i32
  }
  func.func @transform_3(%arg0: i32) -> (i32, i32) {
    %c0_i32 = arith.constant 0 : i32
    %c0_i32_0 = arith.constant 0 : i32
    %c0_i32_1 = arith.constant 0 : i32
    return %c0_i32, %c0_i32_0 : i32, i32
  }
  func.func @transform_4(%arg0: i32) -> (i32, i32, i32) {
    %c0_i32 = arith.constant 0 : i32
    %c0_i32_0 = arith.constant 0 : i32
    %c0_i32_1 = arith.constant 0 : i32
    return %arg0, %c0_i32, %c0_i32_0 : i32, i32, i32
  }
}

</mosaic_0001>

<bundles_post_ra>
// kernel: tpu_custom_call.1
= control target key start
LH: loop header
LB: loop body
LE: loop exit
PB: predicated region body
PF: predicated region fallthrough
CT: control target
= control target key end

     0   :  { %s3950_s15 = smov 0   ;;  %s6158_s0 = inlined_call_operand.vmem [shape: f32[8,128,16], index: 0, kind: input, shape index: {}]   ;;  %s6159_s1 = inlined_call_operand.vmem [shape: f32[512,128], index: 1, kind: input, shape index: {}]   ;;  %s6160_s2 = inlined_call_operand.vmem [shape: f32[4,16,32], index: 2, kind: input, shape index: {}]   ;;  %s6161_s3 = inlined_call_operand.vmem [shape: f32[128,1], index: 3, kind: input, shape index: {}]   ;;  %s6162_s4 = inlined_call_operand.vmem [shape: f32[8,128,32], index: 4, kind: output, shape index: {}]  }
   0x1 LB: > { %s3431_s16 = sadd.s32 4294967295, %s3922_s15   ;;  %p3435_p0 = scmp.ge.s32.totalorder %s3922_s15, 1  ;;  %s3922_s15 = sphi %s3950_s15, %s14_s15  }
   0x2   : > { %p164_p1 = scmp.lt.s32.totalorder %s3922_s15, 3 }
   0x4   : > { %p165_p2 = pnand %p3435_p0, %p164_p1 }
   0x6   : > { %168 = sbr.rel (%p165_p2) target bundleno = 1848 (0x738), region = 36 }
   0xb   : > { %s3436_s17 = sshll.u32 %s3431_s16, 2  ;;  %v3987_v16 = vld [vmem:[%s6159_s1] sm:$0xff]  ;;  %v3993_v17 = vld [vmem:[%s6159_s1 + $0x8] sm:$0xff]  ;;  %v3999_v18 = vld [vmem:[%s6159_s1 + $0x10] sm:$0xff]  ;;  %vm516_vm0 = vcmask 130048   ;;  %vm1103_vm1 = vcmask 261120  }
   0xc   : > { %p193_p3 = scmp.lt.s32.totalorder %s3436_s17, 7  ;;  %v4005_v19 = vld [vmem:[%s6159_s1 + $0x18] sm:$0xff]  ;;  %v4011_v20 = vld [vmem:[%s6159_s1 + $0x20] sm:$0xff]  ;;  %v4017_v21 = vld [vmem:[%s6159_s1 + $0x28] sm:$0xff] }
   0xd   : > { %v4023_v22 = vld [vmem:[%s6159_s1 + $0x30] sm:$0xff]  ;;  %v4029_v23 = vld [vmem:[%s6159_s1 + $0x38] sm:$0xff]  ;;  %v4035_v24 = vld [vmem:[%s6159_s1 + $0x40] sm:$0xff] }
   0xe   : > { %s6380_s17 = smov (!%p193_p3, %s3436_s17), 7  ;;  %v4041_v25 = vld [vmem:[%s6159_s1 + $0x48] sm:$0xff]  ;;  %v4047_v26 = vld [vmem:[%s6159_s1 + $0x50] sm:$0xff]  ;;  %v4053_v27 = vld [vmem:[%s6159_s1 + $0x58] sm:$0xff] }
   0xf   : > { %s3820_s18 = sshll.u32 %s6380_s17, 7  ;;  %v4059_v28 = vld [vmem:[%s6160_s2 + $0x8] sm:$0xff]  ;;  %v4066_v29 = vld [vmem:[%s6160_s2] sm:$0xff]  ;;  %v4086_v34 = vld [vmem:[%s6159_s1 + $0x70] sm:$0xff] }
  0x10   : > { %s3966_s21 = scalar_lea.vmem %s6158_s0, %s3820_s18  ;;  %692 = vmatpush.msra.mxu2 %v4059_v28  ;;  %v4071_v30 = vld [vmem:[%s6159_s1 + $0x60] sm:$0xff]  ;;  %v4079_v32 = vld [vmem:[%s6159_s1 + $0x68] sm:$0xff]  ;;  %v4093_v36 = vld [vmem:[%s6159_s1 + $0x78] sm:$0xff]  ;;  %s4738_s24 = scalar_lea.vmem %s6162_s4, %s3820_s18 }
  0x11   : > { %v301_v0 = vld [vmem:[%s3966_s21 + $0x78] sm:$0xff]  ;;  %v300_v1 = vld [vmem:[%s3966_s21 + $0x70] sm:$0xff]  ;;  %v299_v2 = vld [vmem:[%s3966_s21 + $0x68] sm:$0xff] }
  0x12   : > { %302 = vmatpush.msra.mxu0 %v301_v0  ;;  %v298_v3 = vld [vmem:[%s3966_s21 + $0x60] sm:$0xff]  ;;  %v297_v4 = vld [vmem:[%s3966_s21 + $0x58] sm:$0xff]  ;;  %v296_v5 = vld [vmem:[%s3966_s21 + $0x50] sm:$0xff]  ;;  %693 = vmatpush.msra.mxu2 %v4066_v29 }
  0x13   : > { %v295_v6 = vld [vmem:[%s3966_s21 + $0x48] sm:$0xff]  ;;  %v294_v7 = vld [vmem:[%s3966_s21 + $0x40] sm:$0xff]  ;;  %v293_v8 = vld [vmem:[%s3966_s21 + $0x38] sm:$0xff] }
  0x14   : > { %303 = vmatpush.msra.mxu0 %v300_v1  ;;  %v292_v9 = vld [vmem:[%s3966_s21 + $0x30] sm:$0xff]  ;;  %v291_v10 = vld [vmem:[%s3966_s21 + $0x28] sm:$0xff]  ;;  %v290_v11 = vld [vmem:[%s3966_s21 + $0x20] sm:$0xff] }
  0x15   : > { %v289_v12 = vld [vmem:[%s3966_s21 + $0x18] sm:$0xff]  ;;  %v288_v13 = vld [vmem:[%s3966_s21 + $0x10] sm:$0xff]  ;;  %v287_v14 = vld [vmem:[%s3966_s21 + $0x8] sm:$0xff] }
  0x16   : > { %304 = vmatpush.msra.mxu0 %v299_v2  ;;  %v286_v15 = vld [vmem:[%s3966_s21] sm:$0xff]  ;;  %v3527_v31 = vld [vmem:[%s3966_s21 + $0xf8] sm:$0xff]  ;;  %v3526_v33 = vld [vmem:[%s3966_s21 + $0xf0] sm:$0xff] }
  0x17   : > { %1137 = vmatpush.msrb.mxu2 %v3527_v31  ;;  %v3525_v35 = vld [vmem:[%s3966_s21 + $0xe8] sm:$0xff]  ;;  %v3524_v37 = vld [vmem:[%s3966_s21 + $0xe0] sm:$0xff]  ;;  %v3523_v40 = vld [vmem:[%s3966_s21 + $0xd8] sm:$0xff] }
  0x18   : > { %305 = vmatpush.msra.mxu0 %v298_v3  ;;  %v4100_v39 = vld [vmem:[%s6159_s1 + $0x80] sm:$0xff]  ;;  %v4108_v42 = vld [vmem:[%s6159_s1 + $0x88] sm:$0xff]  ;;  %v3522_v43 = vld [vmem:[%s3966_s21 + $0xd0] sm:$0xff] }
  0x19   : > { %1138 = vmatpush.msrb.mxu2 %v3526_v33  ;;  %v4116_v45 = vld [vmem:[%s6159_s1 + $0x90] sm:$0xff]  ;;  %v3521_v46 = vld [vmem:[%s3966_s21 + $0xc8] sm:$0xff]  ;;  %v4124_v48 = vld [vmem:[%s6159_s1 + $0x98] sm:$0xff] }
  0x1a   : > { %306 = vmatpush.msra.mxu0 %v297_v4  ;;  %v3520_v49 = vld [vmem:[%s3966_s21 + $0xc0] sm:$0xff]  ;;  %v3519_v52 = vld [vmem:[%s3966_s21 + $0xb8] sm:$0xff]  ;;  %v4140_v54 = vld [vmem:[%s6159_s1 + $0xa8] sm:$0xff] }
  0x1b   : > { %1139 = vmatpush.msrb.mxu2 %v3525_v35  ;;  %v4132_v51 = vld [vmem:[%s6159_s1 + $0xa0] sm:$0xff]  ;;  %v3518_v55 = vld [vmem:[%s3966_s21 + $0xb0] sm:$0xff]  ;;  %v3517_v58 = vld [vmem:[%s3966_s21 + $0xa8] sm:$0xff] }
  0x1c   : > { %307 = vmatpush.msra.mxu0 %v296_v5  ;;  %v4148_v57 = vld [vmem:[%s6159_s1 + $0xb0] sm:$0xff]  ;;  %v4156_v60 = vld [vmem:[%s6159_s1 + $0xb8] sm:$0xff]  ;;  %v3516_v61 = vld [vmem:[%s3966_s21 + $0xa0] sm:$0xff] }
  0x1d   : > { %1140 = vmatpush.msrb.mxu2 %v3524_v37  ;;  %v4164_v63 = vld [vmem:[%s6159_s1 + $0xc0] sm:$0xff]  ;;  %v3515_v0 = vld [vmem:[%s3966_s21 + $0x98] sm:$0xff]  ;;  %v4172_v2 = vld [vmem:[%s6159_s1 + $0xc8] sm:$0xff] }
  0x1e   : > { %308 = vmatpush.msra.mxu0 %v295_v6  ;;  %v3514_v3 = vld [vmem:[%s3966_s21 + $0x90] sm:$0xff]  ;;  %v3513_v6 = vld [vmem:[%s3966_s21 + $0x88] sm:$0xff]  ;;  %v4229_v37 = vld [vmem:[%s6159_s1 + $0xf8] sm:$0xff] }
  0x1f   : > { %1141 = vmatpush.msrb.mxu2 %v3523_v40  ;;  %v4180_v5 = vld [vmem:[%s6159_s1 + $0xd0] sm:$0xff]  ;;  %v4236_v40 = vld [vmem:[%s6159_s1 + $0x100] sm:$0xff] }
  0x20   : > { %309 = vmatpush.msra.mxu0 %v294_v7  ;;  %v4222_v33 = vld [vmem:[%s6159_s1 + $0xf0] sm:$0xff] }
  0x21   : > { %1142 = vmatpush.msrb.mxu2 %v3522_v43 }
  0x22   : > { %310 = vmatpush.msra.mxu0 %v293_v8  ;;  %v4188_v8 = vld [vmem:[%s6159_s1 + $0xd8] sm:$0xff] }
  0x23   : > { %1143 = vmatpush.msrb.mxu2 %v3521_v46 }
  0x24   : > { %311 = vmatpush.msra.mxu0 %v292_v9  ;;  %v3512_v9 = vld [vmem:[%s3966_s21 + $0x80] sm:$0xff] }
  0x25   : > { %1144 = vmatpush.msrb.mxu2 %v3520_v49 }
  0x26   : > { %312 = vmatpush.msra.mxu0 %v291_v10  ;;  %v4196_v10 = vld [vmem:[%s6160_s2 + $0x18] sm:$0xff] }
  0x27   : > { %1145 = vmatpush.msrb.mxu2 %v3519_v52  ;;  %579 = vmatpush.msra.mxu1 %v4196_v10 }
  0x28   : > { %313 = vmatpush.msra.mxu0 %v290_v11  ;;  %v4202_v11 = vld [vmem:[%s6160_s2 + $0x10] sm:$0xff] }
  0x29   : > { %1146 = vmatpush.msrb.mxu2 %v3518_v55  ;;  %580 = vmatpush.msra.mxu1 %v4202_v11 }
  0x2a   : > { %314 = vmatpush.msra.mxu0 %v289_v12 }
  0x2b   : > { %1147 = vmatpush.msrb.mxu2 %v3517_v58 }
  0x2c   : > { %315 = vmatpush.msra.mxu0 %v288_v13  ;;  %v4207_v13 = vld [vmem:[%s6159_s1 + $0xe0] sm:$0xff] }
  0x2d   : > { %1148 = vmatpush.msrb.mxu2 %v3516_v61 }
  0x2e   : > { %316 = vmatpush.msra.mxu0 %v287_v14 }
  0x2f   : > { %1149 = vmatpush.msrb.mxu2 %v3515_v0 }
  0x30   : > { %317 = vmatpush.msra.mxu0 %v286_v15  ;;  %v4215_v15 = vld [vmem:[%s6159_s1 + $0xe8] sm:$0xff] }
  0x31   : > { %318 = vmatmul.f32.vlgmr.msra.gmra.mxu0 %v3987_v16  ;;  %1150 = vmatpush.msrb.mxu2 %v3514_v3 }
  0x32   : > { %2276 = vmatpush.msrb.mxu0 %v4059_v28 }
  0x33   : > { %1151 = vmatpush.msrb.mxu2 %v3513_v6 }
  0x35   : > { %1152 = vmatpush.msrb.mxu2 %v3512_v9 }
  0x39   : > { %321 = vmatmul.f32.gmra.mxu0 %v3993_v17 }
  0x41   : > { %324 = vmatmul.f32.gmra.mxu0 %v3999_v18 }
  0x49   : > { %327 = vmatmul.f32.gmra.mxu0 %v4005_v19 }
  0x51   : > { %330 = vmatmul.f32.gmra.mxu0 %v4011_v20 }
  0x59   : > { %333 = vmatmul.f32.gmra.mxu0 %v4017_v21 }
  0x61   : > { %336 = vmatmul.f32.gmra.mxu0 %v4023_v22 }
  0x69   : > { %339 = vmatmul.f32.gmra.mxu0 %v4029_v23 }
  0x71   : > { %342 = vmatmul.f32.gmra.mxu0 %v4035_v24 }
  0x79   : > { %345 = vmatmul.f32.gmra.mxu0 %v4041_v25 }
  0x81   : > { %348 = vmatmul.f32.gmra.mxu0 %v4047_v26 }
  0x89   : > { %351 = vmatmul.f32.gmra.mxu0 %v4053_v27 }
  0x91   : > { %354 = vmatmul.f32.gmra.mxu0 %v4071_v30 }
  0x99   : > { %357 = vmatmul.f32.gmra.mxu0 %v4079_v32 }
  0xa1   : > { %360 = vmatmul.f32.gmra.mxu0 %v4086_v34 }
  0xa9   : > { %363 = vmatmul.f32.gmra.mxu0 %v4093_v36 }
  0xae   : > { %v319_v38 = vpop.f32.mrf.mxu0 }
  0xaf   : > { %3460 = vmatmul.msk.f32.vlgmr.msra.gmra.mxu2 %vm516_vm0, %v319_v38 }
  0xb1   : > { %366 = vmatmul.f32.gmra.mxu0 %v4100_v39 }
  0xb6   : > { %v322_v41 = vpop.f32.mrf.mxu0 }
  0xb7   : > { %3461 = vmatmul.msk.f32.gmra.mxu2 %vm516_vm0, %v322_v41 }
  0xb9   : > { %369 = vmatmul.f32.gmra.mxu0 %v4108_v42 }
  0xbe   : > { %v325_v44 = vpop.f32.mrf.mxu0 }
  0xbf   : > { %3462 = vmatmul.msk.f32.gmra.mxu2 %vm516_vm0, %v325_v44  ;;  %v4246_v44 = vld [vmem:[%s6159_s1 + $0x108] sm:$0xff] }
  0xc1   : > { %372 = vmatmul.f32.gmra.mxu0 %v4116_v45 }
  0xc6   : > { %v328_v47 = vpop.f32.mrf.mxu0 }
  0xc7   : > { %3463 = vmatmul.msk.f32.gmra.mxu2 %vm516_vm0, %v328_v47 }
  0xc9   : > { %375 = vmatmul.f32.gmra.mxu0 %v4124_v48 }
  0xce   : > { %v331_v50 = vpop.f32.mrf.mxu0 }
  0xcf   : > { %3464 = vmatmul.msk.f32.gmra.mxu2 %vm516_vm0, %v331_v50 }
  0xd1   : > { %378 = vmatmul.f32.gmra.mxu0 %v4132_v51 }
  0xd6   : > { %v334_v53 = vpop.f32.mrf.mxu0 }
  0xd7   : > { %3465 = vmatmul.msk.f32.gmra.mxu2 %vm516_vm0, %v334_v53 }
  0xd9   : > { %381 = vmatmul.f32.gmra.mxu0 %v4140_v54 }
  0xde   : > { %v337_v56 = vpop.f32.mrf.mxu0 }
  0xdf   : > { %3466 = vmatmul.msk.f32.gmra.mxu2 %vm516_vm0, %v337_v56 }
  0xe1   : > { %384 = vmatmul.f32.gmra.mxu0 %v4148_v57 }
  0xe6   : > { %v340_v59 = vpop.f32.mrf.mxu0 }
  0xe7   : > { %3467 = vmatmul.msk.f32.gmra.mxu2 %vm516_vm0, %v340_v59 }
  0xe9   : > { %387 = vmatmul.f32.gmra.mxu0 %v4156_v60 }
  0xee   : > { %v343_v62 = vpop.f32.mrf.mxu0 }
  0xef   : > { %3468 = vmatmul.msk.f32.gmra.mxu2 %vm516_vm0, %v343_v62 }
  0xf1   : > { %390 = vmatmul.f32.gmra.mxu0 %v4164_v63 }
  0xf6   : > { %v346_v1 = vpop.f32.mrf.mxu0 }
  0xf7   : > { %3469 = vmatmul.msk.f32.gmra.mxu2 %vm516_vm0, %v346_v1 }
  0xf9   : > { %393 = vmatmul.f32.gmra.mxu0 %v4172_v2 }
  0xfe   : > { %v349_v4 = vpop.f32.mrf.mxu0 }
  0xff   : > { %3470 = vmatmul.msk.f32.gmra.mxu2 %vm516_vm0, %v349_v4 }
 0x101   : > { %396 = vmatmul.f32.gmra.mxu0 %v4180_v5 }
 0x106   : > { %v352_v7 = vpop.f32.mrf.mxu0 }
 0x107   : > { %3471 = vmatmul.msk.f32.gmra.mxu2 %vm516_vm0, %v352_v7 }
 0x109   : > { %399 = vmatmul.f32.gmra.mxu0 %v4188_v8 }
 0x10e   : > { %v355_v12 = vpop.f32.mrf.mxu0 }
 0x10f   : > { %3472 = vmatmul.msk.f32.gmra.mxu2 %vm516_vm0, %v355_v12 }
 0x111   : > { %402 = vmatmul.f32.gmra.mxu0 %v4207_v13 }
 0x116   : > { %v358_v14 = vpop.f32.mrf.mxu0 }
 0x117   : > { %3473 = vmatmul.msk.f32.gmra.mxu2 %vm516_vm0, %v358_v14 }
 0x119   : > { %405 = vmatmul.f32.gmra.mxu0 %v4215_v15 }
 0x11e   : > { %v361_v31 = vpop.f32.mrf.mxu0 }
 0x11f   : > { %3474 = vmatmul.msk.f32.gmra.mxu2 %vm516_vm0, %v361_v31  ;;  %v3476_v31 = vld [vmem:[%s6160_s2 + $0x20] sm:$0xff] }
 0x121   : > { %408 = vmatmul.f32.gmra.mxu0 %v4222_v33 }
 0x126   : > { %v364_v35 = vpop.f32.mrf.mxu0 }
 0x127   : > { %3475 = vmatmul.msk.f32.gmra.mxu2 %vm516_vm0, %v364_v35 }
 0x129   : > { %411 = vmatmul.f32.gmra.mxu0 %v4229_v37 }
 0x12e   : > { %v367_v38 = vpop.f32.mrf.mxu0 }
 0x12f   : > { %3444 = vmatmul.msk.f32.vlgmr.msra.gmra.mxu1 %vm516_vm0, %v367_v38  ;;  %1153 = vmatmul.f32.vlgmr.msrb.gmra.mxu2 %v3987_v16  ;;  %v4256_v16 = vld [vmem:[%s6159_s1 + $0x110] sm:$0xff]  ;;  %v4362_v38 = vld [vmem:[%s6159_s1 + $0x160] sm:$0xff] }
 0x131   : > { %414 = vmatmul.f32.gmra.mxu0 %v4236_v40 }
 0x132   : > { %v4241_v41 = vpop.f32.mrf.mxu2 }
 0x136   : > { %v370_v43 = vpop.f32.mrf.mxu0 }
 0x137   : > { %3445 = vmatmul.msk.f32.gmra.mxu1 %vm516_vm0, %v370_v43  ;;  %1156 = vmatmul.f32.gmra.mxu2 %v3993_v17  ;;  %v4266_v17 = vld [vmem:[%s6159_s1 + $0x118] sm:$0xff] }
 0x139   : > { %417 = vmatmul.f32.gmra.mxu0 %v4246_v44 }
 0x13a   : > { %v4251_v46 = vpop.f32.mrf.mxu2 }
 0x13e   : > { %v373_v47 = vpop.f32.mrf.mxu0 }
 0x13f   : > { %3446 = vmatmul.msk.f32.gmra.mxu1 %vm516_vm0, %v373_v47  ;;  %1159 = vmatmul.f32.gmra.mxu2 %v3999_v18  ;;  %v4276_v18 = vld [vmem:[%s6159_s1 + $0x120] sm:$0xff]  ;;  %v4374_v47 = vld [vmem:[%s6159_s1 + $0x168] sm:$0xff] }
 0x141   : > { %420 = vmatmul.f32.gmra.mxu0 %v4256_v16 }
 0x142   : > { %v4261_v49 = vpop.f32.mrf.mxu2 }
 0x146   : > { %v376_v50 = vpop.f32.mrf.mxu0 }
 0x147   : > { %3447 = vmatmul.msk.f32.gmra.mxu1 %vm516_vm0, %v376_v50  ;;  %1162 = vmatmul.f32.gmra.mxu2 %v4005_v19  ;;  %v4286_v19 = vld [vmem:[%s6159_s1 + $0x128] sm:$0xff]  ;;  %v4384_v50 = vld [vmem:[%s6159_s1 + $0x170] sm:$0xff] }
 0x149   : > { %423 = vmatmul.f32.gmra.mxu0 %v4266_v17 }
 0x14a   : > { %v4271_v52 = vpop.f32.mrf.mxu2 }
 0x14e   : > { %v379_v53 = vpop.f32.mrf.mxu0 }
 0x14f   : > { %3448 = vmatmul.msk.f32.gmra.mxu1 %vm516_vm0, %v379_v53  ;;  %1165 = vmatmul.f32.gmra.mxu2 %v4011_v20  ;;  %v4296_v20 = vld [vmem:[%s6159_s1 + $0x130] sm:$0xff] }
 0x151   : > { %426 = vmatmul.f32.gmra.mxu0 %v4276_v18 }
 0x152   : > { %v4281_v55 = vpop.f32.mrf.mxu2 }
 0x156   : > { %v382_v56 = vpop.f32.mrf.mxu0 }
 0x157   : > { %3449 = vmatmul.msk.f32.gmra.mxu1 %vm516_vm0, %v382_v56  ;;  %1168 = vmatmul.f32.gmra.mxu2 %v4017_v21  ;;  %v4306_v21 = vld [vmem:[%s6159_s1 + $0x138] sm:$0xff] }
 0x159   : > { %429 = vmatmul.f32.gmra.mxu0 %v4286_v19 }
 0x15a   : > { %v4291_v58 = vpop.f32.mrf.mxu2 }
 0x15e   : > { %v385_v59 = vpop.f32.mrf.mxu0 }
 0x15f   : > { %3450 = vmatmul.msk.f32.gmra.mxu1 %vm516_vm0, %v385_v59  ;;  %1171 = vmatmul.f32.gmra.mxu2 %v4023_v22  ;;  %v4316_v22 = vld [vmem:[%s6159_s1 + $0x140] sm:$0xff] }
 0x161   : > { %432 = vmatmul.f32.gmra.mxu0 %v4296_v20 }
 0x162   : > { %v4301_v61 = vpop.f32.mrf.mxu2 }
 0x166   : > { %v388_v62 = vpop.f32.mrf.mxu0 }
 0x167   : > { %3451 = vmatmul.msk.f32.gmra.mxu1 %vm516_vm0, %v388_v62  ;;  %1174 = vmatmul.f32.gmra.mxu2 %v4029_v23  ;;  %v4326_v23 = vld [vmem:[%s6159_s1 + $0x148] sm:$0xff] }
 0x169   : > { %435 = vmatmul.f32.gmra.mxu0 %v4306_v21 }
 0x16a   : > { %v4311_v0 = vpop.f32.mrf.mxu2 }
 0x16e   : > { %v391_v1 = vpop.f32.mrf.mxu0 }
 0x16f   : > { %3452 = vmatmul.msk.f32.gmra.mxu1 %vm516_vm0, %v391_v1  ;;  %1177 = vmatmul.f32.gmra.mxu2 %v4035_v24  ;;  %v4336_v24 = vld [vmem:[%s6159_s1 + $0x150] sm:$0xff] }
 0x171   : > { %438 = vmatmul.f32.gmra.mxu0 %v4316_v22 }
 0x172   : > { %v4321_v3 = vpop.f32.mrf.mxu2 }
 0x176   : > { %v394_v4 = vpop.f32.mrf.mxu0 }
 0x177   : > { %3453 = vmatmul.msk.f32.gmra.mxu1 %vm516_vm0, %v394_v4  ;;  %1180 = vmatmul.f32.gmra.mxu2 %v4041_v25  ;;  %v4346_v25 = vld [vmem:[%s6159_s1 + $0x158] sm:$0xff] }
 0x179   : > { %441 = vmatmul.f32.gmra.mxu0 %v4326_v23 }
 0x17a   : > { %v4331_v6 = vpop.f32.mrf.mxu2 }
 0x17e   : > { %v397_v7 = vpop.f32.mrf.mxu0 }
 0x17f   : > { %3454 = vmatmul.msk.f32.gmra.mxu1 %vm516_vm0, %v397_v7  ;;  %1183 = vmatmul.f32.gmra.mxu2 %v4047_v26  ;;  %v3477_v26 = vld [vmem:[%s6160_s2 + $0x28] sm:$0xff]  ;;  %v4424_v7 = vld [vmem:[%s6159_s1 + $0x190] sm:$0xff] }
 0x180   : > { %808 = vmatpush.msrb.mxu1 %v3477_v26  ;;  %3822 = vmatpush.msra.mxu3 %v3477_v26 }
 0x181   : > { %444 = vmatmul.f32.gmra.mxu0 %v4336_v24 }
 0x182   : > { %v4341_v9 = vpop.f32.mrf.mxu2  ;;  %809 = vmatpush.msrb.mxu1 %v3476_v31  ;;  %3823 = vmatpush.msra.mxu3 %v3476_v31 }
 0x184   : > { %1412 = vmatpush.msrb.mxu3 %v4196_v10 }
 0x186   : > { %v400_v12 = vpop.f32.mrf.mxu0  ;;  %1413 = vmatpush.msrb.mxu3 %v4202_v11 }
 0x187   : > { %3455 = vmatmul.msk.f32.gmra.mxu1 %vm516_vm0, %v400_v12  ;;  %1186 = vmatmul.f32.gmra.mxu2 %v4053_v27 }
 0x189   : > { %447 = vmatmul.f32.gmra.mxu0 %v4346_v25 }
 0x18a   : > { %v4351_v14 = vpop.f32.mrf.mxu2 }
 0x18b   : > { %6207 = vst [vmem:[#allocation2_spill] sm:$0xff] %v4351_v14 }
 0x18e   : > { %v403_v35 = vpop.f32.mrf.mxu0 }
 0x18f   : > { %3456 = vmatmul.msk.f32.gmra.mxu1 %vm516_vm0, %v403_v35  ;;  %1189 = vmatmul.f32.gmra.mxu2 %v4071_v30 }
 0x191   : > { %450 = vmatmul.f32.gmra.mxu0 %v4362_v38 }
 0x192   : > { %v4368_v27 = vpop.f32.mrf.mxu2 }
 0x193   : > { %6208 = vst [vmem:[#allocation3_spill] sm:$0xff] %v4368_v27  ;;  %v3494_v27 = vld [vmem:[%s6160_s2 + $0x30] sm:$0xff] }
 0x196   : > { %v406_v43 = vpop.f32.mrf.mxu0 }
 0x197   : > { %3457 = vmatmul.msk.f32.gmra.mxu1 %vm516_vm0, %v406_v43  ;;  %1192 = vmatmul.f32.gmra.mxu2 %v4079_v32  ;;  %v4394_v32 = vld [vmem:[%s6159_s1 + $0x178] sm:$0xff] }
 0x199   : > { %453 = vmatmul.f32.gmra.mxu0 %v4374_v47 }
 0x19a   : > { %v4379_v30 = vpop.f32.mrf.mxu2 }
 0x19b   : > { %6209 = vst [vmem:[#allocation4_spill] sm:$0xff] %v4379_v30 }
 0x19e   : > { %v409_v10 = vpop.f32.mrf.mxu0 }
 0x19f   : > { %3458 = vmatmul.msk.f32.gmra.mxu1 %vm516_vm0, %v409_v10  ;;  %1195 = vmatmul.f32.gmra.mxu2 %v4086_v34  ;;  %v4404_v34 = vld [vmem:[%s6159_s1 + $0x180] sm:$0xff] }
 0x1a1   : > { %456 = vmatmul.f32.gmra.mxu0 %v4384_v50 }
 0x1a2   : > { %v4389_v11 = vpop.f32.mrf.mxu2 }
 0x1a3   : > { %6210 = vst [vmem:[#allocation5_spill] sm:$0xff] %v4389_v11  ;;  %v4516_v11 = vld [vmem:[%s6159_s1 + $0x1d8] sm:$0xff] }
 0x1a4   : > { %6214 = vst [vmem:[#allocation9_spill] sm:$0xff] %v4516_v11 }
 0x1a6   : > { %v412_v53 = vpop.f32.mrf.mxu0 }
 0x1a7   : > { %3459 = vmatmul.msk.f32.gmra.mxu1 %vm516_vm0, %v412_v53  ;;  %1198 = vmatmul.f32.gmra.mxu2 %v4093_v36  ;;  %v4414_v36 = vld [vmem:[%s6159_s1 + $0x188] sm:$0xff] }
 0x1a9   : > { %459 = vmatmul.f32.gmra.mxu0 %v4394_v32 }
 0x1aa   : > { %v4399_v56 = vpop.f32.mrf.mxu2 }
 0x1ab   : > { %6211 = vst [vmem:[#allocation6_spill] sm:$0xff] %v4399_v56 }
 0x1ae   : > { %v415_v59 = vpop.f32.mrf.mxu0 }
 0x1af   : > { %3478 = vmatmul.msk.f32.vlgmr.msrb.gmra.mxu1 %vm516_vm0, %v415_v59  ;;  %1201 = vmatmul.f32.gmra.mxu2 %v4100_v39 }
 0x1b1   : > { %462 = vmatmul.f32.gmra.mxu0 %v4404_v34 }
 0x1b2   : > { %v4409_v62 = vpop.f32.mrf.mxu2 }
 0x1b6   : > { %v418_v1 = vpop.f32.mrf.mxu0 }
 0x1b7   : > { %3479 = vmatmul.msk.f32.vlgmr.msra.gmra.mxu3 %vm516_vm0, %v418_v1  ;;  %1204 = vmatmul.f32.gmra.mxu2 %v4108_v42 }
 0x1b8   : > { %1640 = vmatpush.msra.mxu3 %v3477_v26  ;;  %v4434_v26 = vld [vmem:[%s6159_s1 + $0x198] sm:$0xff] }
 0x1b9   : > { %465 = vmatmul.f32.gmra.mxu0 %v4414_v36 }
 0x1ba   : > { %v4419_v4 = vpop.f32.mrf.mxu2  ;;  %1641 = vmatpush.msra.mxu3 %v3476_v31 }
 0x1be   : > { %v421_v39 = vpop.f32.mrf.mxu0 }
 0x1bf   : > { %3480 = vmatmul.msk.f32.gmra.mxu3 %vm516_vm0, %v421_v39  ;;  %1207 = vmatmul.f32.gmra.mxu2 %v4116_v45  ;;  %v4444_v45 = vld [vmem:[%s6159_s1 + $0x1a0] sm:$0xff] }
 0x1c1   : > { %468 = vmatmul.f32.gmra.mxu0 %v4424_v7 }
 0x1c2   : > { %v4429_v12 = vpop.f32.mrf.mxu2 }
 0x1c6   : > { %v424_v42 = vpop.f32.mrf.mxu0 }
 0x1c7   : > { %3481 = vmatmul.msk.f32.gmra.mxu3 %vm516_vm0, %v424_v42  ;;  %1210 = vmatmul.f32.gmra.mxu2 %v4124_v48  ;;  %v4454_v48 = vld [vmem:[%s6159_s1 + $0x1a8] sm:$0xff] }
 0x1c9   : > { %471 = vmatmul.f32.gmra.mxu0 %v4434_v26 }
 0x1ca   : > { %v4439_v31 = vpop.f32.mrf.mxu2 }
 0x1ce   : > { %v427_v35 = vpop.f32.mrf.mxu0 }
 0x1cf   : > { %3482 = vmatmul.msk.f32.gmra.mxu3 %vm516_vm0, %v427_v35  ;;  %1213 = vmatmul.f32.gmra.mxu2 %v4132_v51  ;;  %v4464_v51 = vld [vmem:[%s6159_s1 + $0x1b0] sm:$0xff] }
 0x1d1   : > { %474 = vmatmul.f32.gmra.mxu0 %v4444_v45 }
 0x1d2   : > { %v4449_v43 = vpop.f32.mrf.mxu2 }
 0x1d6   : > { %v430_v10 = vpop.f32.mrf.mxu0 }
 0x1d7   : > { %3483 = vmatmul.msk.f32.gmra.mxu3 %vm516_vm0, %v430_v10  ;;  %1216 = vmatmul.f32.gmra.mxu2 %v4140_v54  ;;  %v4474_v54 = vld [vmem:[%s6159_s1 + $0x1b8] sm:$0xff] }
 0x1d9   : > { %477 = vmatmul.f32.gmra.mxu0 %v4454_v48 }
 0x1da   : > { %v4459_v53 = vpop.f32.mrf.mxu2 }
 0x1de   : > { %v433_v59 = vpop.f32.mrf.mxu0 }
 0x1df   : > { %3484 = vmatmul.msk.f32.gmra.mxu3 %vm516_vm0, %v433_v59  ;;  %1219 = vmatmul.f32.gmra.mxu2 %v4148_v57  ;;  %v4484_v57 = vld [vmem:[%s6159_s1 + $0x1c0] sm:$0xff] }
 0x1e1   : > { %480 = vmatmul.f32.gmra.mxu0 %v4464_v51 }
 0x1e2   : > { %v4469_v1 = vpop.f32.mrf.mxu2 }
 0x1e6   : > { %v436_v39 = vpop.f32.mrf.mxu0 }
 0x1e7   : > { %3485 = vmatmul.msk.f32.gmra.mxu3 %vm516_vm0, %v436_v39  ;;  %1222 = vmatmul.f32.gmra.mxu2 %v4156_v60  ;;  %v4494_v60 = vld [vmem:[%s6159_s1 + $0x1c8] sm:$0xff] }
 0x1e9   : > { %483 = vmatmul.f32.gmra.mxu0 %v4474_v54 }
 0x1ea   : > { %v4479_v42 = vpop.f32.mrf.mxu2 }
 0x1ee   : > { %v439_v35 = vpop.f32.mrf.mxu0 }
 0x1ef   : > { %3486 = vmatmul.msk.f32.gmra.mxu3 %vm516_vm0, %v439_v35  ;;  %1225 = vmatmul.f32.gmra.mxu2 %v4164_v63  ;;  %v4504_v63 = vld [vmem:[%s6159_s1 + $0x1d0] sm:$0xff] }
 0x1f0   : > { %6212 = vst [vmem:[#allocation7_spill] sm:$0xff] %v4504_v63 }
 0x1f1   : > { %486 = vmatmul.f32.gmra.mxu0 %v4484_v57 }
 0x1f2   : > { %v4489_v10 = vpop.f32.mrf.mxu2 }
 0x1f6   : > { %v442_v59 = vpop.f32.mrf.mxu0 }
 0x1f7   : > { %3487 = vmatmul.msk.f32.gmra.mxu3 %vm516_vm0, %v442_v59  ;;  %1228 = vmatmul.f32.gmra.mxu2 %v4172_v2  ;;  %v4511_v59 = vpop.f32.mrf.mxu1 }
 0x1f9   : > { %489 = vmatmul.f32.gmra.mxu0 %v4494_v60 }
 0x1fa   : > { %v4499_v39 = vpop.f32.mrf.mxu2 }
 0x1fe   : > { %v445_v35 = vpop.f32.mrf.mxu0 }
 0x1ff   : > { %3488 = vmatmul.msk.f32.gmra.mxu3 %vm516_vm0, %v445_v35  ;;  %1231 = vmatmul.f32.gmra.mxu2 %v4180_v5  ;;  %v3495_v5 = vld [vmem:[%s6160_s2 + $0x38] sm:$0xff]  ;;  %v4526_v30 = vpop.f32.mrf.mxu1 }
 0x200   : > { %940 = vmatpush.msra.mxu1 %v3495_v5  ;;  %2522 = vmatpush.msra.mxu2 %v3495_v5 }
 0x201   : > { %492 = vmatmul.f32.gmra.mxu0 %v4504_v63 }
 0x202   : > { %v4509_v56 = vpop.f32.mrf.mxu2  ;;  %941 = vmatpush.msra.mxu1 %v3494_v27 }
 0x203   : > { %6213 = vst [vmem:[#allocation8_spill] sm:$0xff] %v4509_v56 }
 0x204   : > { %1525 = vmatpush.msrb.mxu1 %v4059_v28 }
 0x206   : > { %v448_v2 = vpop.f32.mrf.mxu0  ;;  %1526 = vmatpush.msrb.mxu1 %v4066_v29  ;;  %v270_v29 = vld [vmem:[%s6161_s3] sm:$0xff] }
 0x207   : > { %3489 = vmatmul.msk.f32.gmra.mxu3 %vm516_vm0, %v448_v2  ;;  %1234 = vmatmul.f32.gmra.mxu2 %v4188_v8  ;;  %v4534_v8 = vld [vmem:[%s6159_s1 + $0x1e0] sm:$0xff]  ;;  %v4548_v56 = vpop.f32.mrf.mxu1 }
 0x208   : > { %6216 = vst [vmem:[#allocation11_spill] sm:$0xff] %v4534_v8 }
 0x209   : > { %495 = vmatmul.f32.gmra.mxu0 %v4516_v11  ;;  %v4546_v11 = vld [vmem:[%s6159_s1 + $0x1e8] sm:$0xff] }
 0x20a   : > { %v4521_v35 = vpop.f32.mrf.mxu2  ;;  %6218 = vst [vmem:[#allocation13_spill] sm:$0xff] %v4546_v11 }
 0x20b   : > { %6215 = vst [vmem:[#allocation10_spill] sm:$0xff] %v4521_v35 }
 0x20e   : > { %v451_v14 = vpop.f32.mrf.mxu0 }
 0x20f   : > { %3490 = vmatmul.msk.f32.gmra.mxu3 %vm516_vm0, %v451_v14  ;;  %1237 = vmatmul.f32.gmra.mxu2 %v4207_v13  ;;  %v3924_v13 = vmov 0  }
 0x210   : > { %3849 = vset.pattern.permute.xlu0 %v3924_v13  ;;  %3850 = vset.pattern.permute.xlu1 %v3924_v13 }
 0x211   : > { %498 = vmatmul.f32.gmra.mxu0 %v4534_v8  ;;  %1009 = vperm.xlu0 %3849, %v270_v29  }
 0x212   : > { %v4540_v2 = vpop.f32.mrf.mxu2  ;;  %3851 = vset.pattern.permute.xlu2 %v3924_v13  ;;  %v271_v13 = vld [vmem:[%s6161_s3 + $0x8] sm:$0xff] }
 0x213   : > { %6217 = vst [vmem:[#allocation12_spill] sm:$0xff] %v4540_v2 }
 0x216   : > { %v454_v35 = vpop.f32.mrf.mxu0 }
 0x217   : > { %3491 = vmatmul.msk.f32.gmra.mxu3 %vm516_vm0, %v454_v35  ;;  %1240 = vmatmul.f32.gmra.mxu2 %v4215_v15  ;;  %v4561_v35 = vld [vmem:[%s6159_s1 + $0x1f0] sm:$0xff]  ;;  %v4565_v15 = vpop.f32.mrf.mxu1 }
 0x218   : > { %6220 = vst [vmem:[#allocation15_spill] sm:$0xff] %v4561_v35 }
 0x219   : > { %501 = vmatmul.f32.gmra.mxu0 %v4546_v11  ;;  %1014 = vperm.xlu0 %3849, %v271_v13   ;;  %v4576_v11 = vld [vmem:[%s6159_s1 + $0x1f8] sm:$0xff]  ;;  %v272_v13 = vld [vmem:[%s6161_s3 + $0x10] sm:$0xff] }
 0x21a   : > { %v4553_v28 = vpop.f32.mrf.mxu2  ;;  %6222 = vst [vmem:[#allocation17_spill] sm:$0xff] %v4576_v11  ;;  %1019 = vperm.xlu1 %3850, %v272_v13  }
 0x21b   : > { %6219 = vst [vmem:[#allocation14_spill] sm:$0xff] %v4553_v28 }
 0x21e   : > { %v457_v14 = vpop.f32.mrf.mxu0 }
 0x21f   : > { %3492 = vmatmul.msk.f32.gmra.mxu3 %vm516_vm0, %v457_v14  ;;  %1243 = vmatmul.f32.gmra.mxu2 %v4222_v33  ;;  %v4583_v14 = vpop.f32.mrf.mxu1 }
 0x221   : > { %504 = vmatmul.f32.gmra.mxu0 %v4561_v35 }
 0x222   : > { %v4568_v28 = vpop.f32.mrf.mxu2 }
 0x223   : > { %6221 = vst [vmem:[#allocation16_spill] sm:$0xff] %v4568_v28 }
 0x226   : > { %v460_v29 = vpop.f32.mrf.mxu0 }
 0x227   : > { %3493 = vmatmul.msk.f32.gmra.mxu3 %vm516_vm0, %v460_v29  ;;  %1246 = vmatmul.f32.gmra.mxu2 %v4229_v37  ;;  %v273_v37 = vld [vmem:[%s6161_s3 + $0x18] sm:$0xff] }
 0x228   : > { %1024 = vperm.xlu1 %3850, %v273_v37  }
 0x229   : > { %507 = vmatmul.f32.gmra.mxu0 %v4576_v11 }
 0x22a   : > { %v4581_v33 = vpop.f32.mrf.mxu2 }
 0x22b   : > { %6223 = vst [vmem:[#allocation18_spill] sm:$0xff] %v4581_v33  ;;  %v4594_v33 = vpop.f32.mrf.mxu1 }
 0x22e   : > { %v463_v28 = vpop.f32.mrf.mxu0 }
 0x22f   : > { %3496 = vmatmul.msk.f32.vlgmr.msra.gmra.mxu1 %vm516_vm0, %v463_v28  ;;  %1249 = vmatmul.f32.gmra.mxu2 %v4236_v40 }
 0x230   : > { %1771 = vmatpush.msra.mxu1 %v3495_v5 }
 0x232   : > { %v1202_v29 = vpop.f32.mrf.mxu2  ;;  %1772 = vmatpush.msra.mxu1 %v3494_v27 }
 0x233   : > { %3530 = vmatmul.msk.f32.vlgmr.msrb.gmra.mxu3 %vm516_vm0, %v1202_v29  ;;  %v4601_v5 = vpop.f32.mrf.mxu1 }
 0x236   : > { %v466_v11 = vpop.f32.mrf.mxu0 }
 0x237   : > { %3497 = vmatmul.msk.f32.gmra.mxu1 %vm516_vm0, %v466_v11  ;;  %1252 = vmatmul.f32.gmra.mxu2 %v4246_v44 }
 0x23a   : > { %v4598_v28 = vpop.f32.mrf.mxu3  ;;  %v1205_v40 = vpop.f32.mrf.mxu2 }
 0x23b   : > { %3531 = vmatmul.msk.f32.gmra.mxu3 %vm516_vm0, %v1205_v40  ;;  %v4610_v44 = vpop.f32.mrf.mxu1 }
 0x23e   : > { %v469_v27 = vpop.f32.mrf.mxu0 }
 0x23f   : > { %3498 = vmatmul.msk.f32.gmra.mxu1 %vm516_vm0, %v469_v27  ;;  %1255 = vmatmul.f32.gmra.mxu2 %v4256_v16  ;;  %v276_v16 = vld [vmem:[%s6161_s3 + $0x30] sm:$0xff] }
 0x240   : > { %1039 = vperm.xlu0 %3849, %v276_v16   ;;  %v277_v16 = vld [vmem:[%s6161_s3 + $0x38] sm:$0xff] }
 0x241   : > { %1044 = vperm.xlu1 %3850, %v277_v16  }
 0x242   : > { %v4605_v13 = vpop.f32.mrf.mxu3  ;;  %v1208_v29 = vpop.f32.mrf.mxu2 }
 0x243   : > { %3532 = vmatmul.msk.f32.gmra.mxu3 %vm516_vm0, %v1208_v29 }
 0x246   : > { %v472_v11 = vpop.f32.mrf.mxu0 }
 0x247   : > { %3499 = vmatmul.msk.f32.gmra.mxu1 %vm516_vm0, %v472_v11  ;;  %1258 = vmatmul.f32.gmra.mxu2 %v4266_v17  ;;  %v4622_v11 = vpop.f32.mrf.mxu1 }
 0x24a   : > { %v4612_v37 = vpop.f32.mrf.mxu3  ;;  %v1211_v40 = vpop.f32.mrf.mxu2 }
 0x24b   : > { %3533 = vmatmul.msk.f32.gmra.mxu3 %vm516_vm0, %v1211_v40  ;;  %v274_v40 = vld [vmem:[%s6161_s3 + $0x20] sm:$0xff] }
 0x24c   : > { %1029 = vperm.xlu2 %3851, %v274_v40  }
 0x24e   : > { %v475_v27 = vpop.f32.mrf.mxu0 }
 0x24f   : > { %3500 = vmatmul.msk.f32.gmra.mxu1 %vm516_vm0, %v475_v27  ;;  %1261 = vmatmul.f32.gmra.mxu2 %v4276_v18  ;;  %v4639_v2 = vpop.f32.mrf.mxu1 }
 0x252   : > { %v4620_v29 = vpop.f32.mrf.mxu3  ;;  %v1214_v17 = vpop.f32.mrf.mxu2 }
 0x253   : > { %3534 = vmatmul.msk.f32.gmra.mxu3 %vm516_vm0, %v1214_v17  ;;  %v275_v17 = vld [vmem:[%s6161_s3 + $0x28] sm:$0xff] }
 0x254   : > { %1034 = vperm.xlu2 %3851, %v275_v17   ;;  %v280_v17 = vld [vmem:[%s6161_s3 + $0x50] sm:$0xff] }
 0x255   : > { %1059 = vperm.xlu1 %3850, %v280_v17  }
 0x256   : > { %v478_v27 = vpop.f32.mrf.mxu0 }
 0x257   : > { %3501 = vmatmul.msk.f32.gmra.mxu1 %vm516_vm0, %v478_v27  ;;  %1264 = vmatmul.f32.gmra.mxu2 %v4286_v19  ;;  %v4649_v27 = vpop.f32.mrf.mxu1 }
 0x25a   : > { %v4633_v18 = vpop.f32.mrf.mxu3  ;;  %v1217_v35 = vpop.f32.mrf.mxu2 }
 0x25b   : > { %3535 = vmatmul.msk.f32.gmra.mxu3 %vm516_vm0, %v1217_v35  ;;  %v279_v35 = vld [vmem:[%s6161_s3 + $0x48] sm:$0xff] }
 0x25c   : > { %1054 = vperm.xlu0 %3849, %v279_v35  }
 0x25e   : > { %v481_v8 = vpop.f32.mrf.mxu0 }
 0x25f   : > { %3502 = vmatmul.msk.f32.gmra.mxu1 %vm516_vm0, %v481_v8  ;;  %1267 = vmatmul.f32.gmra.mxu2 %v4296_v20  ;;  %v4661_v35 = vpop.f32.mrf.mxu1 }
 0x260   : > { %6224 = vst [vmem:[#allocation19_spill] sm:$0xff] %v4661_v35 }
 0x262   : > { %v4643_v40 = vpop.f32.mrf.mxu3  ;;  %v1220_v19 = vpop.f32.mrf.mxu2 }
 0x263   : > { %3536 = vmatmul.msk.f32.gmra.mxu3 %vm516_vm0, %v1220_v19 }
 0x266   : > { %v484_v16 = vpop.f32.mrf.mxu0 }
 0x267   : > { %3503 = vmatmul.msk.f32.gmra.mxu1 %vm516_vm0, %v484_v16  ;;  %1270 = vmatmul.f32.gmra.mxu2 %v4306_v21 }
 0x26a   : > { %v4653_v8 = vpop.f32.mrf.mxu3  ;;  %v1223_v20 = vpop.f32.mrf.mxu2 }
 0x26b   : > { %3537 = vmatmul.msk.f32.gmra.mxu3 %vm516_vm0, %v1223_v20  ;;  %v278_v20 = vld [vmem:[%s6161_s3 + $0x40] sm:$0xff] }
 0x26c   : > { %1049 = vperm.xlu2 %3851, %v278_v20   ;;  %v283_v20 = vld [vmem:[%s6161_s3 + $0x68] sm:$0xff] }
 0x26d   : > { %1074 = vperm.xlu1 %3850, %v283_v20  }
 0x26e   : > { %v487_v19 = vpop.f32.mrf.mxu0 }
 0x26f   : > { %3504 = vmatmul.msk.f32.gmra.mxu1 %vm516_vm0, %v487_v19  ;;  %1273 = vmatmul.f32.gmra.mxu2 %v4316_v22  ;;  %v4673_v19 = vpop.f32.mrf.mxu1 }
 0x270   : > { %6225 = vst [vmem:[#allocation20_spill] sm:$0xff] %v4673_v19 }
 0x272   : > { %v4663_v16 = vpop.f32.mrf.mxu3  ;;  %v1226_v21 = vpop.f32.mrf.mxu2 }
 0x273   : > { %3538 = vmatmul.msk.f32.gmra.mxu3 %vm516_vm0, %v1226_v21  ;;  %v282_v21 = vld [vmem:[%s6161_s3 + $0x60] sm:$0xff] }
 0x274   : > { %1069 = vperm.xlu0 %3849, %v282_v21   ;;  %v281_v21 = vld [vmem:[%s6161_s3 + $0x58] sm:$0xff] }
 0x275   : > { %1064 = vperm.xlu2 %3851, %v281_v21  }
 0x276   : > { %v490_v63 = vpop.f32.mrf.mxu0 }
 0x277   : > { %3505 = vmatmul.msk.f32.gmra.mxu1 %vm516_vm0, %v490_v63  ;;  %1276 = vmatmul.f32.gmra.mxu2 %v4326_v23 }
 0x27a   : > { %v4671_v17 = vpop.f32.mrf.mxu3  ;;  %v1229_v22 = vpop.f32.mrf.mxu2 }
 0x27b   : > { %3539 = vmatmul.msk.f32.gmra.mxu3 %vm516_vm0, %v1229_v22  ;;  %v4687_v22 = vpop.f32.mrf.mxu1 }
 0x27c   : > { %6226 = vst [vmem:[#allocation21_spill] sm:$0xff] %v4687_v22  ;;  %v3629_v22 = vld [vmem:[%s3966_s21 + $0x178] sm:$0xff] }
 0x27d   : > { %1888 = vmatpush.msrb.mxu3 %v3629_v22 }
 0x27e   : > { %v493_v35 = vpop.f32.mrf.mxu0 }
 0x27f   : > { %3506 = vmatmul.msk.f32.gmra.mxu1 %vm516_vm0, %v493_v35  ;;  %1279 = vmatmul.f32.gmra.mxu2 %v4336_v24 }
 0x282   : > { %v4681_v63 = vpop.f32.mrf.mxu3  ;;  %v1232_v23 = vpop.f32.mrf.mxu2 }
 0x283   : > { %3540 = vmatmul.msk.f32.gmra.mxu3 %vm516_vm0, %v1232_v23  ;;  %v4697_v20 = vpop.f32.mrf.mxu1 }
 0x284   : > { %6228 = vst [vmem:[#allocation23_spill] sm:$0xff] %v4697_v20 }
 0x286   : > { %v496_v19 = vpop.f32.mrf.mxu0 }
 0x287   : > { %3507 = vmatmul.msk.f32.gmra.mxu1 %vm516_vm0, %v496_v19  ;;  %1282 = vmatmul.f32.gmra.mxu2 %v4346_v25 }
 0x28a   : > { %v4691_v35 = vpop.f32.mrf.mxu3  ;;  %v1235_v24 = vpop.f32.mrf.mxu2 }
 0x28b   : > { %6227 = vst [vmem:[#allocation22_spill] sm:$0xff] %v4691_v35  ;;  %3541 = vmatmul.msk.f32.gmra.mxu3 %vm516_vm0, %v1235_v24  ;;  %v285_v24 = vld [vmem:[%s6161_s3 + $0x78] sm:$0xff] }
 0x28c   : > { %1084 = vperm.xlu0 %3849, %v285_v24   ;;  %v3627_v24 = vld [vmem:[%s3966_s21 + $0x168] sm:$0xff] }
 0x28e   : > { %v499_v23 = vpop.f32.mrf.mxu0 }
 0x28f   : > { %3508 = vmatmul.msk.f32.gmra.mxu1 %vm516_vm0, %v499_v23  ;;  %1285 = vmatmul.f32.gmra.mxu2 %v4362_v38  ;;  %v4710_v23 = vpop.f32.mrf.mxu1 }
 0x290   : > { %6230 = vst [vmem:[#allocation25_spill] sm:$0xff] %v4710_v23 }
 0x292   : > { %v4701_v19 = vpop.f32.mrf.mxu3  ;;  %v1238_v25 = vpop.f32.mrf.mxu2 }
 0x293   : > { %6229 = vst [vmem:[#allocation24_spill] sm:$0xff] %v4701_v19  ;;  %3542 = vmatmul.msk.f32.gmra.mxu3 %vm516_vm0, %v1238_v25  ;;  %v3628_v25 = vld [vmem:[%s3966_s21 + $0x170] sm:$0xff] }
 0x294   : > { %1889 = vmatpush.msrb.mxu3 %v3628_v25  ;;  %v4729_v25 = vpop.permute.xlu0 %1009 }
 0x296   : > { %v502_v21 = vpop.f32.mrf.mxu0  ;;  %1890 = vmatpush.msrb.mxu3 %v3627_v24 }
 0x297   : > { %3509 = vmatmul.msk.f32.gmra.mxu1 %vm516_vm0, %v502_v21  ;;  %1288 = vmatmul.f32.gmra.mxu2 %v4374_v47  ;;  %v284_v47 = vld [vmem:[%s6161_s3 + $0x70] sm:$0xff]  ;;  %v811_v21 = vpop.f32.mrf.mxu1 }
 0x298   : > { %1079 = vperm.xlu2 %3851, %v284_v47   ;;  %v3625_v47 = vld [vmem:[%s3966_s21 + $0x158] sm:$0xff] }
 0x29a   : > { %v4712_v38 = vpop.f32.mrf.mxu3  ;;  %v1241_v20 = vpop.f32.mrf.mxu2 }
 0x29b   : > { %6231 = vst [vmem:[#allocation26_spill] sm:$0xff] %v4712_v38  ;;  %3543 = vmatmul.msk.f32.gmra.mxu3 %vm516_vm0, %v1241_v20  ;;  %v3626_v38 = vld [vmem:[%s3966_s21 + $0x160] sm:$0xff] }
 0x29c   : > { %1891 = vmatpush.msrb.mxu3 %v3626_v38 }
 0x29e   : > { %v505_v19 = vpop.f32.mrf.mxu0  ;;  %1892 = vmatpush.msrb.mxu3 %v3625_v47 }
 0x29f   : > { %3510 = vmatmul.msk.f32.gmra.mxu1 %vm516_vm0, %v505_v19  ;;  %1291 = vmatmul.f32.gmra.mxu2 %v4384_v50  ;;  %v696_v50 = vadd.f32 %v4241_v41, %v4511_v59  ;;  %v699_v59 = vadd.f32 %v4251_v46, %v4526_v30  ;;  %v702_v46 = vadd.f32 %v4261_v49, %v4548_v56 }
 0x2a0   : > { %v705_v49 = vadd.f32 %v4271_v52, %v4565_v15  ;;  %v708_v52 = vadd.f32 %v4281_v55, %v4583_v14  ;;  %v711_v55 = vadd.f32 %v4291_v58, %v4594_v33  ;;  %v714_v58 = vadd.f32 %v4301_v61, %v4601_v5 }
 0x2a1   : > { %v860_v38 = vadd.f32 %v4598_v28, %v699_v59  ;;  %v4765_v28 = vpop.permute.xlu1 %1019  ;;  %v3623_v59 = vld [vmem:[%s3966_s21 + $0x148] sm:$0xff]  ;;  %v717_v61 = vadd.f32 %v4311_v0, %v4610_v44  ;;  %v720_v0 = vadd.f32 %v4321_v3, %v4622_v11  ;;  %v723_v3 = vadd.f32 %v4331_v6, %v4639_v2 }
 0x2a2   : > { %v1244_v22 = vpop.f32.mrf.mxu2  ;;  %v4723_v23 = vpop.f32.mrf.mxu3  ;;  %v726_v6 = vadd.f32 %v4341_v9, %v4649_v27  ;;  %v6239_v9 = vld [vmem:[#allocation8_spill] sm:$0xff]  ;;  %v6240_v27 = vld [vmem:[#allocation19_spill] sm:$0xff] }
 0x2a3   : > { %3544 = vmatmul.msk.f32.gmra.mxu3 %vm516_vm0, %v1244_v22  ;;  %v859_v22 = vadd.f32 %v811_v21, %v696_v50 }
 0x2a6   : > { %v508_v20 = vpop.f32.mrf.mxu0 }
 0x2a7   : > { %3511 = vmatmul.msk.f32.gmra.mxu1 %vm516_vm0, %v508_v20  ;;  %1294 = vmatmul.f32.gmra.mxu2 %v4394_v32  ;;  %v4753_v20 = vpop.permute.xlu0 %1014 }
 0x2aa   : > { %v1247_v19 = vpop.f32.mrf.mxu2  ;;  %v4740_v32 = vpop.f32.mrf.mxu3 }
 0x2ab   : > { %3545 = vmatmul.msk.f32.gmra.mxu3 %vm516_vm0, %v1247_v19  ;;  %v861_v19 = vadd.f32 %v4605_v13, %v702_v46  ;;  %v862_v13 = vadd.f32 %v4612_v37, %v705_v49  ;;  %v4795_v37 = vpop.permute.xlu2 %1029 }
 0x2ac   : > { %v943_v35 = vpop.f32.mrf.mxu1 }
 0x2ad   : > { %v991_v24 = vadd.f32 %v943_v35, %v859_v22  ;;  %v3624_v22 = vld [vmem:[%s3966_s21 + $0x150] sm:$0xff] }
 0x2ae   : > { %1893 = vmatpush.msrb.mxu3 %v3624_v22 }
 0x2af   : > { %v1087_v41 = vadd.f32 %v4729_v25, %v991_v24  ;;  %1297 = vmatmul.f32.gmra.mxu2 %v4404_v34  ;;  %3546 = vmatmul.msk.f32.vlgmr.msrb.gmra.mxu1 %vm516_vm0, %v4409_v62 }
 0x2b0   : > { %1894 = vmatpush.msrb.mxu3 %v3623_v59 }
 0x2b1   : > { %1104 = vst.msk [vmem:[%s4738_s24] sm:$0xff] %vm1103_vm1, %v1087_v41 }
 0x2b2   : > { %v1250_v35 = vpop.f32.mrf.mxu2  ;;  %v4828_v49 = vpop.permute.xlu0 %1039 }
 0x2b3   : > { %3564 = vmatmul.msk.f32.vlgmr.msra.gmra.mxu3 %vm516_vm0, %v1250_v35  ;;  %v4813_v22 = vpop.permute.xlu2 %1034  ;;  %6233 = vst [vmem:[#allocation28_spill] sm:$0xff] %v4828_v49 }
 0x2b4   : > { %v946_v21 = vpop.f32.mrf.mxu1  ;;  %6232 = vst [vmem:[#allocation27_spill] sm:$0xff] %v4813_v22 }
 0x2b5   : > { %v992_v34 = vadd.f32 %v946_v21, %v860_v38  ;;  %v4783_v38 = vpop.permute.xlu1 %1024  ;;  %v863_v21 = vadd.f32 %v4620_v29, %v708_v52  ;;  %v864_v29 = vadd.f32 %v4633_v18, %v711_v55  ;;  %v865_v18 = vadd.f32 %v4643_v40, %v714_v58  ;;  %v3616_v55 = vld [vmem:[%s3966_s21 + $0x110] sm:$0xff]  ;;  %v6242_v58 = vld [vmem:[#allocation22_spill] sm:$0xff] }
 0x2b6   : > { %v4755_v50 = vpop.f32.mrf.mxu3  ;;  %v866_v40 = vadd.f32 %v4653_v8, %v717_v61  ;;  %v867_v8 = vadd.f32 %v4663_v16, %v720_v0  ;;  %v868_v16 = vadd.f32 %v4671_v17, %v723_v3  ;;  %v869_v17 = vadd.f32 %v4681_v63, %v726_v6  ;;  %v6241_v63 = vld [vmem:[#allocation2_spill] sm:$0xff]  ;;  %v6248_v0 = vld [vmem:[#allocation24_spill] sm:$0xff] }
 0x2b7   : > { %v1088_v62 = vadd.f32 %v4753_v20, %v992_v34  ;;  %1300 = vmatmul.f32.gmra.mxu2 %v4414_v36  ;;  %3547 = vmatmul.msk.f32.gmra.mxu1 %vm516_vm0, %v4419_v4  ;;  %v3622_v34 = vld [vmem:[%s3966_s21 + $0x140] sm:$0xff] }
 0x2b8   : > { %1895 = vmatpush.msrb.mxu3 %v3622_v34  ;;  %v3617_v34 = vld [vmem:[%s3966_s21 + $0x118] sm:$0xff]  ;;  %v6254_v6 = vld [vmem:[#allocation26_spill] sm:$0xff] }
 0x2b9   : > { %1105 = vst.msk [vmem:[%s4738_s24 + $0x8] sm:$0xff] %vm1103_vm1, %v1088_v62 }
 0x2ba   : > { %v1253_v30 = vpop.f32.mrf.mxu2 }
 0x2bb   : > { %3565 = vmatmul.msk.f32.gmra.mxu3 %vm516_vm0, %v1253_v30  ;;  %v3621_v30 = vld [vmem:[%s3966_s21 + $0x138] sm:$0xff] }
 0x2bc   : > { %v949_v24 = vpop.f32.mrf.mxu1  ;;  %1896 = vmatpush.msrb.mxu3 %v3621_v30 }
 0x2bd   : > { %v993_v36 = vadd.f32 %v949_v24, %v861_v19 }
 0x2be   : > { %v4770_v41 = vpop.f32.mrf.mxu3 }
 0x2bf   : > { %v1089_v4 = vadd.f32 %v4765_v28, %v993_v36  ;;  %1303 = vmatmul.f32.gmra.mxu2 %v4424_v7  ;;  %3548 = vmatmul.msk.f32.gmra.mxu1 %vm516_vm0, %v4429_v12  ;;  %v3620_v36 = vld [vmem:[%s3966_s21 + $0x130] sm:$0xff] }
 0x2c0   : > { %1897 = vmatpush.msrb.mxu3 %v3620_v36 }
 0x2c1   : > { %1106 = vst.msk [vmem:[%s4738_s24 + $0x10] sm:$0xff] %vm1103_vm1, %v1089_v4 }
 0x2c2   : > { %v1256_v56 = vpop.f32.mrf.mxu2 }
 0x2c3   : > { %3566 = vmatmul.msk.f32.gmra.mxu3 %vm516_vm0, %v1256_v56 }
 0x2c4   : > { %v952_v35 = vpop.f32.mrf.mxu1 }
 0x2c5   : > { %v994_v7 = vadd.f32 %v952_v35, %v862_v13  ;;  %v3619_v13 = vld [vmem:[%s3966_s21 + $0x128] sm:$0xff]  ;;  %v4843_v35 = vpop.permute.xlu1 %1044 }
 0x2c6   : > { %v4785_v47 = vpop.f32.mrf.mxu3  ;;  %6234 = vst [vmem:[#allocation29_spill] sm:$0xff] %v4843_v35  ;;  %1898 = vmatpush.msrb.mxu3 %v3619_v13  ;;  %v6246_v13 = vld [vmem:[#allocation20_spill] sm:$0xff] }
 0x2c7   : > { %v1090_v12 = vadd.f32 %v4783_v38, %v994_v7  ;;  %1306 = vmatmul.f32.gmra.mxu2 %v4434_v26  ;;  %3549 = vmatmul.msk.f32.gmra.mxu1 %vm516_vm0, %v4439_v31 }
 0x2c9   : > { %1107 = vst.msk [vmem:[%s4738_s24 + $0x18] sm:$0xff] %vm1103_vm1, %v1090_v12  ;;  %v3618_v12 = vld [vmem:[%s3966_s21 + $0x120] sm:$0xff] }
 0x2ca   : > { %v1259_v15 = vpop.f32.mrf.mxu2  ;;  %1899 = vmatpush.msrb.mxu3 %v3618_v12 }
 0x2cb   : > { %3567 = vmatmul.msk.f32.gmra.mxu3 %vm516_vm0, %v1259_v15  ;;  %v4858_v15 = vpop.permute.xlu2 %1049 }
 0x2cc   : > { %v955_v62 = vpop.f32.mrf.mxu1  ;;  %6235 = vst [vmem:[#allocation30_spill] sm:$0xff] %v4858_v15  ;;  %1900 = vmatpush.msrb.mxu3 %v3617_v34  ;;  %v6252_v34 = vld [vmem:[#allocation21_spill] sm:$0xff] }
 0x2cd   : > { %v995_v26 = vadd.f32 %v955_v62, %v863_v21 }
 0x2ce   : > { %v4800_v46 = vpop.f32.mrf.mxu3  ;;  %1901 = vmatpush.msrb.mxu3 %v3616_v55 }
 0x2cf   : > { %v1091_v31 = vadd.f32 %v4795_v37, %v995_v26  ;;  %1309 = vmatmul.f32.gmra.mxu2 %v4444_v45  ;;  %3550 = vmatmul.msk.f32.gmra.mxu1 %vm516_vm0, %v4449_v43  ;;  %v4873_v26 = vpop.permute.xlu0 %1054 }
 0x2d0   : > { %6236 = vst [vmem:[#allocation31_spill] sm:$0xff] %v4873_v26 }
 0x2d1   : > { %1108 = vst.msk [vmem:[%s4738_s24 + $0x20] sm:$0xff] %vm1103_vm1, %v1091_v31 }
 0x2d2   : > { %v1262_v14 = vpop.f32.mrf.mxu2 }
 0x2d3   : > { %3568 = vmatmul.msk.f32.gmra.mxu3 %vm516_vm0, %v1262_v14 }
 0x2d4   : > { %v958_v19 = vpop.f32.mrf.mxu1 }
 0x2d5   : > { %v996_v45 = vadd.f32 %v958_v19, %v864_v29  ;;  %v4888_v29 = vpop.permute.xlu1 %1059  ;;  %v6238_v19 = vld [vmem:[#allocation7_spill] sm:$0xff] }
 0x2d6   : > { %v4815_v24 = vpop.f32.mrf.mxu3  ;;  %6237 = vst [vmem:[#allocation32_spill] sm:$0xff] %v4888_v29 }
 0x2d7   : > { %v1092_v43 = vadd.f32 %v4813_v22, %v996_v45  ;;  %1312 = vmatmul.f32.gmra.mxu2 %v4454_v48  ;;  %3551 = vmatmul.msk.f32.gmra.mxu1 %vm516_vm0, %v4459_v53  ;;  %v729_v45 = vadd.f32 %v6241_v63, %v6240_v27  ;;  %v6258_v27 = vld [vmem:[#allocation23_spill] sm:$0xff]  ;;  %v6259_v63 = vld [vmem:[#allocation5_spill] sm:$0xff] }
 0x2d9   : > { %1109 = vst.msk [vmem:[%s4738_s24 + $0x28] sm:$0xff] %vm1103_vm1, %v1092_v43 }
 0x2da   : > { %v1265_v33 = vpop.f32.mrf.mxu2 }
 0x2db   : > { %3569 = vmatmul.msk.f32.gmra.mxu3 %vm516_vm0, %v1265_v33  ;;  %v870_v33 = vadd.f32 %v6242_v58, %v729_v45  ;;  %v738_v45 = vadd.f32 %v6259_v63, %v6258_v27  ;;  %v5004_v27 = vld [vmem:[%s6159_s1 + $0x10] sm:$0xff] }
 0x2dc   : > { %v961_v4 = vpop.f32.mrf.mxu1  ;;  %6272 = vst [vmem:[#allocation24_spill] sm:$0xff] %v5004_v27 }
 0x2dd   : > { %v997_v48 = vadd.f32 %v961_v4, %v865_v18  ;;  %v3615_v18 = vld [vmem:[%s3966_s21 + $0x108] sm:$0xff]  ;;  %v4903_v4 = vpop.permute.xlu2 %1064  ;;  %v873_v58 = vadd.f32 %v4723_v23, %v738_v45  ;;  %v6263_v23 = vld [vmem:[#allocation25_spill] sm:$0xff] }
 0x2de   : > { %v4830_v56 = vpop.f32.mrf.mxu3  ;;  %6243 = vst [vmem:[#allocation7_spill] sm:$0xff] %v4903_v4  ;;  %1902 = vmatpush.msrb.mxu3 %v3615_v18 }
 0x2df   : > { %v1093_v53 = vadd.f32 %v4828_v49, %v997_v48  ;;  %1315 = vmatmul.f32.gmra.mxu2 %v4464_v51  ;;  %3552 = vmatmul.msk.f32.gmra.mxu1 %vm516_vm0, %v4469_v1  ;;  %v4932_v55 = vpop.permute.xlu1 %1074 }
 0x2e0   : > { %6255 = vst [vmem:[#allocation19_spill] sm:$0xff] %v4932_v55 }
 0x2e1   : > { %1110 = vst.msk [vmem:[%s4738_s24 + $0x30] sm:$0xff] %vm1103_vm1, %v1093_v53 }
 0x2e2   : > { %v1268_v5 = vpop.f32.mrf.mxu2 }
 0x2e3   : > { %3570 = vmatmul.msk.f32.gmra.mxu3 %vm516_vm0, %v1268_v5  ;;  %v6244_v5 = vld [vmem:[#allocation9_spill] sm:$0xff] }
 0x2e4   : > { %v964_v59 = vpop.f32.mrf.mxu1 }
 0x2e5   : > { %v998_v51 = vadd.f32 %v964_v59, %v866_v40  ;;  %v6245_v40 = vld [vmem:[#allocation10_spill] sm:$0xff]  ;;  %v6247_v59 = vld [vmem:[#allocation3_spill] sm:$0xff] }
 0x2e6   : > { %v4845_v7 = vpop.f32.mrf.mxu3 }
 0x2e7   : > { %v1094_v1 = vadd.f32 %v4843_v35, %v998_v51  ;;  %1318 = vmatmul.f32.gmra.mxu2 %v4474_v54  ;;  %3553 = vmatmul.msk.f32.gmra.mxu1 %vm516_vm0, %v4479_v42  ;;  %v732_v51 = vadd.f32 %v6247_v59, %v6246_v13  ;;  %v6262_v13 = vld [vmem:[#allocation16_spill] sm:$0xff]  ;;  %v6264_v59 = vld [vmem:[#allocation6_spill] sm:$0xff] }
 0x2e9   : > { %1111 = vst.msk [vmem:[%s4738_s24 + $0x38] sm:$0xff] %vm1103_vm1, %v1094_v1 }
 0x2ea   : > { %v1271_v44 = vpop.f32.mrf.mxu2 }
 0x2eb   : > { %3571 = vmatmul.msk.f32.gmra.mxu3 %vm516_vm0, %v1271_v44  ;;  %v871_v44 = vadd.f32 %v6248_v0, %v732_v51  ;;  %v741_v51 = vadd.f32 %v6264_v59, %v6263_v23  ;;  %v5037_v59 = vld [vmem:[%s6159_s1 + $0x28] sm:$0xff] }
 0x2ec   : > { %v967_v52 = vpop.f32.mrf.mxu1  ;;  %6275 = vst [vmem:[#allocation21_spill] sm:$0xff] %v5037_v59 }
 0x2ed   : > { %v999_v54 = vadd.f32 %v967_v52, %v867_v8  ;;  %v3614_v8 = vld [vmem:[%s3966_s21 + $0x100] sm:$0xff]  ;;  %v4918_v52 = vpop.permute.xlu0 %1069  ;;  %v874_v0 = vadd.f32 %v4740_v32, %v741_v51 }
 0x2ee   : > { %v4860_v21 = vpop.f32.mrf.mxu3  ;;  %6249 = vst [vmem:[#allocation8_spill] sm:$0xff] %v4918_v52  ;;  %1903 = vmatpush.msrb.mxu3 %v3614_v8 }
 0x2ef   : > { %v1095_v42 = vadd.f32 %v4858_v15, %v999_v54  ;;  %1321 = vmatmul.f32.gmra.mxu2 %v4484_v57  ;;  %3554 = vmatmul.msk.f32.gmra.mxu1 %vm516_vm0, %v4489_v10 }
 0x2f1   : > { %1112 = vst.msk [vmem:[%s4738_s24 + $0x40] sm:$0xff] %vm1103_vm1, %v1095_v42 }
 0x2f2   : > { %v1274_v11 = vpop.f32.mrf.mxu2  ;;  %v4946_v18 = vpop.permute.xlu2 %1079 }
 0x2f3   : > { %3572 = vmatmul.msk.f32.gmra.mxu3 %vm516_vm0, %v1274_v11  ;;  %v6250_v11 = vld [vmem:[#allocation11_spill] sm:$0xff]  ;;  %6260 = vst [vmem:[#allocation2_spill] sm:$0xff] %v4946_v18 }
 0x2f4   : > { %v970_v62 = vpop.f32.mrf.mxu1 }
 0x2f5   : > { %v1000_v57 = vadd.f32 %v970_v62, %v868_v16  ;;  %v6251_v16 = vld [vmem:[#allocation12_spill] sm:$0xff] }
 0x2f6   : > { %v4875_v31 = vpop.f32.mrf.mxu3  ;;  %v6253_v62 = vld [vmem:[#allocation4_spill] sm:$0xff] }
 0x2f7   : > { %v1096_v10 = vadd.f32 %v4873_v26, %v1000_v57  ;;  %1324 = vmatmul.f32.gmra.mxu2 %v4494_v60  ;;  %3555 = vmatmul.msk.f32.gmra.mxu1 %vm516_vm0, %v4499_v39  ;;  %v735_v57 = vadd.f32 %v6253_v62, %v6252_v34 }
 0x2f9   : > { %1113 = vst.msk [vmem:[%s4738_s24 + $0x48] sm:$0xff] %vm1103_vm1, %v1096_v10 }
 0x2fa   : > { %v1277_v2 = vpop.f32.mrf.mxu2 }
 0x2fb   : > { %3573 = vmatmul.msk.f32.gmra.mxu3 %vm516_vm0, %v1277_v2  ;;  %v872_v2 = vadd.f32 %v6254_v6, %v735_v57 }
 0x2fc   : > { %v973_v14 = vpop.f32.mrf.mxu1 }
 0x2fd   : > { %v1001_v60 = vadd.f32 %v973_v14, %v869_v17 }
 0x2fe   : > { %v4890_v30 = vpop.f32.mrf.mxu3  ;;  %v4963_v8 = vpop.permute.xlu0 %1084 }
 0x2ff   : > { %v1097_v39 = vadd.f32 %v4888_v29, %v1001_v60  ;;  %1327 = vmatmul.f32.gmra.mxu2 %v6238_v19  ;;  %3556 = vmatmul.msk.f32.gmra.mxu1 %vm516_vm0, %v6239_v9  ;;  %v6256_v19 = vld [vmem:[#allocation13_spill] sm:$0xff]  ;;  %v6257_v9 = vld [vmem:[#allocation14_spill] sm:$0xff]  ;;  %6265 = vst [vmem:[#allocation22_spill] sm:$0xff] %v4963_v8 }
 0x301   : > { %1114 = vst.msk [vmem:[%s4738_s24 + $0x50] sm:$0xff] %vm1103_vm1, %v1097_v39 }
 0x302   : > { %v1280_v43 = vpop.f32.mrf.mxu2 }
 0x303   : > { %3574 = vmatmul.msk.f32.gmra.mxu3 %vm516_vm0, %v1280_v43 }
 0x304   : > { %v976_v36 = vpop.f32.mrf.mxu1 }
 0x305   : > { %v1002_v48 = vadd.f32 %v976_v36, %v870_v33 }
 0x306   : > { %v4905_v53 = vpop.f32.mrf.mxu3 }
 0x307   : > { %v1098_v61 = vadd.f32 %v4903_v4, %v1002_v48  ;;  %1330 = vmatmul.f32.gmra.mxu2 %v6244_v5  ;;  %3557 = vmatmul.msk.f32.gmra.mxu1 %vm516_vm0, %v6245_v40  ;;  %v2097_v48 = vld [vmem:[%s6160_s2] sm:$0xff]  ;;  %v6261_v40 = vld [vmem:[#allocation15_spill] sm:$0xff] }
 0x308   : > { %2277 = vmatpush.msrb.mxu0 %v2097_v48 }
 0x309   : > { %1115 = vst.msk [vmem:[%s4738_s24 + $0x58] sm:$0xff] %vm1103_vm1, %v1098_v61 }
 0x30a   : > { %v1283_v1 = vpop.f32.mrf.mxu2 }
 0x30b   : > { %3575 = vmatmul.msk.f32.gmra.mxu3 %vm516_vm0, %v1283_v1 }
 0x30c   : > { %v979_v12 = vpop.f32.mrf.mxu1 }
 0x30d   : > { %v1003_v54 = vadd.f32 %v979_v12, %v871_v44 }
 0x30e   : > { %v4920_v42 = vpop.f32.mrf.mxu3 }
 0x30f   : > { %v1099_v3 = vadd.f32 %v4918_v52, %v1003_v54  ;;  %1333 = vmatmul.f32.gmra.mxu2 %v6250_v11  ;;  %3558 = vmatmul.msk.f32.gmra.mxu1 %vm516_vm0, %v6251_v16  ;;  %v6267_v11 = vld [vmem:[#allocation17_spill] sm:$0xff]  ;;  %v6268_v16 = vld [vmem:[#allocation18_spill] sm:$0xff] }
 0x311   : > { %1116 = vst.msk [vmem:[%s4738_s24 + $0x60] sm:$0xff] %vm1103_vm1, %v1099_v3 }
 0x312   : > { %v1286_v10 = vpop.f32.mrf.mxu2 }
 0x313   : > { %3576 = vmatmul.msk.f32.gmra.mxu3 %vm516_vm0, %v1286_v10  ;;  %v4982_v10 = vld [vmem:[%s6159_s1] sm:$0xff] }
 0x314   : > { %v982_v17 = vpop.f32.mrf.mxu1  ;;  %6270 = vst [vmem:[#allocation20_spill] sm:$0xff] %v4982_v10 }
 0x315   : > { %v1004_v14 = vadd.f32 %v982_v17, %v872_v2 }
 0x316   : > { %v4934_v60 = vpop.f32.mrf.mxu3 }
 0x317   : > { %v1100_v39 = vadd.f32 %v4932_v55, %v1004_v14  ;;  %1336 = vmatmul.f32.gmra.mxu2 %v6256_v19  ;;  %3559 = vmatmul.msk.f32.gmra.mxu1 %vm516_vm0, %v6257_v9  ;;  %v4993_v14 = vld [vmem:[%s6159_s1 + $0x8] sm:$0xff] }
 0x318   : > { %6271 = vst [vmem:[#allocation3_spill] sm:$0xff] %v4993_v14 }
 0x319   : > { %1117 = vst.msk [vmem:[%s4738_s24 + $0x68] sm:$0xff] %vm1103_vm1, %v1100_v39 }
 0x31a   : > { %v1289_v43 = vpop.f32.mrf.mxu2 }
 0x31b   : > { %3577 = vmatmul.msk.f32.gmra.mxu3 %vm516_vm0, %v1289_v43 }
 0x31c   : > { %v985_v33 = vpop.f32.mrf.mxu1 }
 0x31d   : > { %v1005_v36 = vadd.f32 %v985_v33, %v873_v58  ;;  %v5015_v58 = vld [vmem:[%s6159_s1 + $0x18] sm:$0xff] }
 0x31e   : > { %v4951_v61 = vpop.f32.mrf.mxu3  ;;  %6273 = vst [vmem:[#allocation11_spill] sm:$0xff] %v5015_v58 }
 0x31f   : > { %v1101_v5 = vadd.f32 %v4946_v18, %v1005_v36  ;;  %1339 = vmatmul.f32.gmra.mxu2 %v6261_v40  ;;  %3560 = vmatmul.msk.f32.gmra.mxu1 %vm516_vm0, %v6262_v13 }
 0x321   : > { %1118 = vst.msk [vmem:[%s4738_s24 + $0x70] sm:$0xff] %vm1103_vm1, %v1101_v5  ;;  %v5026_v5 = vld [vmem:[%s6159_s1 + $0x20] sm:$0xff] }
 0x322   : > { %v1292_v1 = vpop.f32.mrf.mxu2  ;;  %6274 = vst [vmem:[#allocation12_spill] sm:$0xff] %v5026_v5 }
 0x323   : > { %3578 = vmatmul.msk.f32.gmra.mxu3 %vm516_vm0, %v1292_v1 }
 0x324   : > { %v988_v44 = vpop.f32.mrf.mxu1 }
 0x325   : > { %v1006_v12 = vadd.f32 %v988_v44, %v874_v0  ;;  %v5048_v44 = vld [vmem:[%s6159_s1 + $0x30] sm:$0xff] }
 0x326   : > { %v4965_v54 = vpop.f32.mrf.mxu3  ;;  %6276 = vst [vmem:[#allocation4_spill] sm:$0xff] %v5048_v44 }
 0x327   : > { %6266 = vst [vmem:[#allocation9_spill] sm:$0xff] %v4965_v54  ;;  %v1102_v3 = vadd.f32 %v4963_v8, %v1006_v12  ;;  %1342 = vmatmul.f32.gmra.mxu2 %v6267_v11  ;;  %3561 = vmatmul.msk.f32.gmra.mxu1 %vm516_vm0, %v6268_v16  ;;  %v5059_v16 = vld [vmem:[%s6159_s1 + $0x38] sm:$0xff] }
 0x328   : > { %6277 = vst [vmem:[#allocation26_spill] sm:$0xff] %v5059_v16 }
 0x329   : > { %1119 = vst.msk [vmem:[%s4738_s24 + $0x78] sm:$0xff] %vm1103_vm1, %v1102_v3 }
 0x32a   : > { %v1295_v34 = vpop.f32.mrf.mxu2 }
 0x32b   : > { %3579 = vmatmul.msk.f32.gmra.mxu3 %vm516_vm0, %v1295_v34 }
 0x32c   : > { %v4974_v32 = vpop.f32.mrf.mxu1 }
 0x32e   : > { %v4976_v62 = vpop.f32.mrf.mxu3 }
 0x32f   : > { %6269 = vst [vmem:[#allocation10_spill] sm:$0xff] %v4976_v62 }
 0x332   : > { %v1298_v57 = vpop.f32.mrf.mxu2 }
 0x333   : > { %3582 = vmatmul.msk.f32.vlgmr.msra.gmra.mxu1 %vm516_vm0, %v1298_v57  ;;  %1904 = vmatmul.f32.vlgmr.msrb.gmra.mxu3 %v4982_v10 }
 0x334   : > { %v4985_v6 = vpop.f32.mrf.mxu1 }
 0x336   : > { %v4987_v2 = vpop.f32.mrf.mxu3 }
 0x33a   : > { %v1301_v17 = vpop.f32.mrf.mxu2 }
 0x33b   : > { %3583 = vmatmul.msk.f32.gmra.mxu1 %vm516_vm0, %v1301_v17  ;;  %1907 = vmatmul.f32.gmra.mxu3 %v4993_v14  ;;  %v5126_v14 = vld [vmem:[%s6159_s1 + $0x68] sm:$0xff] }
 0x33c   : > { %v4996_v39 = vpop.f32.mrf.mxu1  ;;  %6283 = vst [vmem:[#allocation16_spill] sm:$0xff] %v5126_v14 }
 0x33e   : > { %v4998_v19 = vpop.f32.mrf.mxu3 }
 0x342   : > { %v1304_v9 = vpop.f32.mrf.mxu2 }
 0x343   : > { %3584 = vmatmul.msk.f32.gmra.mxu1 %vm516_vm0, %v1304_v9  ;;  %1910 = vmatmul.f32.gmra.mxu3 %v5004_v27  ;;  %v5070_v9 = vld [vmem:[%s6159_s1 + $0x40] sm:$0xff] }
 0x344   : > { %v5007_v63 = vpop.f32.mrf.mxu1  ;;  %6278 = vst [vmem:[#allocation13_spill] sm:$0xff] %v5070_v9 }
 0x346   : > { %v5009_v45 = vpop.f32.mrf.mxu3 }
 0x34a   : > { %v1307_v43 = vpop.f32.mrf.mxu2 }
 0x34b   : > { %3585 = vmatmul.msk.f32.gmra.mxu1 %vm516_vm0, %v1307_v43  ;;  %1913 = vmatmul.f32.gmra.mxu3 %v5015_v58 }
 0x34c   : > { %v5018_v33 = vpop.f32.mrf.mxu1 }
 0x34e   : > { %v5020_v36 = vpop.f32.mrf.mxu3 }
 0x352   : > { %v1310_v48 = vpop.f32.mrf.mxu2 }
 0x353   : > { %3586 = vmatmul.msk.f32.gmra.mxu1 %vm516_vm0, %v1310_v48  ;;  %1916 = vmatmul.f32.gmra.mxu3 %v5026_v5 }
 0x354   : > { %v5029_v40 = vpop.f32.mrf.mxu1 }
 0x356   : > { %v5031_v13 = vpop.f32.mrf.mxu3 }
 0x35a   : > { %v1313_v23 = vpop.f32.mrf.mxu2 }
 0x35b   : > { %3587 = vmatmul.msk.f32.gmra.mxu1 %vm516_vm0, %v1313_v23  ;;  %1919 = vmatmul.f32.gmra.mxu3 %v5037_v59 }
 0x35c   : > { %v5040_v51 = vpop.f32.mrf.mxu1 }
 0x35e   : > { %v5042_v1 = vpop.f32.mrf.mxu3 }
 0x362   : > { %v1316_v0 = vpop.f32.mrf.mxu2 }
 0x363   : > { %3588 = vmatmul.msk.f32.gmra.mxu1 %vm516_vm0, %v1316_v0  ;;  %1922 = vmatmul.f32.gmra.mxu3 %v5048_v44  ;;  %v5081_v0 = vld [vmem:[%s6159_s1 + $0x48] sm:$0xff] }
 0x364   : > { %v5051_v12 = vpop.f32.mrf.mxu1  ;;  %6279 = vst [vmem:[#allocation14_spill] sm:$0xff] %v5081_v0 }
 0x366   : > { %v5053_v3 = vpop.f32.mrf.mxu3 }
 0x36a   : > { %v1319_v11 = vpop.f32.mrf.mxu2 }
 0x36b   : > { %3589 = vmatmul.msk.f32.gmra.mxu1 %vm516_vm0, %v1319_v11  ;;  %1925 = vmatmul.f32.gmra.mxu3 %v5059_v16 }
 0x36c   : > { %v5062_v34 = vpop.f32.mrf.mxu1 }
 0x36e   : > { %v5064_v57 = vpop.f32.mrf.mxu3 }
 0x372   : > { %v1322_v17 = vpop.f32.mrf.mxu2 }
 0x373   : > { %3590 = vmatmul.msk.f32.gmra.mxu1 %vm516_vm0, %v1322_v17  ;;  %1928 = vmatmul.f32.gmra.mxu3 %v5070_v9  ;;  %v5092_v9 = vld [vmem:[%s6159_s1 + $0x50] sm:$0xff] }
 0x374   : > { %v5073_v43 = vpop.f32.mrf.mxu1  ;;  %6280 = vst [vmem:[#allocation23_spill] sm:$0xff] %v5092_v9 }
 0x376   : > { %v5075_v48 = vpop.f32.mrf.mxu3 }
 0x37a   : > { %v1325_v23 = vpop.f32.mrf.mxu2 }
 0x37b   : > { %3591 = vmatmul.msk.f32.gmra.mxu1 %vm516_vm0, %v1325_v23  ;;  %1931 = vmatmul.f32.gmra.mxu3 %v5081_v0  ;;  %v3731_v23 = vld [vmem:[%s3966_s21 + $0x1f8] sm:$0xff] }
 0x37c   : > { %v5084_v11 = vpop.f32.mrf.mxu1  ;;  %3824 = vmatpush.msra.mxu3 %v3731_v23  ;;  %2639 = vmatpush.msra.mxu0 %v3731_v23  ;;  %v5115_v23 = vld [vmem:[%s6159_s1 + $0x60] sm:$0xff] }
 0x37d   : > { %6282 = vst [vmem:[#allocation15_spill] sm:$0xff] %v5115_v23 }
 0x37e   : > { %v5086_v17 = vpop.f32.mrf.mxu3 }
 0x382   : > { %v1328_v16 = vpop.f32.mrf.mxu2 }
 0x383   : > { %3592 = vmatmul.msk.f32.gmra.mxu1 %vm516_vm0, %v1328_v16  ;;  %1934 = vmatmul.f32.gmra.mxu3 %v5092_v9  ;;  %v5104_v16 = vld [vmem:[%s6159_s1 + $0x58] sm:$0xff] }
 0x384   : > { %v5096_v44 = vpop.f32.mrf.mxu1  ;;  %6281 = vst [vmem:[#allocation5_spill] sm:$0xff] %v5104_v16 }
 0x386   : > { %v5098_v0 = vpop.f32.mrf.mxu3 }
 0x38a   : > { %v1331_v59 = vpop.f32.mrf.mxu2 }
 0x38b   : > { %3593 = vmatmul.msk.f32.gmra.mxu1 %vm516_vm0, %v1331_v59  ;;  %1937 = vmatmul.f32.gmra.mxu3 %v5104_v16 }
 0x38c   : > { %v5107_v5 = vpop.f32.mrf.mxu1 }
 0x38e   : > { %v5109_v9 = vpop.f32.mrf.mxu3 }
 0x392   : > { %v1334_v58 = vpop.f32.mrf.mxu2 }
 0x393   : > { %3594 = vmatmul.msk.f32.gmra.mxu1 %vm516_vm0, %v1334_v58  ;;  %1940 = vmatmul.f32.gmra.mxu3 %v5115_v23  ;;  %v5137_v23 = vld [vmem:[%s6159_s1 + $0x70] sm:$0xff] }
 0x394   : > { %v5118_v59 = vpop.f32.mrf.mxu1  ;;  %6285 = vst [vmem:[#allocation6_spill] sm:$0xff] %v5137_v23 }
 0x396   : > { %v5120_v27 = vpop.f32.mrf.mxu3 }
 0x39a   : > { %v1337_v16 = vpop.f32.mrf.mxu2 }
 0x39b   : > { %3595 = vmatmul.msk.f32.gmra.mxu1 %vm516_vm0, %v1337_v16  ;;  %1943 = vmatmul.f32.gmra.mxu3 %v5126_v14  ;;  %v3730_v16 = vld [vmem:[%s3966_s21 + $0x1f0] sm:$0xff] }
 0x39c   : > { %v5129_v58 = vpop.f32.mrf.mxu1  ;;  %3825 = vmatpush.msra.mxu3 %v3730_v16  ;;  %2640 = vmatpush.msra.mxu0 %v3730_v16 }
 0x39d   : > { %6284 = vst [vmem:[#allocation25_spill] sm:$0xff] %v5129_v58 }
 0x39e   : > { %v5131_v10 = vpop.f32.mrf.mxu3 }
 0x3a2   : > { %v1340_v8 = vpop.f32.mrf.mxu2 }
 0x3a3   : > { %3596 = vmatmul.msk.f32.gmra.mxu1 %vm516_vm0, %v1340_v8  ;;  %1946 = vmatmul.f32.gmra.mxu3 %v5137_v23  ;;  %v5149_v8 = vld [vmem:[%s6159_s1 + $0x78] sm:$0xff]  ;;  %v1529_v23 = vadd.f32 %v4974_v32, %v4755_v50 }
 0x3a4   : > { %v5143_v14 = vpop.f32.mrf.mxu1  ;;  %6288 = vst [vmem:[#allocation33_spill] sm:$0xff] %v5149_v8 }
 0x3a5   : > { %6287 = vst [vmem:[#allocation18_spill] sm:$0xff] %v5143_v14 }
 0x3a6   : > { %v5141_v62 = vpop.f32.mrf.mxu3 }
 0x3a7   : > { %6286 = vst [vmem:[#allocation17_spill] sm:$0xff] %v5141_v62  ;;  %v1691_v62 = vadd.f32 %v4987_v2, %v1529_v23  ;;  %v5174_v23 = vld [vmem:[%s6159_s1 + $0x88] sm:$0xff] }
 0x3aa   : > { %v1343_v18 = vpop.f32.mrf.mxu2 }
 0x3ab   : > { %3597 = vmatmul.msk.f32.gmra.mxu1 %vm516_vm0, %v1343_v18  ;;  %1949 = vmatmul.f32.gmra.mxu3 %v5149_v8  ;;  %v5161_v18 = vld [vmem:[%s6159_s1 + $0x80] sm:$0xff]  ;;  %v1532_v8 = vadd.f32 %v4985_v6, %v4770_v41  ;;  %v1535_v41 = vadd.f32 %v4996_v39, %v4785_v47  ;;  %v1538_v47 = vadd.f32 %v5007_v63, %v4800_v46  ;;  %v3729_v39 = vld [vmem:[%s3966_s21 + $0x1e8] sm:$0xff] }
 0x3ac   : > { %3826 = vmatpush.msra.mxu3 %v3729_v39  ;;  %2641 = vmatpush.msra.mxu0 %v3729_v39  ;;  %v1541_v46 = vadd.f32 %v5018_v33, %v4815_v24  ;;  %v1544_v24 = vadd.f32 %v5029_v40, %v4830_v56  ;;  %v1547_v56 = vadd.f32 %v5040_v51, %v4845_v7  ;;  %v3728_v51 = vld [vmem:[%s3966_s21 + $0x1e0] sm:$0xff] }
 0x3ad   : > { %v1692_v32 = vadd.f32 %v4998_v19, %v1532_v8  ;;  %v1693_v6 = vadd.f32 %v5009_v45, %v1535_v41  ;;  %v5201_v41 = vld [vmem:[%s6159_s1 + $0x98] sm:$0xff]  ;;  %v1550_v7 = vadd.f32 %v5051_v12, %v4860_v21  ;;  %v1553_v21 = vadd.f32 %v5062_v34, %v4875_v31 }
 0x3ae   : > { %v5154_v58 = vpop.f32.mrf.mxu3  ;;  %3827 = vmatpush.msra.mxu3 %v3728_v51  ;;  %2642 = vmatpush.msra.mxu0 %v3728_v51  ;;  %v1556_v31 = vadd.f32 %v5073_v43, %v4890_v30  ;;  %v1559_v30 = vadd.f32 %v5084_v11, %v4905_v53  ;;  %v5294_v53 = vld [vmem:[%s6159_s1 + $0xd0] sm:$0xff] }
 0x3af   : > { %v3726_v11 = vld [vmem:[%s3966_s21 + $0x1d0] sm:$0xff] }
 0x3b0   : > { %v1774_v16 = vpop.f32.mrf.mxu1 }
 0x3b1   : > { %v1822_v14 = vadd.f32 %v1774_v16, %v1691_v62 }
 0x3b3   : > { %v1838_v54 = vadd.f32 %v1822_v14, %v4729_v25  ;;  %1952 = vmatmul.f32.gmra.mxu3 %v5161_v18 }
 0x3b5   : > { %3598 = vst.msk [vmem:[%s4738_s24 + $0x80] sm:$0xff] %vm1103_vm1, %v1838_v54 }
 0x3b6   : > { %v1905_v50 = vpop.f32.mrf.mxu3 }
 0x3b7   : > { %3648 = vmatmul.msk.f32.vlgmr.msrb.gmra.mxu0 %vm516_vm0, %v1905_v50  ;;  %v5187_v50 = vld [vmem:[%s6159_s1 + $0x90] sm:$0xff] }
 0x3b8   : > { %v1777_v62 = vpop.f32.mrf.mxu1 }
 0x3b9   : > { %v1823_v2 = vadd.f32 %v1777_v62, %v1692_v32  ;;  %v1694_v32 = vadd.f32 %v5020_v36, %v1538_v47  ;;  %v1695_v36 = vadd.f32 %v5031_v13, %v1541_v46  ;;  %v1696_v13 = vadd.f32 %v5042_v1, %v1544_v24 }
 0x3ba   : > { %v1697_v1 = vadd.f32 %v5053_v3, %v1547_v56  ;;  %v1698_v46 = vadd.f32 %v5064_v57, %v1550_v7  ;;  %v1699_v57 = vadd.f32 %v5075_v48, %v1553_v21  ;;  %v1700_v48 = vadd.f32 %v5086_v17, %v1556_v31  ;;  %v5280_v56 = vld [vmem:[%s6159_s1 + $0xc8] sm:$0xff] }
 0x3bb   : > { %v1839_v14 = vadd.f32 %v1823_v2, %v4753_v20  ;;  %1955 = vmatmul.f32.gmra.mxu3 %v5174_v23  ;;  %v1701_v17 = vadd.f32 %v5098_v0, %v1559_v30  ;;  %v1562_v0 = vadd.f32 %v5096_v44, %v4920_v42  ;;  %v5311_v44 = vld [vmem:[%s6159_s1 + $0xd8] sm:$0xff]  ;;  %v3721_v21 = vld [vmem:[%s3966_s21 + $0x1a8] sm:$0xff] }
 0x3bd   : > { %3599 = vst.msk [vmem:[%s4738_s24 + $0x88] sm:$0xff] %vm1103_vm1, %v1839_v14  ;;  %v1702_v51 = vadd.f32 %v5109_v9, %v1562_v0  ;;  %v3722_v9 = vld [vmem:[%s3966_s21 + $0x1b0] sm:$0xff]  ;;  %v6291_v0 = vld [vmem:[#allocation17_spill] sm:$0xff] }
 0x3be   : > { %v1908_v54 = vpop.f32.mrf.mxu3 }
 0x3bf   : > { %3649 = vmatmul.msk.f32.gmra.mxu0 %vm516_vm0, %v1908_v54 }
 0x3c0   : > { %v1780_v19 = vpop.f32.mrf.mxu1 }
 0x3c1   : > { %v1824_v8 = vadd.f32 %v1780_v19, %v1693_v6 }
 0x3c3   : > { %v1840_v16 = vadd.f32 %v1824_v8, %v4765_v28  ;;  %1958 = vmatmul.f32.gmra.mxu3 %v5187_v50  ;;  %v5214_v8 = vld [vmem:[%s6159_s1 + $0xa0] sm:$0xff] }
 0x3c5   : > { %3600 = vst.msk [vmem:[%s4738_s24 + $0x90] sm:$0xff] %vm1103_vm1, %v1840_v16 }
 0x3c6   : > { %v1911_v45 = vpop.f32.mrf.mxu3 }
 0x3c7   : > { %3650 = vmatmul.msk.f32.gmra.mxu0 %vm516_vm0, %v1911_v45  ;;  %v5227_v45 = vld [vmem:[%s6159_s1 + $0xa8] sm:$0xff] }
 0x3c8   : > { %v1783_v62 = vpop.f32.mrf.mxu1 }
 0x3c9   : > { %v1825_v2 = vadd.f32 %v1783_v62, %v1694_v32 }
 0x3cb   : > { %v1841_v14 = vadd.f32 %v1825_v2, %v4783_v38  ;;  %1961 = vmatmul.f32.gmra.mxu3 %v5201_v41 }
 0x3cd   : > { %3601 = vst.msk [vmem:[%s4738_s24 + $0x98] sm:$0xff] %vm1103_vm1, %v1841_v14  ;;  %v5240_v14 = vld [vmem:[%s6159_s1 + $0xb0] sm:$0xff] }
 0x3ce   : > { %v1914_v63 = vpop.f32.mrf.mxu3 }
 0x3cf   : > { %3651 = vmatmul.msk.f32.gmra.mxu0 %vm516_vm0, %v1914_v63 }
 0x3d0   : > { %v1786_v54 = vpop.f32.mrf.mxu1 }
 0x3d1   : > { %v1826_v6 = vadd.f32 %v1786_v54, %v1695_v36 }
 0x3d3   : > { %v1842_v19 = vadd.f32 %v1826_v6, %v4795_v37  ;;  %1964 = vmatmul.f32.gmra.mxu3 %v5214_v8  ;;  %v5254_v6 = vld [vmem:[%s6159_s1 + $0xb8] sm:$0xff] }
 0x3d5   : > { %3602 = vst.msk [vmem:[%s4738_s24 + $0xa0] sm:$0xff] %vm1103_vm1, %v1842_v19 }
 0x3d6   : > { %v1917_v33 = vpop.f32.mrf.mxu3 }
 0x3d7   : > { %3652 = vmatmul.msk.f32.gmra.mxu0 %vm516_vm0, %v1917_v33 }
 0x3d8   : > { %v1789_v16 = vpop.f32.mrf.mxu1 }
 0x3d9   : > { %v1827_v47 = vadd.f32 %v1789_v16, %v1696_v13  ;;  %v5267_v13 = vld [vmem:[%s6159_s1 + $0xc0] sm:$0xff] }
 0x3db   : > { %v1843_v39 = vadd.f32 %v1827_v47, %v4813_v22  ;;  %1967 = vmatmul.f32.gmra.mxu3 %v5227_v45 }
 0x3dd   : > { %3603 = vst.msk [vmem:[%s4738_s24 + $0xa8] sm:$0xff] %vm1103_vm1, %v1843_v39 }
 0x3de   : > { %v1920_v40 = vpop.f32.mrf.mxu3 }
 0x3df   : > { %3653 = vmatmul.msk.f32.gmra.mxu0 %vm516_vm0, %v1920_v40 }
 0x3e0   : > { %v1792_v32 = vpop.f32.mrf.mxu1 }
 0x3e1   : > { %v1828_v62 = vadd.f32 %v1792_v32, %v1697_v1  ;;  %v3727_v32 = vld [vmem:[%s3966_s21 + $0x1d8] sm:$0xff] }
 0x3e2   : > { %2643 = vmatpush.msra.mxu0 %v3727_v32  ;;  %3828 = vmatpush.msra.mxu3 %v3727_v32  ;;  %v6290_v32 = vld [vmem:[#allocation25_spill] sm:$0xff] }
 0x3e3   : > { %v1844_v2 = vadd.f32 %v1828_v62, %v4828_v49  ;;  %1970 = vmatmul.f32.gmra.mxu3 %v5240_v14 }
 0x3e4   : > { %2644 = vmatpush.msra.mxu0 %v3726_v11  ;;  %3829 = vmatpush.msra.mxu3 %v3726_v11 }
 0x3e5   : > { %3604 = vst.msk [vmem:[%s4738_s24 + $0xb0] sm:$0xff] %vm1103_vm1, %v1844_v2  ;;  %v3725_v2 = vld [vmem:[%s3966_s21 + $0x1c8] sm:$0xff] }
 0x3e6   : > { %v1923_v3 = vpop.f32.mrf.mxu3  ;;  %2645 = vmatpush.msra.mxu0 %v3725_v2  ;;  %3830 = vmatpush.msra.mxu3 %v3725_v2 }
 0x3e7   : > { %3654 = vmatmul.msk.f32.gmra.mxu0 %vm516_vm0, %v1923_v3  ;;  %v3724_v3 = vld [vmem:[%s3966_s21 + $0x1c0] sm:$0xff] }
 0x3e8   : > { %v1795_v63 = vpop.f32.mrf.mxu1  ;;  %2646 = vmatpush.msra.mxu0 %v3724_v3  ;;  %3831 = vmatpush.msra.mxu3 %v3724_v3  ;;  %v6292_v3 = vld [vmem:[#allocation2_spill] sm:$0xff] }
 0x3e9   : > { %v1829_v36 = vadd.f32 %v1795_v63, %v1698_v46 }
 0x3eb   : > { %v1845_v54 = vadd.f32 %v1829_v36, %v4843_v35  ;;  %1973 = vmatmul.f32.gmra.mxu3 %v5254_v6  ;;  %v3723_v36 = vld [vmem:[%s3966_s21 + $0x1b8] sm:$0xff] }
 0x3ec   : > { %2647 = vmatpush.msra.mxu0 %v3723_v36  ;;  %3832 = vmatpush.msra.mxu3 %v3723_v36  ;;  %v6293_v36 = vld [vmem:[#allocation10_spill] sm:$0xff] }
 0x3ed   : > { %3605 = vst.msk [vmem:[%s4738_s24 + $0xb8] sm:$0xff] %vm1103_vm1, %v1845_v54  ;;  %v1565_v54 = vadd.f32 %v5107_v5, %v4934_v60  ;;  %v5328_v5 = vld [vmem:[%s6159_s1 + $0xe0] sm:$0xff] }
 0x3ee   : > { %v1926_v12 = vpop.f32.mrf.mxu3  ;;  %2648 = vmatpush.msra.mxu0 %v3722_v9  ;;  %3833 = vmatpush.msra.mxu3 %v3722_v9 }
 0x3ef   : > { %3655 = vmatmul.msk.f32.gmra.mxu0 %vm516_vm0, %v1926_v12 }
 0x3f0   : > { %v1798_v19 = vpop.f32.mrf.mxu1  ;;  %2649 = vmatpush.msra.mxu0 %v3721_v21  ;;  %3834 = vmatpush.msra.mxu3 %v3721_v21 }
 0x3f1   : > { %v1830_v24 = vadd.f32 %v1798_v19, %v1699_v57  ;;  %v1703_v57 = vadd.f32 %v5120_v27, %v1565_v54  ;;  %v3720_v19 = vld [vmem:[%s3966_s21 + $0x1a0] sm:$0xff]  ;;  %v5334_v27 = vld [vmem:[%s6160_s2 + $0x18] sm:$0xff] }
 0x3f2   : > { %2650 = vmatpush.msra.mxu0 %v3720_v19  ;;  %3835 = vmatpush.msra.mxu3 %v3720_v19  ;;  %v6295_v19 = vld [vmem:[#allocation22_spill] sm:$0xff] }
 0x3f3   : > { %v1846_v33 = vadd.f32 %v1830_v24, %v4858_v15  ;;  %1976 = vmatmul.f32.gmra.mxu3 %v5267_v13  ;;  %v3719_v24 = vld [vmem:[%s3966_s21 + $0x198] sm:$0xff]  ;;  %2163 = vmatpush.msrb.mxu1 %v5334_v27 }
 0x3f4   : > { %2651 = vmatpush.msra.mxu0 %v3719_v24  ;;  %3836 = vmatpush.msra.mxu3 %v3719_v24 }
 0x3f5   : > { %3606 = vst.msk [vmem:[%s4738_s24 + $0xc0] sm:$0xff] %vm1103_vm1, %v1846_v33 }
 0x3f6   : > { %v1929_v34 = vpop.f32.mrf.mxu3 }
 0x3f7   : > { %3656 = vmatmul.msk.f32.gmra.mxu0 %vm516_vm0, %v1929_v34  ;;  %v3718_v34 = vld [vmem:[%s3966_s21 + $0x190] sm:$0xff] }
 0x3f8   : > { %v1801_v16 = vpop.f32.mrf.mxu1  ;;  %2652 = vmatpush.msra.mxu0 %v3718_v34  ;;  %3837 = vmatpush.msra.mxu3 %v3718_v34 }
 0x3f9   : > { %v1831_v47 = vadd.f32 %v1801_v16, %v1700_v48  ;;  %v1568_v48 = vadd.f32 %v5118_v59, %v4951_v61  ;;  %v5345_v16 = vld [vmem:[%s6160_s2 + $0x10] sm:$0xff]  ;;  %v3716_v59 = vld [vmem:[%s3966_s21 + $0x180] sm:$0xff] }
 0x3fa   : > { %2164 = vmatpush.msrb.mxu1 %v5345_v16  ;;  %v5354_v61 = vld [vmem:[%s6160_s2 + $0x30] sm:$0xff] }
 0x3fb   : > { %v1847_v39 = vadd.f32 %v1831_v47, %v4873_v26  ;;  %1979 = vmatmul.f32.gmra.mxu3 %v5280_v56  ;;  %v3717_v47 = vld [vmem:[%s3966_s21 + $0x188] sm:$0xff]  ;;  %v1704_v30 = vadd.f32 %v5131_v10, %v1568_v48  ;;  %2523 = vmatpush.msra.mxu2 %v5354_v61  ;;  %v6296_v48 = vld [vmem:[#allocation20_spill] sm:$0xff] }
 0x3fc   : > { %2653 = vmatpush.msra.mxu0 %v3717_v47  ;;  %3838 = vmatpush.msra.mxu3 %v3717_v47  ;;  %v5362_v10 = vld [vmem:[%s6159_s1 + $0xe8] sm:$0xff] }
 0x3fd   : > { %3607 = vst.msk [vmem:[%s4738_s24 + $0xc8] sm:$0xff] %vm1103_vm1, %v1847_v39  ;;  %v5407_v47 = vld [vmem:[%s6159_s1 + $0x108] sm:$0xff] }
 0x3fe   : > { %v1932_v43 = vpop.f32.mrf.mxu3  ;;  %2654 = vmatpush.msra.mxu0 %v3716_v59  ;;  %3839 = vmatpush.msra.mxu3 %v3716_v59  ;;  %v6297_v59 = vld [vmem:[#allocation3_spill] sm:$0xff] }
 0x3ff   : > { %3657 = vmatmul.msk.f32.gmra.mxu0 %vm516_vm0, %v1932_v43 }
 0x400   : > { %v1804_v40 = vpop.f32.mrf.mxu1 }
 0x401   : > { %v1832_v1 = vadd.f32 %v1804_v40, %v1701_v17 }
 0x403   : > { %v1848_v62 = vadd.f32 %v1832_v1, %v4888_v29  ;;  %1982 = vmatmul.f32.gmra.mxu3 %v5294_v53  ;;  %v6289_v1 = vld [vmem:[#allocation9_spill] sm:$0xff] }
 0x405   : > { %3608 = vst.msk [vmem:[%s4738_s24 + $0xd0] sm:$0xff] %vm1103_vm1, %v1848_v62  ;;  %v1571_v62 = vadd.f32 %v6290_v32, %v6289_v1  ;;  %v6298_v1 = vld [vmem:[#allocation24_spill] sm:$0xff]  ;;  %v5427_v32 = vld [vmem:[%s6159_s1 + $0x118] sm:$0xff] }
 0x406   : > { %v1935_v7 = vpop.f32.mrf.mxu3 }
 0x407   : > { %3658 = vmatmul.msk.f32.gmra.mxu0 %vm516_vm0, %v1935_v7  ;;  %v1705_v2 = vadd.f32 %v6291_v0, %v1571_v62  ;;  %v6299_v0 = vld [vmem:[#allocation11_spill] sm:$0xff] }
 0x408   : > { %v1807_v46 = vpop.f32.mrf.mxu1 }
 0x409   : > { %v1833_v63 = vadd.f32 %v1807_v46, %v1702_v51 }
 0x40b   : > { %v1849_v42 = vadd.f32 %v1833_v63, %v4903_v4  ;;  %1985 = vmatmul.f32.gmra.mxu3 %v5311_v44  ;;  %v5375_v63 = vld [vmem:[%s6159_s1 + $0xf0] sm:$0xff]  ;;  %v6321_v4 = vld [vmem:[#allocation33_spill] sm:$0xff] }
 0x40d   : > { %3609 = vst.msk [vmem:[%s4738_s24 + $0xd8] sm:$0xff] %vm1103_vm1, %v1849_v42  ;;  %v6294_v42 = vld [vmem:[#allocation18_spill] sm:$0xff] }
 0x40e   : > { %v1938_v12 = vpop.f32.mrf.mxu3  ;;  %v1574_v9 = vadd.f32 %v6294_v42, %v6293_v36  ;;  %v5447_v36 = vld [vmem:[%s6159_s1 + $0x128] sm:$0xff] }
 0x40f   : > { %3659 = vmatmul.msk.f32.gmra.mxu0 %vm516_vm0, %v1938_v12 }
 0x410   : > { %v1810_v33 = vpop.f32.mrf.mxu1  ;;  %v1706_v21 = vadd.f32 %v5154_v58, %v1574_v9  ;;  %v5397_v58 = vld [vmem:[%s6159_s1 + $0x100] sm:$0xff] }
 0x411   : > { %v1834_v31 = vadd.f32 %v1810_v33, %v1703_v57  ;;  %v5388_v33 = vld [vmem:[%s6159_s1 + $0xf8] sm:$0xff] }
 0x413   : > { %v1850_v60 = vadd.f32 %v1834_v31, %v4918_v52  ;;  %1988 = vmatmul.f32.gmra.mxu3 %v5328_v5 }
 0x415   : > { %3610 = vst.msk [vmem:[%s4738_s24 + $0xe0] sm:$0xff] %vm1103_vm1, %v1850_v60 }
 0x416   : > { %v1941_v39 = vpop.f32.mrf.mxu3 }
 0x417   : > { %3660 = vmatmul.msk.f32.gmra.mxu0 %vm516_vm0, %v1941_v39 }
 0x418   : > { %v1813_v43 = vpop.f32.mrf.mxu1 }
 0x419   : > { %v1835_v17 = vadd.f32 %v1813_v43, %v1704_v30  ;;  %v5417_v43 = vld [vmem:[%s6159_s1 + $0x110] sm:$0xff] }
 0x41b   : > { %v1851_v40 = vadd.f32 %v1835_v17, %v4932_v55  ;;  %1991 = vmatmul.f32.gmra.mxu3 %v5362_v10 }
 0x41d   : > { %3611 = vst.msk [vmem:[%s4738_s24 + $0xe8] sm:$0xff] %vm1103_vm1, %v1851_v40 }
 0x41e   : > { %v1944_v11 = vpop.f32.mrf.mxu3 }
 0x41f   : > { %3661 = vmatmul.msk.f32.gmra.mxu0 %vm516_vm0, %v1944_v11 }
 0x420   : > { %v1816_v7 = vpop.f32.mrf.mxu1 }
 0x421   : > { %v1836_v51 = vadd.f32 %v1816_v7, %v1705_v2  ;;  %v5437_v2 = vld [vmem:[%s6159_s1 + $0x120] sm:$0xff] }
 0x423   : > { %v1852_v46 = vadd.f32 %v1836_v51, %v6292_v3  ;;  %1994 = vmatmul.f32.gmra.mxu3 %v5375_v63  ;;  %v5535_v3 = vld [vmem:[%s6159_s1 + $0x168] sm:$0xff] }
 0x425   : > { %3612 = vst.msk [vmem:[%s4738_s24 + $0xf0] sm:$0xff] %vm1103_vm1, %v1852_v46  ;;  %v6300_v46 = vld [vmem:[#allocation12_spill] sm:$0xff] }
 0x426   : > { %v1947_v54 = vpop.f32.mrf.mxu3 }
 0x427   : > { %3662 = vmatmul.msk.f32.gmra.mxu0 %vm516_vm0, %v1947_v54  ;;  %v6301_v54 = vld [vmem:[#allocation21_spill] sm:$0xff] }
 0x428   : > { %v1819_v12 = vpop.f32.mrf.mxu1 }
 0x429   : > { %v1837_v57 = vadd.f32 %v1819_v12, %v1706_v21  ;;  %v5457_v21 = vld [vmem:[%s6159_s1 + $0x130] sm:$0xff] }
 0x42b   : > { %v1853_v24 = vadd.f32 %v1837_v57, %v6295_v19  ;;  %1997 = vmatmul.f32.gmra.mxu3 %v5388_v33 }
 0x42d   : > { %3613 = vst.msk [vmem:[%s4738_s24 + $0xf8] sm:$0xff] %vm1103_vm1, %v1853_v24  ;;  %v6303_v24 = vld [vmem:[#allocation4_spill] sm:$0xff] }
 0x42e   : > { %v1950_v31 = vpop.f32.mrf.mxu3 }
 0x42f   : > { %3663 = vmatmul.msk.f32.gmra.mxu0 %vm516_vm0, %v1950_v31  ;;  %v5467_v31 = vld [vmem:[%s6159_s1 + $0x138] sm:$0xff] }
 0x433   : > { %2000 = vmatmul.f32.gmra.mxu3 %v5397_v58 }
 0x434   : > { %v5400_v60 = vpop.f32.mrf.mxu0 }
 0x436   : > { %v1953_v34 = vpop.f32.mrf.mxu3 }
 0x437   : > { %3632 = vmatmul.msk.f32.vlgmr.msrb.gmra.mxu1 %vm516_vm0, %v1953_v34  ;;  %2655 = vmatmul.f32.vlgmr.msra.gmra.mxu0 %v6296_v48 }
 0x43b   : > { %2003 = vmatmul.f32.gmra.mxu3 %v5407_v47 }
 0x43c   : > { %v5410_v39 = vpop.f32.mrf.mxu0 }
 0x43e   : > { %v1956_v30 = vpop.f32.mrf.mxu3 }
 0x43f   : > { %3633 = vmatmul.msk.f32.gmra.mxu1 %vm516_vm0, %v1956_v30  ;;  %2658 = vmatmul.f32.gmra.mxu0 %v6297_v59  ;;  %v6305_v30 = vld [vmem:[#allocation26_spill] sm:$0xff] }
 0x440   : > { %v5477_v59 = vld [vmem:[%s6159_s1 + $0x140] sm:$0xff] }
 0x443   : > { %2006 = vmatmul.f32.gmra.mxu3 %v5417_v43 }
 0x444   : > { %v5420_v17 = vpop.f32.mrf.mxu0 }
 0x446   : > { %v1959_v40 = vpop.f32.mrf.mxu3 }
 0x447   : > { %3634 = vmatmul.msk.f32.gmra.mxu1 %vm516_vm0, %v1959_v40  ;;  %2661 = vmatmul.f32.gmra.mxu0 %v6298_v1 }
 0x44b   : > { %2009 = vmatmul.f32.gmra.mxu3 %v5427_v32 }
 0x44c   : > { %v5430_v62 = vpop.f32.mrf.mxu0 }
 0x44e   : > { %v1962_v11 = vpop.f32.mrf.mxu3 }
 0x44f   : > { %3635 = vmatmul.msk.f32.gmra.mxu1 %vm516_vm0, %v1962_v11  ;;  %2664 = vmatmul.f32.gmra.mxu0 %v6299_v0  ;;  %v6307_v11 = vld [vmem:[#allocation13_spill] sm:$0xff]  ;;  %v5487_v0 = vld [vmem:[%s6159_s1 + $0x148] sm:$0xff] }
 0x453   : > { %2012 = vmatmul.f32.gmra.mxu3 %v5437_v2 }
 0x454   : > { %v5440_v7 = vpop.f32.mrf.mxu0 }
 0x456   : > { %v1965_v51 = vpop.f32.mrf.mxu3 }
 0x457   : > { %3636 = vmatmul.msk.f32.gmra.mxu1 %vm516_vm0, %v1965_v51  ;;  %2667 = vmatmul.f32.gmra.mxu0 %v6300_v46 }
 0x45b   : > { %2015 = vmatmul.f32.gmra.mxu3 %v5447_v36 }
 0x45c   : > { %v5450_v42 = vpop.f32.mrf.mxu0 }
 0x45e   : > { %v1968_v9 = vpop.f32.mrf.mxu3 }
 0x45f   : > { %3637 = vmatmul.msk.f32.gmra.mxu1 %vm516_vm0, %v1968_v9  ;;  %2670 = vmatmul.f32.gmra.mxu0 %v6301_v54  ;;  %v6309_v9 = vld [vmem:[#allocation14_spill] sm:$0xff]  ;;  %v5497_v54 = vld [vmem:[%s6159_s1 + $0x150] sm:$0xff] }
 0x463   : > { %2018 = vmatmul.f32.gmra.mxu3 %v5457_v21 }
 0x464   : > { %v5460_v12 = vpop.f32.mrf.mxu0 }
 0x465   : > { %6302 = vst [vmem:[#allocation9_spill] sm:$0xff] %v5460_v12 }
 0x466   : > { %v1971_v57 = vpop.f32.mrf.mxu3 }
 0x467   : > { %3638 = vmatmul.msk.f32.gmra.mxu1 %vm516_vm0, %v1971_v57  ;;  %2673 = vmatmul.f32.gmra.mxu0 %v6303_v24 }
 0x46b   : > { %2021 = vmatmul.f32.gmra.mxu3 %v5467_v31 }
 0x46c   : > { %v5470_v34 = vpop.f32.mrf.mxu0 }
 0x46d   : > { %6304 = vst [vmem:[#allocation25_spill] sm:$0xff] %v5470_v34 }
 0x46e   : > { %v1974_v48 = vpop.f32.mrf.mxu3 }
 0x46f   : > { %3639 = vmatmul.msk.f32.gmra.mxu1 %vm516_vm0, %v1974_v48  ;;  %2676 = vmatmul.f32.gmra.mxu0 %v6305_v30  ;;  %v6311_v48 = vld [vmem:[#allocation23_spill] sm:$0xff]  ;;  %v5507_v30 = vld [vmem:[%s6159_s1 + $0x158] sm:$0xff] }
 0x473   : > { %2024 = vmatmul.f32.gmra.mxu3 %v5477_v59 }
 0x474   : > { %v5480_v40 = vpop.f32.mrf.mxu0 }
 0x475   : > { %6306 = vst [vmem:[#allocation17_spill] sm:$0xff] %v5480_v40 }
 0x476   : > { %v1977_v1 = vpop.f32.mrf.mxu3 }
 0x477   : > { %3640 = vmatmul.msk.f32.gmra.mxu1 %vm516_vm0, %v1977_v1  ;;  %2679 = vmatmul.f32.gmra.mxu0 %v6307_v11 }
 0x47b   : > { %2027 = vmatmul.f32.gmra.mxu3 %v5487_v0 }
 0x47c   : > { %v5490_v51 = vpop.f32.mrf.mxu0 }
 0x47d   : > { %6308 = vst [vmem:[#allocation10_spill] sm:$0xff] %v5490_v51 }
 0x47e   : > { %v1980_v46 = vpop.f32.mrf.mxu3 }
 0x47f   : > { %3641 = vmatmul.msk.f32.gmra.mxu1 %vm516_vm0, %v1980_v46  ;;  %2682 = vmatmul.f32.gmra.mxu0 %v6309_v9  ;;  %v6313_v46 = vld [vmem:[#allocation5_spill] sm:$0xff]  ;;  %v5517_v9 = vld [vmem:[%s6159_s1 + $0x160] sm:$0xff] }
 0x483   : > { %2030 = vmatmul.f32.gmra.mxu3 %v5497_v54 }
 0x484   : > { %v5500_v57 = vpop.f32.mrf.mxu0 }
 0x485   : > { %6310 = vst [vmem:[#allocation18_spill] sm:$0xff] %v5500_v57 }
 0x486   : > { %v1983_v24 = vpop.f32.mrf.mxu3 }
 0x487   : > { %3642 = vmatmul.msk.f32.gmra.mxu1 %vm516_vm0, %v1983_v24  ;;  %2685 = vmatmul.f32.gmra.mxu0 %v6311_v48  ;;  %v3665_v24 = vld [vmem:[%s6160_s2 + $0x28] sm:$0xff] }
 0x488   : > { %2391 = vmatpush.msra.mxu1 %v3665_v24 }
 0x48b   : > { %2033 = vmatmul.f32.gmra.mxu3 %v5507_v30 }
 0x48c   : > { %v5510_v1 = vpop.f32.mrf.mxu0 }
 0x48d   : > { %6312 = vst [vmem:[#allocation20_spill] sm:$0xff] %v5510_v1 }
 0x48e   : > { %v1986_v11 = vpop.f32.mrf.mxu3 }
 0x48f   : > { %3643 = vmatmul.msk.f32.gmra.mxu1 %vm516_vm0, %v1986_v11  ;;  %2688 = vmatmul.f32.gmra.mxu0 %v6313_v46  ;;  %v3664_v11 = vld [vmem:[%s6160_s2 + $0x20] sm:$0xff]  ;;  %v6315_v46 = vld [vmem:[#allocation15_spill] sm:$0xff] }
 0x490   : > { %2392 = vmatpush.msra.mxu1 %v3664_v11 }
 0x492   : > { %2914 = vmatpush.msrb.mxu1 %v5334_v27  ;;  %v5545_v27 = vld [vmem:[%s6159_s1 + $0x170] sm:$0xff] }
 0x493   : > { %2036 = vmatmul.f32.gmra.mxu3 %v5517_v9 }
 0x494   : > { %v5523_v48 = vpop.f32.mrf.mxu0  ;;  %2915 = vmatpush.msrb.mxu1 %v5345_v16 }
 0x495   : > { %6314 = vst [vmem:[#allocation3_spill] sm:$0xff] %v5523_v48  ;;  %v6317_v48 = vld [vmem:[#allocation16_spill] sm:$0xff] }
 0x496   : > { %v1989_v19 = vpop.f32.mrf.mxu3 }
 0x497   : > { %3644 = vmatmul.msk.f32.gmra.mxu1 %vm516_vm0, %v1989_v19  ;;  %2691 = vmatmul.f32.gmra.mxu0 %v6315_v46  ;;  %v6319_v46 = vld [vmem:[#allocation6_spill] sm:$0xff] }
 0x49b   : > { %2039 = vmatmul.f32.gmra.mxu3 %v5535_v3 }
 0x49c   : > { %v5538_v55 = vpop.f32.mrf.mxu0 }
 0x49d   : > { %6316 = vst [vmem:[#allocation24_spill] sm:$0xff] %v5538_v55 }
 0x49e   : > { %v1992_v52 = vpop.f32.mrf.mxu3 }
 0x49f   : > { %3645 = vmatmul.msk.f32.gmra.mxu1 %vm516_vm0, %v1992_v52  ;;  %2694 = vmatmul.f32.gmra.mxu0 %v6317_v48  ;;  %v5555_v52 = vld [vmem:[%s6159_s1 + $0x178] sm:$0xff] }
 0x4a3   : > { %2042 = vmatmul.f32.gmra.mxu3 %v5545_v27 }
 0x4a4   : > { %v5548_v16 = vpop.f32.mrf.mxu0 }
 0x4a5   : > { %6318 = vst [vmem:[#allocation11_spill] sm:$0xff] %v5548_v16 }
 0x4a6   : > { %v1995_v19 = vpop.f32.mrf.mxu3 }
 0x4a7   : > { %3646 = vmatmul.msk.f32.gmra.mxu1 %vm516_vm0, %v1995_v19  ;;  %2697 = vmatmul.f32.gmra.mxu0 %v6319_v46  ;;  %v5565_v19 = vld [vmem:[%s6159_s1 + $0x180] sm:$0xff] }
 0x4ab   : > { %2045 = vmatmul.f32.gmra.mxu3 %v5555_v52 }
 0x4ac   : > { %v5558_v48 = vpop.f32.mrf.mxu0 }
 0x4ad   : > { %6320 = vst [vmem:[#allocation12_spill] sm:$0xff] %v5558_v48 }
 0x4ae   : > { %v1998_v55 = vpop.f32.mrf.mxu3 }
 0x4af   : > { %3647 = vmatmul.msk.f32.gmra.mxu1 %vm516_vm0, %v1998_v55  ;;  %2700 = vmatmul.f32.gmra.mxu0 %v6321_v4  ;;  %v5577_v4 = vld [vmem:[%s6159_s1 + $0x188] sm:$0xff] }
 0x4b3   : > { %2048 = vmatmul.f32.gmra.mxu3 %v5565_v19 }
 0x4b4   : > { %v5568_v46 = vpop.f32.mrf.mxu1  ;;  %v5570_v16 = vpop.f32.mrf.mxu0 }
 0x4b6   : > { %v2001_v1 = vpop.f32.mrf.mxu3 }
 0x4b7   : > { %3666 = vmatmul.msk.f32.vlgmr.msra.gmra.mxu1 %vm516_vm0, %v2001_v1  ;;  %2703 = vmatmul.f32.gmra.mxu0 %v5161_v18  ;;  %v5589_v18 = vld [vmem:[%s6159_s1 + $0x190] sm:$0xff] }
 0x4b8   : > { %3142 = vmatpush.msra.mxu1 %v3665_v24 }
 0x4ba   : > { %3143 = vmatpush.msra.mxu1 %v3664_v11 }
 0x4bb   : > { %2051 = vmatmul.f32.gmra.mxu3 %v5577_v4 }
 0x4bc   : > { %v5580_v55 = vpop.f32.mrf.mxu1  ;;  %v5582_v48 = vpop.f32.mrf.mxu0 }
 0x4be   : > { %v2004_v29 = vpop.f32.mrf.mxu3 }
 0x4bf   : > { %3667 = vmatmul.msk.f32.gmra.mxu1 %vm516_vm0, %v2004_v29  ;;  %2706 = vmatmul.f32.gmra.mxu0 %v5174_v23  ;;  %v5601_v29 = vld [vmem:[%s6159_s1 + $0x198] sm:$0xff] }
 0x4c3   : > { %2054 = vmatmul.f32.gmra.mxu3 %v5589_v18 }
 0x4c4   : > { %v5592_v1 = vpop.f32.mrf.mxu1  ;;  %v5594_v24 = vpop.f32.mrf.mxu0 }
 0x4c6   : > { %v2007_v11 = vpop.f32.mrf.mxu3 }
 0x4c7   : > { %3668 = vmatmul.msk.f32.gmra.mxu1 %vm516_vm0, %v2007_v11  ;;  %2709 = vmatmul.f32.gmra.mxu0 %v5187_v50  ;;  %v5613_v50 = vld [vmem:[%s6159_s1 + $0x1a0] sm:$0xff] }
 0x4cb   : > { %2057 = vmatmul.f32.gmra.mxu3 %v5601_v29 }
 0x4cc   : > { %v5604_v23 = vpop.f32.mrf.mxu1  ;;  %v5606_v57 = vpop.f32.mrf.mxu0 }
 0x4ce   : > { %v2010_v26 = vpop.f32.mrf.mxu3 }
 0x4cf   : > { %3669 = vmatmul.msk.f32.gmra.mxu1 %vm516_vm0, %v2010_v26  ;;  %2712 = vmatmul.f32.gmra.mxu0 %v5201_v41  ;;  %v5625_v26 = vld [vmem:[%s6159_s1 + $0x1a8] sm:$0xff] }
 0x4d3   : > { %2060 = vmatmul.f32.gmra.mxu3 %v5613_v50 }
 0x4d4   : > { %v5616_v11 = vpop.f32.mrf.mxu1  ;;  %v5618_v51 = vpop.f32.mrf.mxu0 }
 0x4d6   : > { %v2013_v15 = vpop.f32.mrf.mxu3 }
 0x4d7   : > { %3670 = vmatmul.msk.f32.gmra.mxu1 %vm516_vm0, %v2013_v15  ;;  %2715 = vmatmul.f32.gmra.mxu0 %v5214_v8  ;;  %v5637_v15 = vld [vmem:[%s6159_s1 + $0x1b0] sm:$0xff] }
 0x4db   : > { %2063 = vmatmul.f32.gmra.mxu3 %v5625_v26 }
 0x4dc   : > { %v5628_v41 = vpop.f32.mrf.mxu1  ;;  %v5630_v40 = vpop.f32.mrf.mxu0 }
 0x4de   : > { %v2016_v35 = vpop.f32.mrf.mxu3 }
 0x4df   : > { %3671 = vmatmul.msk.f32.gmra.mxu1 %vm516_vm0, %v2016_v35  ;;  %2718 = vmatmul.f32.gmra.mxu0 %v5227_v45  ;;  %v5649_v35 = vld [vmem:[%s6159_s1 + $0x1b8] sm:$0xff] }
 0x4e3   : > { %2066 = vmatmul.f32.gmra.mxu3 %v5637_v15 }
 0x4e4   : > { %v5640_v8 = vpop.f32.mrf.mxu0  ;;  %v5642_v34 = vpop.f32.mrf.mxu1 }
 0x4e5   : > { %6322 = vst [vmem:[#allocation21_spill] sm:$0xff] %v5640_v8 }
 0x4e6   : > { %6323 = vst [vmem:[#allocation4_spill] sm:$0xff] %v5642_v34  ;;  %v2019_v49 = vpop.f32.mrf.mxu3 }
 0x4e7   : > { %3672 = vmatmul.msk.f32.gmra.mxu1 %vm516_vm0, %v2019_v49  ;;  %2721 = vmatmul.f32.gmra.mxu0 %v5240_v14  ;;  %v5661_v49 = vld [vmem:[%s6159_s1 + $0x1c0] sm:$0xff] }
 0x4eb   : > { %2069 = vmatmul.f32.gmra.mxu3 %v5649_v35 }
 0x4ec   : > { %v5652_v45 = vpop.f32.mrf.mxu0  ;;  %v5654_v22 = vpop.f32.mrf.mxu1 }
 0x4ed   : > { %6324 = vst [vmem:[#allocation26_spill] sm:$0xff] %v5652_v45 }
 0x4ee   : > { %v2022_v12 = vpop.f32.mrf.mxu3  ;;  %6325 = vst [vmem:[#allocation13_spill] sm:$0xff] %v5654_v22 }
 0x4ef   : > { %3673 = vmatmul.msk.f32.gmra.mxu1 %vm516_vm0, %v2022_v12  ;;  %2724 = vmatmul.f32.gmra.mxu0 %v5254_v6  ;;  %v5673_v6 = vld [vmem:[%s6159_s1 + $0x1c8] sm:$0xff] }
 0x4f3   : > { %2072 = vmatmul.f32.gmra.mxu3 %v5661_v49 }
 0x4f4   : > { %v5664_v14 = vpop.f32.mrf.mxu0  ;;  %v5668_v45 = vpop.f32.mrf.mxu1 }
 0x4f5   : > { %6326 = vst [vmem:[#allocation14_spill] sm:$0xff] %v5664_v14 }
 0x4f6   : > { %v2025_v8 = vpop.f32.mrf.mxu3  ;;  %6327 = vst [vmem:[#allocation23_spill] sm:$0xff] %v5668_v45 }
 0x4f7   : > { %3674 = vmatmul.msk.f32.gmra.mxu1 %vm516_vm0, %v2025_v8  ;;  %2727 = vmatmul.f32.gmra.mxu0 %v5267_v13  ;;  %v5685_v13 = vld [vmem:[%s6159_s1 + $0x1d0] sm:$0xff] }
 0x4fb   : > { %2075 = vmatmul.f32.gmra.mxu3 %v5673_v6 }
 0x4fc   : > { %v5676_v12 = vpop.f32.mrf.mxu0  ;;  %v5680_v14 = vpop.f32.mrf.mxu1 }
 0x4fd   : > { %6328 = vst [vmem:[#allocation5_spill] sm:$0xff] %v5676_v12 }
 0x4fe   : > { %v2028_v22 = vpop.f32.mrf.mxu3  ;;  %6329 = vst [vmem:[#allocation15_spill] sm:$0xff] %v5680_v14 }
 0x4ff   : > { %3675 = vmatmul.msk.f32.gmra.mxu1 %vm516_vm0, %v2028_v22  ;;  %2730 = vmatmul.f32.gmra.mxu0 %v5280_v56  ;;  %v5695_v22 = vld [vmem:[%s6159_s1 + $0x1d8] sm:$0xff] }
 0x503   : > { %2078 = vmatmul.f32.gmra.mxu3 %v5685_v13 }
 0x504   : > { %v5688_v8 = vpop.f32.mrf.mxu0  ;;  %v5700_v12 = vpop.f32.mrf.mxu1 }
 0x505   : > { %6330 = vst [vmem:[#allocation16_spill] sm:$0xff] %v5688_v8 }
 0x506   : > { %v2031_v45 = vpop.f32.mrf.mxu3  ;;  %6332 = vst [vmem:[#allocation33_spill] sm:$0xff] %v5700_v12 }
 0x507   : > { %3676 = vmatmul.msk.f32.gmra.mxu1 %vm516_vm0, %v2031_v45  ;;  %2733 = vmatmul.f32.gmra.mxu0 %v5294_v53  ;;  %v5707_v53 = vld [vmem:[%s6159_s1 + $0x1e0] sm:$0xff] }
 0x50b   : > { %2081 = vmatmul.f32.gmra.mxu3 %v5695_v22 }
 0x50c   : > { %v5698_v56 = vpop.f32.mrf.mxu0  ;;  %v5712_v34 = vpop.f32.mrf.mxu1 }
 0x50d   : > { %6331 = vst [vmem:[#allocation6_spill] sm:$0xff] %v5698_v56 }
 0x50e   : > { %v2034_v14 = vpop.f32.mrf.mxu3  ;;  %6334 = vst [vmem:[#allocation35_spill] sm:$0xff] %v5712_v34 }
 0x50f   : > { %3677 = vmatmul.msk.f32.gmra.mxu1 %vm516_vm0, %v2034_v14  ;;  %2736 = vmatmul.f32.gmra.mxu0 %v5311_v44  ;;  %v2849_v44 = vld [vmem:[%s6160_s2 + $0x8] sm:$0xff] }
 0x510   : > { %3027 = vmatpush.msrb.mxu2 %v2849_v44  ;;  %v5722_v14 = vld [vmem:[%s6159_s1 + $0x1e8] sm:$0xff] }
 0x513   : > { %2084 = vmatmul.f32.gmra.mxu3 %v5707_v53 }
 0x514   : > { %v5710_v45 = vpop.f32.mrf.mxu0 }
 0x515   : > { %6333 = vst [vmem:[#allocation34_spill] sm:$0xff] %v5710_v45 }
 0x516   : > { %v2037_v8 = vpop.f32.mrf.mxu3 }
 0x517   : > { %3678 = vmatmul.msk.f32.gmra.mxu1 %vm516_vm0, %v2037_v8  ;;  %2739 = vmatmul.f32.gmra.mxu0 %v5328_v5  ;;  %v5729_v5 = vpop.f32.mrf.mxu1  ;;  %v5734_v8 = vld [vmem:[%s6159_s1 + $0x1f0] sm:$0xff] }
 0x518   : > { %6336 = vst [vmem:[#allocation37_spill] sm:$0xff] %v5729_v5 }
 0x51b   : > { %2087 = vmatmul.f32.gmra.mxu3 %v5722_v14 }
 0x51c   : > { %v5725_v45 = vpop.f32.mrf.mxu0 }
 0x51d   : > { %6335 = vst [vmem:[#allocation36_spill] sm:$0xff] %v5725_v45 }
 0x51e   : > { %v2040_v56 = vpop.f32.mrf.mxu3 }
 0x51f   : > { %3679 = vmatmul.msk.f32.gmra.mxu1 %vm516_vm0, %v2040_v56  ;;  %2742 = vmatmul.f32.gmra.mxu0 %v5362_v10  ;;  %v5741_v45 = vpop.f32.mrf.mxu1  ;;  %v5746_v10 = vld [vmem:[%s6159_s1 + $0x1f8] sm:$0xff] }
 0x520   : > { %6338 = vst [vmem:[#allocation39_spill] sm:$0xff] %v5741_v45 }
 0x523   : > { %2090 = vmatmul.f32.gmra.mxu3 %v5734_v8 }
 0x524   : > { %v5737_v44 = vpop.f32.mrf.mxu0 }
 0x525   : > { %6337 = vst [vmem:[#allocation38_spill] sm:$0xff] %v5737_v44 }
 0x526   : > { %v2043_v34 = vpop.f32.mrf.mxu3 }
 0x527   : > { %3680 = vmatmul.msk.f32.gmra.mxu1 %vm516_vm0, %v2043_v34  ;;  %2745 = vmatmul.f32.gmra.mxu0 %v5375_v63  ;;  %v5754_v63 = vpop.f32.mrf.mxu1 }
 0x52b   : > { %2093 = vmatmul.f32.gmra.mxu3 %v5746_v10 }
 0x52c   : > { %v5749_v56 = vpop.f32.mrf.mxu0 }
 0x52d   : > { %6339 = vst [vmem:[#allocation40_spill] sm:$0xff] %v5749_v56 }
 0x52e   : > { %v2046_v5 = vpop.f32.mrf.mxu3 }
 0x52f   : > { %3681 = vmatmul.msk.f32.gmra.mxu1 %vm516_vm0, %v2046_v5  ;;  %2748 = vmatmul.f32.gmra.mxu0 %v5388_v33  ;;  %v5760_v12 = vpop.f32.mrf.mxu1 }
 0x533   : > { %2793 = vmatmul.f32.vlgmr.msra.gmra.mxu3 %v5545_v27 }
 0x534   : > { %v2704_v34 = vpop.f32.mrf.mxu0 }
 0x536   : > { %v2049_v44 = vpop.f32.mrf.mxu3 }
 0x537   : > { %3684 = vmatmul.msk.f32.vlgmr.msra.gmra.mxu2 %vm516_vm0, %v2049_v44  ;;  %3734 = vmatmul.msk.f32.vlgmr.msrb.gmra.mxu1 %vm516_vm0, %v2704_v34 }
 0x538   : > { %2751 = vmatmul.f32.gmra.mxu0 %v5397_v58  ;;  %v5769_v58 = vpop.f32.mrf.mxu1 }
 0x53b   : > { %2796 = vmatmul.f32.gmra.mxu3 %v5555_v52 }
 0x53c   : > { %v2707_v56 = vpop.f32.mrf.mxu0 }
 0x53e   : > { %v2052_v45 = vpop.f32.mrf.mxu3 }
 0x53f   : > { %3685 = vmatmul.msk.f32.gmra.mxu2 %vm516_vm0, %v2052_v45  ;;  %3735 = vmatmul.msk.f32.gmra.mxu1 %vm516_vm0, %v2707_v56 }
 0x540   : > { %2754 = vmatmul.f32.gmra.mxu0 %v5407_v47  ;;  %v5775_v47 = vpop.f32.mrf.mxu1 }
 0x543   : > { %2799 = vmatmul.f32.gmra.mxu3 %v5565_v19 }
 0x544   : > { %v2710_v33 = vpop.f32.mrf.mxu0 }
 0x546   : > { %v2055_v27 = vpop.f32.mrf.mxu3 }
 0x547   : > { %3686 = vmatmul.msk.f32.gmra.mxu2 %vm516_vm0, %v2055_v27  ;;  %3736 = vmatmul.msk.f32.gmra.mxu1 %vm516_vm0, %v2710_v33 }
 0x548   : > { %2757 = vmatmul.f32.gmra.mxu0 %v5417_v43  ;;  %v2848_v43 = vld [vmem:[%s6160_s2] sm:$0xff] }
 0x549   : > { %3028 = vmatpush.msrb.mxu2 %v2848_v43 }
 0x54b   : > { %2802 = vmatmul.f32.gmra.mxu3 %v5577_v4  ;;  %v5785_v4 = vpop.f32.mrf.mxu1 }
 0x54c   : > { %v2713_v52 = vpop.f32.mrf.mxu0 }
 0x54e   : > { %v2058_v45 = vpop.f32.mrf.mxu3 }
 0x54f   : > { %3687 = vmatmul.msk.f32.gmra.mxu2 %vm516_vm0, %v2058_v45  ;;  %3737 = vmatmul.msk.f32.gmra.mxu1 %vm516_vm0, %v2713_v52 }
 0x550   : > { %2760 = vmatmul.f32.gmra.mxu0 %v5427_v32 }
 0x553   : > { %2805 = vmatmul.f32.gmra.mxu3 %v5589_v18  ;;  %v5791_v34 = vpop.f32.mrf.mxu1 }
 0x554   : > { %v2716_v19 = vpop.f32.mrf.mxu0 }
 0x556   : > { %v2061_v5 = vpop.f32.mrf.mxu3 }
 0x557   : > { %3688 = vmatmul.msk.f32.gmra.mxu2 %vm516_vm0, %v2061_v5  ;;  %3738 = vmatmul.msk.f32.gmra.mxu1 %vm516_vm0, %v2716_v19 }
 0x558   : > { %2763 = vmatmul.f32.gmra.mxu0 %v5437_v2 }
 0x55b   : > { %2808 = vmatmul.f32.gmra.mxu3 %v5601_v29 }
 0x55c   : > { %v2719_v32 = vpop.f32.mrf.mxu0 }
 0x55e   : > { %v2064_v44 = vpop.f32.mrf.mxu3 }
 0x55f   : > { %3689 = vmatmul.msk.f32.gmra.mxu2 %vm516_vm0, %v2064_v44  ;;  %3739 = vmatmul.msk.f32.gmra.mxu1 %vm516_vm0, %v2719_v32 }
 0x560   : > { %2766 = vmatmul.f32.gmra.mxu0 %v5447_v36  ;;  %v5800_v36 = vpop.f32.mrf.mxu1 }
 0x563   : > { %2811 = vmatmul.f32.gmra.mxu3 %v5613_v50 }
 0x564   : > { %v2722_v18 = vpop.f32.mrf.mxu0 }
 0x566   : > { %v2067_v56 = vpop.f32.mrf.mxu3 }
 0x567   : > { %3690 = vmatmul.msk.f32.gmra.mxu2 %vm516_vm0, %v2067_v56  ;;  %3740 = vmatmul.msk.f32.gmra.mxu1 %vm516_vm0, %v2722_v18 }
 0x568   : > { %2769 = vmatmul.f32.gmra.mxu0 %v5457_v21  ;;  %v5806_v21 = vpop.f32.mrf.mxu1 }
 0x56b   : > { %2814 = vmatmul.f32.gmra.mxu3 %v5625_v26 }
 0x56c   : > { %v2725_v2 = vpop.f32.mrf.mxu0 }
 0x56e   : > { %v2070_v29 = vpop.f32.mrf.mxu3 }
 0x56f   : > { %3691 = vmatmul.msk.f32.gmra.mxu2 %vm516_vm0, %v2070_v29  ;;  %3741 = vmatmul.msk.f32.gmra.mxu1 %vm516_vm0, %v2725_v2 }
 0x570   : > { %2772 = vmatmul.f32.gmra.mxu0 %v5467_v31 }
 0x573   : > { %2817 = vmatmul.f32.gmra.mxu3 %v5637_v15  ;;  %v5813_v15 = vpop.f32.mrf.mxu1 }
 0x574   : > { %v2728_v50 = vpop.f32.mrf.mxu0 }
 0x576   : > { %v2073_v33 = vpop.f32.mrf.mxu3 }
 0x577   : > { %3692 = vmatmul.msk.f32.gmra.mxu2 %vm516_vm0, %v2073_v33  ;;  %3742 = vmatmul.msk.f32.gmra.mxu1 %vm516_vm0, %v2728_v50 }
 0x578   : > { %2775 = vmatmul.f32.gmra.mxu0 %v5477_v59 }
 0x57b   : > { %2820 = vmatmul.f32.gmra.mxu3 %v5649_v35  ;;  %v5819_v45 = vpop.f32.mrf.mxu1 }
 0x57c   : > { %v2731_v26 = vpop.f32.mrf.mxu0 }
 0x57e   : > { %v2076_v27 = vpop.f32.mrf.mxu3 }
 0x57f   : > { %3693 = vmatmul.msk.f32.gmra.mxu2 %vm516_vm0, %v2076_v27  ;;  %3743 = vmatmul.msk.f32.gmra.mxu1 %vm516_vm0, %v2731_v26 }
 0x580   : > { %2778 = vmatmul.f32.gmra.mxu0 %v5487_v0 }
 0x583   : > { %2823 = vmatmul.f32.gmra.mxu3 %v5661_v49 }
 0x584   : > { %v2734_v31 = vpop.f32.mrf.mxu0 }
 0x586   : > { %v2079_v52 = vpop.f32.mrf.mxu3 }
 0x587   : > { %3694 = vmatmul.msk.f32.gmra.mxu2 %vm516_vm0, %v2079_v52  ;;  %3744 = vmatmul.msk.f32.gmra.mxu1 %vm516_vm0, %v2734_v31 }
 0x588   : > { %2781 = vmatmul.f32.gmra.mxu0 %v5497_v54  ;;  %v3785_v54 = vld [vmem:[%s6160_s2 + $0x38] sm:$0xff] }
 0x589   : > { %3273 = vmatpush.msra.mxu2 %v3785_v54 }
 0x58b   : > { %2826 = vmatmul.f32.gmra.mxu3 %v5673_v6  ;;  %v5831_v6 = vpop.f32.mrf.mxu1  ;;  %3274 = vmatpush.msra.mxu2 %v5354_v61 }
 0x58c   : > { %v2737_v59 = vpop.f32.mrf.mxu0 }
 0x58e   : > { %v2082_v35 = vpop.f32.mrf.mxu3 }
 0x58f   : > { %3695 = vmatmul.msk.f32.gmra.mxu2 %vm516_vm0, %v2082_v35  ;;  %3745 = vmatmul.msk.f32.gmra.mxu1 %vm516_vm0, %v2737_v59 }
 0x590   : > { %2784 = vmatmul.f32.gmra.mxu0 %v5507_v30 }
 0x593   : > { %2829 = vmatmul.f32.gmra.mxu3 %v5685_v13  ;;  %v5838_v19 = vpop.f32.mrf.mxu1 }
 0x594   : > { %v2740_v0 = vpop.f32.mrf.mxu0 }
 0x596   : > { %v2085_v49 = vpop.f32.mrf.mxu3 }
 0x597   : > { %3696 = vmatmul.msk.f32.gmra.mxu2 %vm516_vm0, %v2085_v49  ;;  %3746 = vmatmul.msk.f32.gmra.mxu1 %vm516_vm0, %v2740_v0  ;;  %v2295_v0 = vadd.f32 %v5450_v42, %v5628_v41  ;;  %v6343_v41 = vld [vmem:[#allocation21_spill] sm:$0xff] }
 0x598   : > { %2787 = vmatmul.f32.gmra.mxu0 %v5517_v9 }
 0x59b   : > { %2832 = vmatmul.f32.gmra.mxu3 %v5695_v22  ;;  %v5844_v22 = vpop.f32.mrf.mxu1 }
 0x59c   : > { %v2743_v30 = vpop.f32.mrf.mxu0 }
 0x59e   : > { %v2088_v13 = vpop.f32.mrf.mxu3 }
 0x59f   : > { %3697 = vmatmul.msk.f32.gmra.mxu2 %vm516_vm0, %v2088_v13  ;;  %3747 = vmatmul.msk.f32.gmra.mxu1 %vm516_vm0, %v2743_v30  ;;  %v6341_v13 = vld [vmem:[#allocation4_spill] sm:$0xff] }
 0x5a0   : > { %2790 = vmatmul.f32.gmra.mxu0 %v5535_v3 }
 0x5a3   : > { %2835 = vmatmul.f32.gmra.mxu3 %v5707_v53  ;;  %v2280_v53 = vadd.f32 %v5400_v60, %v5568_v46  ;;  %v5851_v32 = vpop.f32.mrf.mxu1  ;;  %v2283_v60 = vadd.f32 %v5410_v39, %v5580_v55  ;;  %v2286_v39 = vadd.f32 %v5420_v17, %v5592_v1  ;;  %v2289_v17 = vadd.f32 %v5430_v62, %v5604_v23 }
 0x5a4   : > { %v2746_v9 = vpop.f32.mrf.mxu0  ;;  %v2292_v62 = vadd.f32 %v5440_v7, %v5616_v11  ;;  %v2447_v7 = vadd.f32 %v5806_v21, %v2295_v0 }
 0x5a5   : > { %v2445_v1 = vadd.f32 %v5791_v34, %v2289_v17  ;;  %v6352_v17 = vld [vmem:[#allocation30_spill] sm:$0xff] }
 0x5a6   : > { %v2091_v5 = vpop.f32.mrf.mxu3 }
 0x5a7   : > { %3698 = vmatmul.msk.f32.gmra.mxu2 %vm516_vm0, %v2091_v5  ;;  %3748 = vmatmul.msk.f32.gmra.mxu1 %vm516_vm0, %v2746_v9  ;;  %v6342_v9 = vld [vmem:[#allocation9_spill] sm:$0xff] }
 0x5a8   : > { %v2298_v42 = vadd.f32 %v6342_v9, %v6341_v13 }
 0x5ab   : > { %2838 = vmatmul.f32.gmra.mxu3 %v5722_v14  ;;  %v2442_v14 = vadd.f32 %v5769_v58, %v2280_v53  ;;  %v5867_v46 = vpop.f32.mrf.mxu1 }
 0x5ac   : > { %v2749_v61 = vpop.f32.mrf.mxu0 }
 0x5ae   : > { %v2094_v43 = vpop.f32.mrf.mxu3 }
 0x5af   : > { %3699 = vmatmul.msk.f32.gmra.mxu2 %vm516_vm0, %v2094_v43  ;;  %3749 = vmatmul.msk.f32.gmra.mxu1 %vm516_vm0, %v2749_v61  ;;  %v6344_v43 = vld [vmem:[#allocation28_spill] sm:$0xff] }
 0x5b3   : > { %2841 = vmatmul.f32.gmra.mxu3 %v5734_v8 }
 0x5b5   : > { %v2752_v3 = vpop.f32.mrf.mxu0 }
 0x5b6   : > { %v2794_v0 = vpop.f32.mrf.mxu3 }
 0x5b7   : > { %3750 = vmatmul.msk.f32.vlgmr.msrb.gmra.mxu2 %vm516_vm0, %v5570_v16  ;;  %3768 = vmatmul.msk.f32.vlgmr.msra.gmra.mxu1 %vm516_vm0, %v2752_v3  ;;  %v2443_v16 = vadd.f32 %v5775_v47, %v2283_v60  ;;  %v5878_v47 = vpop.f32.mrf.mxu1 }
 0x5ba   : > { %v2525_v44 = vpop.f32.mrf.mxu2 }
 0x5bb   : > { %v2573_v18 = vadd.f32 %v2525_v44, %v2442_v14  ;;  %2844 = vmatmul.f32.gmra.mxu3 %v5746_v10  ;;  %v6345_v14 = vld [vmem:[#allocation13_spill] sm:$0xff] }
 0x5bc   : > { %v6346_v44 = vld [vmem:[#allocation25_spill] sm:$0xff] }
 0x5bd   : > { %v2589_v8 = vadd.f32 %v2573_v18, %v4729_v25  ;;  %v2755_v56 = vpop.f32.mrf.mxu0  ;;  %v2301_v18 = vadd.f32 %v6346_v44, %v6345_v14  ;;  %v6363_v14 = vld [vmem:[#allocation6_spill] sm:$0xff] }
 0x5bf   : > { %3700 = vst.msk [vmem:[%s4738_s24 + $0x100] sm:$0xff] %vm1103_vm1, %v2589_v8  ;;  %3751 = vmatmul.msk.f32.gmra.mxu2 %vm516_vm0, %v5582_v48  ;;  %3769 = vmatmul.msk.f32.gmra.mxu1 %vm516_vm0, %v2755_v56  ;;  %v2444_v48 = vadd.f32 %v5785_v4, %v2286_v39  ;;  %v5889_v27 = vpop.f32.mrf.mxu1  ;;  %v6347_v8 = vld [vmem:[#allocation26_spill] sm:$0xff]  ;;  %v6350_v39 = vld [vmem:[#allocation17_spill] sm:$0xff] }
 0x5c2   : > { %v2528_v58 = vpop.f32.mrf.mxu2 }
 0x5c3   : > { %v2574_v10 = vadd.f32 %v2528_v58, %v2443_v16  ;;  %v6348_v58 = vld [vmem:[#allocation29_spill] sm:$0xff] }
 0x5c5   : > { %v2590_v2 = vadd.f32 %v2574_v10, %v4753_v20  ;;  %v2758_v29 = vpop.f32.mrf.mxu0 }
 0x5c7   : > { %3701 = vst.msk [vmem:[%s4738_s24 + $0x108] sm:$0xff] %vm1103_vm1, %v2590_v2  ;;  %3752 = vmatmul.msk.f32.gmra.mxu2 %vm516_vm0, %v5594_v24  ;;  %3770 = vmatmul.msk.f32.gmra.mxu1 %vm516_vm0, %v2758_v29  ;;  %v5903_v49 = vpop.f32.mrf.mxu1  ;;  %v6349_v29 = vld [vmem:[#allocation23_spill] sm:$0xff] }
 0x5ca   : > { %v2531_v55 = vpop.f32.mrf.mxu2 }
 0x5cb   : > { %v2575_v50 = vadd.f32 %v2531_v55, %v2444_v48  ;;  %v2304_v48 = vadd.f32 %v6350_v39, %v6349_v29  ;;  %v6351_v55 = vld [vmem:[#allocation14_spill] sm:$0xff]  ;;  %v6366_v29 = vld [vmem:[#allocation3_spill] sm:$0xff] }
 0x5cd   : > { %v2591_v33 = vadd.f32 %v2575_v50, %v4765_v28  ;;  %v2761_v26 = vpop.f32.mrf.mxu0 }
 0x5cf   : > { %3702 = vst.msk [vmem:[%s4738_s24 + $0x110] sm:$0xff] %vm1103_vm1, %v2591_v33  ;;  %3753 = vmatmul.msk.f32.gmra.mxu2 %vm516_vm0, %v5606_v57  ;;  %3771 = vmatmul.msk.f32.gmra.mxu1 %vm516_vm0, %v2761_v26  ;;  %v2446_v57 = vadd.f32 %v5800_v36, %v2292_v62  ;;  %v6340_v36 = vld [vmem:[#allocation27_spill] sm:$0xff]  ;;  %v5920_v5 = vpop.f32.mrf.mxu1  ;;  %v6355_v62 = vld [vmem:[#allocation5_spill] sm:$0xff] }
 0x5d2   : > { %v2534_v24 = vpop.f32.mrf.mxu2 }
 0x5d3   : > { %v2576_v4 = vadd.f32 %v2534_v24, %v2445_v1 }
 0x5d5   : > { %v2592_v31 = vadd.f32 %v2576_v4, %v4783_v38  ;;  %v2764_v52 = vpop.f32.mrf.mxu0  ;;  %v6353_v4 = vld [vmem:[#allocation15_spill] sm:$0xff] }
 0x5d7   : > { %3703 = vst.msk [vmem:[%s4738_s24 + $0x118] sm:$0xff] %vm1103_vm1, %v2592_v31  ;;  %3754 = vmatmul.msk.f32.gmra.mxu2 %vm516_vm0, %v5618_v51  ;;  %3772 = vmatmul.msk.f32.gmra.mxu1 %vm516_vm0, %v2764_v52  ;;  %v5931_v60 = vpop.f32.mrf.mxu1  ;;  %v6354_v31 = vld [vmem:[#allocation10_spill] sm:$0xff] }
 0x5d8   : > { %v2307_v52 = vadd.f32 %v6354_v31, %v6353_v4  ;;  %v6369_v4 = vld [vmem:[#allocation39_spill] sm:$0xff]  ;;  %v6370_v31 = vld [vmem:[#allocation24_spill] sm:$0xff] }
 0x5da   : > { %v2537_v23 = vpop.f32.mrf.mxu2 }
 0x5db   : > { %v2577_v34 = vadd.f32 %v2537_v23, %v2446_v57 }
 0x5dd   : > { %v2593_v59 = vadd.f32 %v2577_v34, %v4795_v37  ;;  %v2767_v35 = vpop.f32.mrf.mxu0  ;;  %v6356_v34 = vld [vmem:[#allocation31_spill] sm:$0xff] }
 0x5df   : > { %3704 = vst.msk [vmem:[%s4738_s24 + $0x120] sm:$0xff] %vm1103_vm1, %v2593_v59  ;;  %3755 = vmatmul.msk.f32.gmra.mxu2 %vm516_vm0, %v5630_v40  ;;  %3773 = vmatmul.msk.f32.gmra.mxu1 %vm516_vm0, %v2767_v35  ;;  %v2448_v40 = vadd.f32 %v5813_v15, %v2298_v42  ;;  %v2449_v15 = vadd.f32 %v5819_v45, %v2301_v18  ;;  %v5942_v26 = vpop.f32.mrf.mxu1  ;;  %v6360_v42 = vld [vmem:[#allocation32_spill] sm:$0xff] }
 0x5e0   : > { %v2450_v45 = vadd.f32 %v5831_v6, %v2304_v48  ;;  %v2451_v6 = vadd.f32 %v5838_v19, %v2307_v52  ;;  %v6367_v48 = vld [vmem:[#allocation34_spill] sm:$0xff]  ;;  %v2319_v52 = vadd.f32 %v6370_v31, %v6369_v4 }
 0x5e2   : > { %v2540_v51 = vpop.f32.mrf.mxu2 }
 0x5e3   : > { %v2578_v11 = vadd.f32 %v2540_v51, %v2447_v7  ;;  %v6357_v7 = vld [vmem:[#allocation33_spill] sm:$0xff]  ;;  %v6358_v51 = vld [vmem:[#allocation18_spill] sm:$0xff] }
 0x5e5   : > { %v2594_v54 = vadd.f32 %v2578_v11, %v6340_v36  ;;  %v2770_v30 = vpop.f32.mrf.mxu0  ;;  %v2310_v11 = vadd.f32 %v6358_v51, %v6357_v7  ;;  %v6373_v51 = vld [vmem:[#allocation11_spill] sm:$0xff] }
 0x5e7   : > { %3705 = vst.msk [vmem:[%s4738_s24 + $0x128] sm:$0xff] %vm1103_vm1, %v2594_v54  ;;  %3756 = vmatmul.msk.f32.gmra.mxu2 %vm516_vm0, %v6343_v41  ;;  %3774 = vmatmul.msk.f32.gmra.mxu1 %vm516_vm0, %v2770_v30  ;;  %v5956_v54 = vpop.f32.mrf.mxu1  ;;  %v6359_v30 = vld [vmem:[#allocation16_spill] sm:$0xff]  ;;  %v2452_v19 = vadd.f32 %v5844_v22, %v2310_v11  ;;  %v2322_v11 = vadd.f32 %v6373_v51, %v5754_v63 }
 0x5e8   : > { %v6377_v63 = vld [vmem:[#allocation40_spill] sm:$0xff] }
 0x5ea   : > { %v2543_v21 = vpop.f32.mrf.mxu2 }
 0x5eb   : > { %v2579_v61 = vadd.f32 %v2543_v21, %v2448_v40  ;;  %v2797_v21 = vpop.f32.mrf.mxu3 }
 0x5ed   : > { %v2595_v3 = vadd.f32 %v2579_v61, %v6344_v43  ;;  %v2773_v53 = vpop.f32.mrf.mxu0  ;;  %v6361_v61 = vld [vmem:[#allocation35_spill] sm:$0xff] }
 0x5ef   : > { %3706 = vst.msk [vmem:[%s4738_s24 + $0x130] sm:$0xff] %vm1103_vm1, %v2595_v3  ;;  %3757 = vmatmul.msk.f32.gmra.mxu2 %vm516_vm0, %v6347_v8  ;;  %3775 = vmatmul.msk.f32.gmra.mxu1 %vm516_vm0, %v2773_v53  ;;  %v6362_v3 = vld [vmem:[#allocation20_spill] sm:$0xff]  ;;  %v5973_v22 = vpop.f32.mrf.mxu1 }
 0x5f0   : > { %v2313_v53 = vadd.f32 %v6362_v3, %v6361_v61  ;;  %v6376_v61 = vld [vmem:[#allocation12_spill] sm:$0xff] }
 0x5f1   : > { %v2325_v3 = vadd.f32 %v6376_v61, %v5760_v12 }
 0x5f2   : > { %v2546_v56 = vpop.f32.mrf.mxu2  ;;  %v2453_v44 = vadd.f32 %v5851_v32, %v2313_v53 }
 0x5f3   : > { %v2580_v16 = vadd.f32 %v2546_v56, %v2449_v15  ;;  %v6364_v15 = vld [vmem:[#allocation7_spill] sm:$0xff] }
 0x5f5   : > { %v2596_v10 = vadd.f32 %v2580_v16, %v6348_v58  ;;  %v2776_v2 = vpop.f32.mrf.mxu0 }
 0x5f7   : > { %3707 = vst.msk [vmem:[%s4738_s24 + $0x138] sm:$0xff] %vm1103_vm1, %v2596_v10  ;;  %3758 = vmatmul.msk.f32.gmra.mxu2 %vm516_vm0, %v6351_v55  ;;  %3776 = vmatmul.msk.f32.gmra.mxu1 %vm516_vm0, %v2776_v2  ;;  %v2800_v10 = vpop.f32.mrf.mxu3  ;;  %v6365_v2 = vld [vmem:[#allocation37_spill] sm:$0xff] }
 0x5f8   : > { %v2316_v39 = vadd.f32 %v6366_v29, %v6365_v2 }
 0x5fa   : > { %v2549_v50 = vpop.f32.mrf.mxu2  ;;  %v2454_v32 = vadd.f32 %v5867_v46, %v2316_v39  ;;  %v2455_v46 = vadd.f32 %v5878_v47, %v2319_v52  ;;  %v2456_v47 = vadd.f32 %v5889_v27, %v2322_v11 }
 0x5fb   : > { %v2581_v33 = vadd.f32 %v2549_v50, %v2450_v45  ;;  %v5984_v45 = vpop.f32.mrf.mxu1 }
 0x5fd   : > { %v2597_v1 = vadd.f32 %v2581_v33, %v6352_v17  ;;  %v2779_v24 = vpop.f32.mrf.mxu0  ;;  %v6368_v33 = vld [vmem:[#allocation8_spill] sm:$0xff] }
 0x5ff   : > { %3708 = vst.msk [vmem:[%s4738_s24 + $0x140] sm:$0xff] %vm1103_vm1, %v2597_v1  ;;  %3759 = vmatmul.msk.f32.gmra.mxu2 %vm516_vm0, %v6355_v62  ;;  %3777 = vmatmul.msk.f32.gmra.mxu1 %vm516_vm0, %v2779_v24  ;;  %v6371_v62 = vld [vmem:[#allocation36_spill] sm:$0xff] }
 0x602   : > { %v2552_v57 = vpop.f32.mrf.mxu2 }
 0x603   : > { %v2582_v23 = vadd.f32 %v2552_v57, %v2451_v6  ;;  %v2803_v6 = vpop.f32.mrf.mxu3 }
 0x605   : > { %v2598_v59 = vadd.f32 %v2582_v23, %v6356_v34  ;;  %v2782_v35 = vpop.f32.mrf.mxu0 }
 0x607   : > { %3709 = vst.msk [vmem:[%s4738_s24 + $0x148] sm:$0xff] %vm1103_vm1, %v2598_v59  ;;  %3760 = vmatmul.msk.f32.gmra.mxu2 %vm516_vm0, %v6359_v30  ;;  %3778 = vmatmul.msk.f32.gmra.mxu1 %vm516_vm0, %v2782_v35  ;;  %v5995_v59 = vpop.f32.mrf.mxu1  ;;  %v6372_v35 = vld [vmem:[#allocation19_spill] sm:$0xff]  ;;  %v6374_v30 = vld [vmem:[#allocation38_spill] sm:$0xff] }
 0x60a   : > { %v2555_v13 = vpop.f32.mrf.mxu2 }
 0x60b   : > { %v2583_v9 = vadd.f32 %v2555_v13, %v2452_v19  ;;  %v2806_v13 = vpop.f32.mrf.mxu3 }
 0x60d   : > { %v2599_v41 = vadd.f32 %v2583_v9, %v6360_v42  ;;  %v2785_v40 = vpop.f32.mrf.mxu0 }
 0x60f   : > { %3710 = vst.msk [vmem:[%s4738_s24 + $0x150] sm:$0xff] %vm1103_vm1, %v2599_v41  ;;  %3761 = vmatmul.msk.f32.gmra.mxu2 %vm516_vm0, %v6363_v14  ;;  %3779 = vmatmul.msk.f32.gmra.mxu1 %vm516_vm0, %v2785_v40  ;;  %v6375_v41 = vld [vmem:[#allocation2_spill] sm:$0xff]  ;;  %v6009_v53 = vpop.f32.mrf.mxu1 }
 0x612   : > { %v2558_v18 = vpop.f32.mrf.mxu2 }
 0x613   : > { %v2584_v8 = vadd.f32 %v2558_v18, %v2453_v44  ;;  %v2809_v44 = vpop.f32.mrf.mxu3  ;;  %v6378_v18 = vld [vmem:[#allocation22_spill] sm:$0xff] }
 0x615   : > { %v2600_v56 = vadd.f32 %v2584_v8, %v6364_v15  ;;  %v2788_v16 = vpop.f32.mrf.mxu0 }
 0x617   : > { %3711 = vst.msk [vmem:[%s4738_s24 + $0x158] sm:$0xff] %vm1103_vm1, %v2600_v56  ;;  %3762 = vmatmul.msk.f32.gmra.mxu2 %vm516_vm0, %v6367_v48  ;;  %3780 = vmatmul.msk.f32.gmra.mxu1 %vm516_vm0, %v2788_v16 }
 0x61a   : > { %v2561_v55 = vpop.f32.mrf.mxu2 }
 0x61b   : > { %v2585_v50 = vadd.f32 %v2561_v55, %v2454_v32  ;;  %v2812_v56 = vpop.f32.mrf.mxu3 }
 0x61d   : > { %v2601_v1 = vadd.f32 %v2585_v50, %v6368_v33  ;;  %v2791_v24 = vpop.f32.mrf.mxu0 }
 0x61f   : > { %3712 = vst.msk [vmem:[%s4738_s24 + $0x160] sm:$0xff] %vm1103_vm1, %v2601_v1  ;;  %3763 = vmatmul.msk.f32.gmra.mxu2 %vm516_vm0, %v6371_v62  ;;  %3781 = vmatmul.msk.f32.gmra.mxu1 %vm516_vm0, %v2791_v24 }
 0x622   : > { %v2564_v57 = vpop.f32.mrf.mxu2 }
 0x623   : > { %v2586_v23 = vadd.f32 %v2564_v57, %v2455_v46  ;;  %v2815_v2 = vpop.f32.mrf.mxu3 }
 0x625   : > { %v2602_v7 = vadd.f32 %v2586_v23, %v6372_v35 }
 0x627   : > { %3713 = vst.msk [vmem:[%s4738_s24 + $0x168] sm:$0xff] %vm1103_vm1, %v2602_v7  ;;  %3764 = vmatmul.msk.f32.gmra.mxu2 %vm516_vm0, %v6374_v30  ;;  %3782 = vmatmul.msk.f32.gmra.mxu1 %vm516_vm0, %v2794_v0  ;;  %v2457_v0 = vadd.f32 %v5903_v49, %v2325_v3 }
 0x62a   : > { %v2567_v19 = vpop.f32.mrf.mxu2 }
 0x62b   : > { %v2587_v9 = vadd.f32 %v2567_v19, %v2456_v47  ;;  %v2818_v39 = vpop.f32.mrf.mxu3 }
 0x62d   : > { %v2603_v40 = vadd.f32 %v2587_v9, %v6375_v41 }
 0x62f   : > { %3714 = vst.msk [vmem:[%s4738_s24 + $0x170] sm:$0xff] %vm1103_vm1, %v2603_v40  ;;  %3765 = vmatmul.msk.f32.gmra.mxu2 %vm516_vm0, %v6377_v63  ;;  %3783 = vmatmul.msk.f32.gmra.mxu1 %vm516_vm0, %v2797_v21  ;;  %v6023_v21 = vpop.f32.mrf.mxu1 }
 0x632   : > { %v2570_v27 = vpop.f32.mrf.mxu2 }
 0x633   : > { %v2588_v14 = vadd.f32 %v2570_v27, %v2457_v0  ;;  %v2821_v32 = vpop.f32.mrf.mxu3 }
 0x635   : > { %v2604_v8 = vadd.f32 %v2588_v14, %v6378_v18 }
 0x637   : > { %3715 = vst.msk [vmem:[%s4738_s24 + $0x178] sm:$0xff] %vm1103_vm1, %v2604_v8  ;;  %3786 = vmatmul.msk.f32.vlgmr.msra.gmra.mxu2 %vm516_vm0, %v2800_v10  ;;  %v6028_v48 = vpop.f32.mrf.mxu1 }
 0x63a   : > { %v3030_v12 = vpop.f32.mrf.mxu2 }
 0x63b   : > { %v2824_v1 = vpop.f32.mrf.mxu3  ;;  %v3031_v8 = vadd.f32 %v3030_v12, %v5920_v5 }
 0x63f   : > { %3787 = vmatmul.msk.f32.gmra.mxu2 %vm516_vm0, %v2803_v6  ;;  %v6033_v55 = vpop.f32.mrf.mxu1 }
 0x642   : > { %v3033_v16 = vpop.f32.mrf.mxu2 }
 0x643   : > { %v2827_v31 = vpop.f32.mrf.mxu3 }
 0x647   : > { %3788 = vmatmul.msk.f32.gmra.mxu2 %vm516_vm0, %v2806_v13  ;;  %v6039_v24 = vpop.f32.mrf.mxu1 }
 0x64a   : > { %v3036_v49 = vpop.f32.mrf.mxu2 }
 0x64b   : > { %v2830_v46 = vpop.f32.mrf.mxu3 }
 0x64f   : > { %3789 = vmatmul.msk.f32.gmra.mxu2 %vm516_vm0, %v2809_v44  ;;  %v6044_v52 = vpop.f32.mrf.mxu1 }
 0x652   : > { %v6026_v29 = vpop.f32.mrf.mxu2 }
 0x653   : > { %v2833_v7 = vpop.f32.mrf.mxu3 }
 0x657   : > { %3790 = vmatmul.msk.f32.gmra.mxu2 %vm516_vm0, %v2812_v56  ;;  %v6051_v57 = vpop.f32.mrf.mxu1 }
 0x65a   : > { %v6031_v10 = vpop.f32.mrf.mxu2 }
 0x65b   : > { %v2836_v30 = vpop.f32.mrf.mxu3 }
 0x65f   : > { %3791 = vmatmul.msk.f32.gmra.mxu2 %vm516_vm0, %v2815_v2  ;;  %v6056_v51 = vpop.f32.mrf.mxu1 }
 0x662   : > { %v6036_v50 = vpop.f32.mrf.mxu2 }
 0x663   : > { %v2839_v13 = vpop.f32.mrf.mxu3 }
 0x667   : > { %3792 = vmatmul.msk.f32.gmra.mxu2 %vm516_vm0, %v2818_v39  ;;  %v6062_v47 = vpop.f32.mrf.mxu1 }
 0x66a   : > { %v6041_v4 = vpop.f32.mrf.mxu2 }
 0x66b   : > { %v2842_v3 = vpop.f32.mrf.mxu3 }
 0x66f   : > { %3793 = vmatmul.msk.f32.gmra.mxu2 %vm516_vm0, %v2821_v32  ;;  %v3145_v9 = vpop.f32.mrf.mxu1 }
 0x670   : > { %v3193_v2 = vadd.f32 %v3145_v9, %v3031_v8 }
 0x672   : > { %v6046_v62 = vpop.f32.mrf.mxu2 }
 0x673   : > { %v2845_v27 = vpop.f32.mrf.mxu3 }
 0x677   : > { %3794 = vmatmul.msk.f32.gmra.mxu2 %vm516_vm0, %v2824_v1  ;;  %v3148_v63 = vpop.f32.mrf.mxu1  ;;  %v3034_v1 = vadd.f32 %v3033_v16, %v5931_v60 }
 0x67a   : > { %v6049_v6 = vpop.f32.mrf.mxu2 }
 0x67f   : > { %3795 = vmatmul.msk.f32.gmra.mxu2 %vm516_vm0, %v2827_v31  ;;  %v3151_v14 = vpop.f32.mrf.mxu1 }
 0x682   : > { %v6054_v23 = vpop.f32.mrf.mxu2 }
 0x687   : > { %3796 = vmatmul.msk.f32.gmra.mxu2 %vm516_vm0, %v2830_v46  ;;  %v3154_v56 = vpop.f32.mrf.mxu1  ;;  %v3194_v46 = vadd.f32 %v3148_v63, %v3034_v1 }
 0x68a   : > { %v6059_v11 = vpop.f32.mrf.mxu2 }
 0x68f   : > { %3797 = vmatmul.msk.f32.gmra.mxu2 %vm516_vm0, %v2833_v7  ;;  %v3157_v7 = vpop.f32.mrf.mxu1 }
 0x692   : > { %v6064_v19 = vpop.f32.mrf.mxu2 }
 0x697   : > { %3798 = vmatmul.msk.f32.gmra.mxu2 %vm516_vm0, %v2836_v30  ;;  %v3160_v60 = vpop.f32.mrf.mxu1 }
 0x69a   : > { %v6067_v40 = vpop.f32.mrf.mxu2 }
 0x69f   : > { %3799 = vmatmul.msk.f32.gmra.mxu2 %vm516_vm0, %v2839_v13 }
 0x6a2   : > { %v6070_v61 = vpop.f32.mrf.mxu2 }
 0x6a7   : > { %3800 = vmatmul.msk.f32.gmra.mxu2 %vm516_vm0, %v2842_v3  ;;  %v3037_v3 = vadd.f32 %v3036_v49, %v5942_v26 }
 0x6a9   : > { %v3195_v12 = vadd.f32 %v3151_v14, %v3037_v3  ;;  %v3163_v14 = vpop.f32.mrf.mxu1 }
 0x6aa   : > { %v6073_v0 = vpop.f32.mrf.mxu2 }
 0x6af   : > { %3801 = vmatmul.msk.f32.gmra.mxu2 %vm516_vm0, %v2845_v27 }
 0x6b2   : > { %v6076_v44 = vpop.f32.mrf.mxu2 }
 0x6ba   : > { %v3276_v39 = vpop.f32.mrf.mxu2 }
 0x6bb   : > { %v3324_v32 = vadd.f32 %v3276_v39, %v3193_v2 }
 0x6bd   : > { %v3340_v31 = vadd.f32 %v3324_v32, %v4729_v25  ;;  %v3040_v25 = vadd.f32 %v6026_v29, %v5956_v54  ;;  %v3166_v29 = vpop.f32.mrf.mxu1 }
 0x6bf   : > { %3802 = vst.msk [vmem:[%s4738_s24 + $0x180] sm:$0xff] %vm1103_vm1, %v3340_v31  ;;  %v3196_v63 = vadd.f32 %v3154_v56, %v3040_v25 }
 0x6c2   : > { %v3279_v30 = vpop.f32.mrf.mxu2 }
 0x6c3   : > { %v3325_v13 = vadd.f32 %v3279_v30, %v3194_v46 }
 0x6c5   : > { %v3341_v5 = vadd.f32 %v3325_v13, %v4753_v20  ;;  %v3043_v20 = vadd.f32 %v6031_v10, %v5973_v22  ;;  %v3169_v46 = vpop.f32.mrf.mxu1 }
 0x6c7   : > { %3803 = vst.msk [vmem:[%s4738_s24 + $0x188] sm:$0xff] %vm1103_vm1, %v3341_v5  ;;  %v3197_v2 = vadd.f32 %v3157_v7, %v3043_v20 }
 0x6ca   : > { %v3282_v9 = vpop.f32.mrf.mxu2 }
 0x6cb   : > { %v3326_v27 = vadd.f32 %v3282_v9, %v3195_v12 }
 0x6cd   : > { %v3342_v16 = vadd.f32 %v3326_v27, %v4765_v28  ;;  %v3046_v28 = vadd.f32 %v6036_v50, %v5984_v45 }
 0x6cf   : > { %3804 = vst.msk [vmem:[%s4738_s24 + $0x190] sm:$0xff] %vm1103_vm1, %v3342_v16  ;;  %v3198_v56 = vadd.f32 %v3160_v60, %v3046_v28 }
 0x6d2   : > { %v3285_v8 = vpop.f32.mrf.mxu2 }
 0x6d3   : > { %v3327_v26 = vadd.f32 %v3285_v8, %v3196_v63 }
 0x6d5   : > { %v3343_v49 = vadd.f32 %v3327_v26, %v4783_v38  ;;  %v3049_v38 = vadd.f32 %v6041_v4, %v5995_v59  ;;  %v3172_v4 = vpop.f32.mrf.mxu1 }
 0x6d7   : > { %3805 = vst.msk [vmem:[%s4738_s24 + $0x198] sm:$0xff] %vm1103_vm1, %v3343_v49  ;;  %v3199_v31 = vadd.f32 %v3163_v14, %v3049_v38 }
 0x6da   : > { %v3288_v39 = vpop.f32.mrf.mxu2 }
 0x6db   : > { %v3328_v32 = vadd.f32 %v3288_v39, %v3197_v2 }
 0x6dd   : > { %v3344_v54 = vadd.f32 %v3328_v32, %v4795_v37  ;;  %v3052_v37 = vadd.f32 %v6046_v62, %v6009_v53  ;;  %v3175_v9 = vpop.f32.mrf.mxu1 }
 0x6df   : > { %3806 = vst.msk [vmem:[%s4738_s24 + $0x1a0] sm:$0xff] %vm1103_vm1, %v3344_v54  ;;  %v3200_v30 = vadd.f32 %v3166_v29, %v3052_v37 }
 0x6e2   : > { %v3291_v22 = vpop.f32.mrf.mxu2 }
 0x6e3   : > { %v3329_v10 = vadd.f32 %v3291_v22, %v3198_v56 }
 0x6e5   : > { %v3345_v1 = vadd.f32 %v3329_v10, %v6340_v36  ;;  %v3055_v36 = vadd.f32 %v6049_v6, %v6023_v21  ;;  %v3178_v6 = vpop.f32.mrf.mxu1 }
 0x6e7   : > { %3807 = vst.msk [vmem:[%s4738_s24 + $0x1a8] sm:$0xff] %vm1103_vm1, %v3345_v1  ;;  %v3201_v5 = vadd.f32 %v3169_v46, %v3055_v36 }
 0x6ea   : > { %v3294_v45 = vpop.f32.mrf.mxu2 }
 0x6eb   : > { %v3330_v50 = vadd.f32 %v3294_v45, %v3199_v31 }
 0x6ed   : > { %v3346_v7 = vadd.f32 %v3330_v50, %v6344_v43  ;;  %v3058_v43 = vadd.f32 %v6054_v23, %v6028_v48  ;;  %v3181_v26 = vpop.f32.mrf.mxu1 }
 0x6ef   : > { %3808 = vst.msk [vmem:[%s4738_s24 + $0x1b0] sm:$0xff] %vm1103_vm1, %v3346_v7  ;;  %v3202_v27 = vadd.f32 %v3172_v4, %v3058_v43 }
 0x6f2   : > { %v3297_v13 = vpop.f32.mrf.mxu2 }
 0x6f3   : > { %v3331_v59 = vadd.f32 %v3297_v13, %v3200_v30 }
 0x6f5   : > { %v3347_v3 = vadd.f32 %v3331_v59, %v6348_v58  ;;  %v3061_v58 = vadd.f32 %v6059_v11, %v6033_v55 }
 0x6f7   : > { %3809 = vst.msk [vmem:[%s4738_s24 + $0x1b8] sm:$0xff] %vm1103_vm1, %v3347_v3  ;;  %v3203_v16 = vadd.f32 %v3175_v9, %v3061_v58 }
 0x6fa   : > { %v3300_v12 = vpop.f32.mrf.mxu2 }
 0x6fb   : > { %v3332_v53 = vadd.f32 %v3300_v12, %v3201_v5 }
 0x6fd   : > { %v3348_v62 = vadd.f32 %v3332_v53, %v6352_v17  ;;  %v3064_v17 = vadd.f32 %v6064_v19, %v6039_v24  ;;  %v3184_v19 = vpop.f32.mrf.mxu1 }
 0x6ff   : > { %3810 = vst.msk [vmem:[%s4738_s24 + $0x1c0] sm:$0xff] %vm1103_vm1, %v3348_v62  ;;  %v3204_v8 = vadd.f32 %v3178_v6, %v3064_v17 }
 0x702   : > { %v3303_v60 = vpop.f32.mrf.mxu2 }
 0x703   : > { %v3333_v25 = vadd.f32 %v3303_v60, %v3202_v27 }
 0x705   : > { %v3349_v21 = vadd.f32 %v3333_v25, %v6356_v34  ;;  %v3067_v34 = vadd.f32 %v6067_v40, %v6044_v52  ;;  %v3187_v28 = vpop.f32.mrf.mxu1 }
 0x707   : > { %3811 = vst.msk [vmem:[%s4738_s24 + $0x1c8] sm:$0xff] %vm1103_vm1, %v3349_v21  ;;  %v3205_v49 = vadd.f32 %v3181_v26, %v3067_v34 }
 0x70a   : > { %v3306_v48 = vpop.f32.mrf.mxu2 }
 0x70b   : > { %v3334_v23 = vadd.f32 %v3306_v48, %v3203_v16 }
 0x70d   : > { %v3350_v63 = vadd.f32 %v3334_v23, %v6360_v42  ;;  %v3070_v42 = vadd.f32 %v6070_v61, %v6051_v57  ;;  %v3190_v61 = vpop.f32.mrf.mxu1 }
 0x70f   : > { %3812 = vst.msk [vmem:[%s4738_s24 + $0x1d0] sm:$0xff] %vm1103_vm1, %v3350_v63  ;;  %v3206_v39 = vadd.f32 %v3184_v19, %v3070_v42 }
 0x712   : > { %v3309_v55 = vpop.f32.mrf.mxu2 }
 0x713   : > { %v3335_v11 = vadd.f32 %v3309_v55, %v3204_v8 }
 0x715   : > { %v3351_v20 = vadd.f32 %v3335_v11, %v6364_v15  ;;  %v3073_v15 = vadd.f32 %v6073_v0, %v6056_v51 }
 0x717   : > { %3813 = vst.msk [vmem:[%s4738_s24 + $0x1d8] sm:$0xff] %vm1103_vm1, %v3351_v20  ;;  %v3207_v54 = vadd.f32 %v3187_v28, %v3073_v15 }
 0x71a   : > { %v3312_v14 = vpop.f32.mrf.mxu2 }
 0x71b   : > { %v3336_v24 = vadd.f32 %v3312_v14, %v3205_v49 }
 0x71d   : > { %v3352_v2 = vadd.f32 %v3336_v24, %v6368_v33  ;;  %v3076_v33 = vadd.f32 %v6076_v44, %v6062_v47 }
 0x71f   : > { %3814 = vst.msk [vmem:[%s4738_s24 + $0x1e0] sm:$0xff] %vm1103_vm1, %v3352_v2  ;;  %v3208_v22 = vadd.f32 %v3190_v61, %v3076_v33 }
 0x722   : > { %v3315_v32 = vpop.f32.mrf.mxu2 }
 0x723   : > { %v3337_v52 = vadd.f32 %v3315_v32, %v3206_v39 }
 0x725   : > { %v3353_v40 = vadd.f32 %v3337_v52, %v6372_v35 }
 0x727   : > { %3815 = vst.msk [vmem:[%s4738_s24 + $0x1e8] sm:$0xff] %vm1103_vm1, %v3353_v40 }
 0x72a   : > { %v3318_v29 = vpop.f32.mrf.mxu2 }
 0x72b   : > { %v3338_v56 = vadd.f32 %v3318_v29, %v3207_v54 }
 0x72d   : > { %v3354_v57 = vadd.f32 %v3338_v56, %v6375_v41 }
 0x72f   : > { %3816 = vst.msk [vmem:[%s4738_s24 + $0x1f0] sm:$0xff] %vm1103_vm1, %v3354_v57 }
 0x732   : > { %v3321_v10 = vpop.f32.mrf.mxu2 }
 0x733   : > { %v3339_v38 = vadd.f32 %v3321_v10, %v3208_v22 }
 0x735   : > { %v3355_v51 = vadd.f32 %v3339_v38, %v6378_v18 }
 0x737   : > { %3817 = vst.msk [vmem:[%s4738_s24 + $0x1f8] sm:$0xff] %vm1103_vm1, %v3355_v51 }
 0x738 PF: > { %s14_s15 = sadd.s32 1, %s3922_s15  }
 0x739   : > { %p11_p4 = scmp.ge.s32.totalorder %s14_s15, 4  }
 0x73b   :  { %13 = sbr.rel (!%p11_p4) target bundleno = 1 (0x1), region = 75 }

</bundles_post_ra>
